<compile_context>
chip_gen: v7x
topology: tpu7x:2x2x1
jax: 0.10.0
libtpu: 0.0.40
codegen_flags: <defaults>
</compile_context>

<pallas_src>
import functools

import jax
import jax.numpy as jnp
from jax import lax
from jax.experimental import pallas as pl
from jax.experimental.pallas import tpu as pltpu


_NEG_BIG = -1e30  # bias for fake label lanes: exp() underflows to exactly 0


def _round_up(x, m):
    return (x + m - 1) // m * m


def _cdiv(a, b):
    return -(-a // b)


def _vmem_budget_bytes():
    """Generation-aware per-core VMEM budget for the kernel's working set."""
    cap = 64 << 20  # conservative fallback (v7x per-TensorCore physical)
    try:
        cap = int(pltpu.get_tpu_info().vmem_capacity_bytes)
    except Exception:  # trace-time query; fall back silently
        pass
    # Half the physical capacity, clamped: ~64 MiB on v5e/v6e (128 MiB phys),
    # ~32 MiB on v7x (64 MiB phys per core).
    return max(16 << 20, min(cap // 2, 64 << 20))


def _derive_time_tile(T, Bt, E, Hp, Lp, budget):
    """Largest time tile whose pipelined VMEM footprint fits the budget."""
    weights = (2 * E * 4 * Hp          # W_ih  (bf16, single-buffered)
               + 2 * Hp * 4 * Hp       # W_hh  (bf16)
               + 2 * Hp * Lp           # W_out (bf16)
               + 4 * 4 * Hp + 4 * Lp)  # biases (f32)
    state = Bt * Hp * (2 + 4)          # h (bf16) + c (f32) scratch
    per_t = Bt * (2 * E * 2 + 2 * Lp * 4)  # emb(bf16)+out(f32), double-buffered
    avail = max(budget - weights - state - (2 << 20), per_t)
    tt_cap = max(1, min(T, avail // per_t))
    n_tt = _cdiv(T, tt_cap)
    Tt = _cdiv(T, n_tt)
    return Tt, n_tt


def _lstm_ner_kernel(emb_ref, wih_ref, whh_ref, b_ref, wout_ref, bout_ref,
                     out_ref, h_sc, c_sc):
    """One (batch tile, time tile) of the LSTM recurrence + output head.

    emb_ref  : (Tt, Bt, E)   bf16  embedding tile (pipelined DMA)
    wih_ref  : (E, 4*Hp)     bf16  transposed, gate-padded weight_ih
    whh_ref  : (Hp, 4*Hp)    bf16  transposed, gate-padded weight_hh
    b_ref    : (1, 4*Hp)     f32   bias_ih + bias_hh (gate-padded)
    wout_ref : (Hp, Lp)      bf16  transposed, padded Linear weight
    bout_ref : (1, Lp)       f32   Linear bias; fake label lanes hold -1e30
    out_ref  : (Tt, Bt, Lp)  f32   log-probabilities (lane-dense, 128 lanes)
    h_sc,c_sc: (Bt, Hp)            recurrent state, persists across time tiles
    """
    Tt = emb_ref.shape[0]
    Bt, Hp = h_sc.shape

    @pl.when(pl.program_id(1) == 0)      # new batch tile -> reset state
    def _init():
        h_sc[...] = jnp.zeros_like(h_sc)
        c_sc[...] = jnp.zeros_like(c_sc)

    def gx_chunk(t_idx):
        # Input projection for one step: (Bt, E) @ (E, 4Hp), bf16 -> f32 acc.
        return (jnp.dot(emb_ref[t_idx], wih_ref[...],
                        preferred_element_type=jnp.float32) + b_ref[...])

    def step(t, carry):
        gx_cur, h_prev, c_prev = carry

        # --- Off the serial chain: input projection for step t+1 (pure MXU).
        # The index is clamped (last step recomputes chunk Tt-1 into a dead
        # carry) instead of a pl.when so it stays in the same basic block and
        # the packer can co-issue it under this step's EUP work.
        gx_next = gx_chunk(jnp.minimum(t + 1, Tt - 1))

        # --- Serial critical path: recurrent matmul + gate nonlinearities
        # (f32 elementwise; v5e has no bf16 VPU/EUP).  PyTorch order [i,f,g,o].
        gates = gx_cur + jnp.dot(h_prev, whh_ref[...],
                                 preferred_element_type=jnp.float32)
        i_g = jax.nn.sigmoid(gates[:, 0:Hp])
        f_g = jax.nn.sigmoid(gates[:, Hp:2 * Hp])
        g_g = jnp.tanh(gates[:, 2 * Hp:3 * Hp])
        o_g = jax.nn.sigmoid(gates[:, 3 * Hp:4 * Hp])
        c_new = f_g * c_prev + i_g * g_g
        h_new = o_g * jnp.tanh(c_new)
        h_bf = h_new.astype(jnp.bfloat16)     # bf16 MXU operand for step t+1

        # --- Off the serial chain: output head for step t (MXU + EUP + one
        # lane-dense (Bt, 128) store); logits / log-softmax stay in f32 so the
        # -1e30 fake-label bias cannot overflow.
        logits = (jnp.dot(h_bf, wout_ref[...],
                          preferred_element_type=jnp.float32) + bout_ref[...])
        m = jnp.max(logits, axis=-1, keepdims=True)
        z = logits - m
        lse = jnp.log(jnp.sum(jnp.exp(z), axis=-1, keepdims=True))
        out_ref[t] = (z - lse).astype(out_ref.dtype)

        return gx_next, h_bf, c_new

    carry0 = (gx_chunk(0), h_sc[...], c_sc[...])
    _, h_fin, c_fin = lax.fori_loop(0, Tt, step, carry0,
                                    unroll=True if Tt <= 8 else 4)

    # Persist recurrent state for the next time tile of this batch tile.
    # TODO(synk): padded time steps (t >= T in the last tile) keep evolving
    # h/c; their outputs are sliced off so numerics are unaffected.
    h_sc[...] = h_fin
    c_sc[...] = c_fin


def _pad_gate_cols(w, h, hp):
    """(..., 4*h) -> (..., 4*hp), zero-padding inside each gate block."""
    if hp == h:
        return w
    lead = w.shape[:-1]
    w4 = w.reshape(lead + (4, h))
    pad = [(0, 0)] * len(lead) + [(0, 0), (0, hp - h)]
    return jnp.pad(w4, pad).reshape(lead + (4 * hp,))


@jax.jit
def bilstm_ner_forward(tokens, params):
    """tokens: (B, T) int32 token ids. Returns (B, T, n_labels) f32 log-probs."""
    emb_table = params["emb"]            # (n_tokens, E), row 0 == 0 (padding_idx)
    w_ih_t = params["w_ih_t"]            # (E, 4H)
    w_hh_t = params["w_hh_t"]            # (H, 4H)
    bias = params["bias"]                # (1, 4H)
    w_out_t = params["w_out_t"]          # (H, L)
    b_out = params["b_out"]              # (1, L)

    B, T = tokens.shape
    E = emb_table.shape[1]
    H = w_hh_t.shape[0]
    L = w_out_t.shape[1]

    # Batch tiling: two "parallel" batch tiles when the batch is big enough so
    # v7x's two TensorCores each take half (no-op on v5e/v6e, 1 TC).  For best
    # MXU row utilisation callers should batch sequences (target Bt >= 64).
    n_bt = 2 if B >= 16 else 1
    Bp = _round_up(B, 8 * n_bt)          # sublane-aligned batch
    Bt = Bp // n_bt
    Hp = _round_up(H, 128)               # lane-aligned hidden (use H % 128 == 0
                                         # to avoid the per-gate padding cost)
    Lp = _round_up(L, 128)               # lane-dense output head

    budget = _vmem_budget_bytes()
    Tt, n_tt = _derive_time_tile(T, Bt, E, Hp, Lp, budget)
    Tp = Tt * n_tt

    # Embedding lookup (tiny, data-dependent glue) gathered time-major in one
    # go and emitted as bf16; dropout is identity at inference.
    # TODO(synk): training-mode dropout masks are not implemented.
    emb_tm = jnp.take(emb_table, tokens.T, axis=0).astype(jnp.bfloat16)  # (T,B,E)
    emb_tm = jnp.pad(emb_tm, ((0, Tp - T), (0, Bp - B), (0, 0)))
    emb4d = emb_tm.reshape(Tp, n_bt, Bt, E).transpose(1, 0, 2, 3)        # (n_bt,Tp,Bt,E)

    # Parameter padding: padded hidden units stay exactly 0 through the
    # recurrence (zero rows/cols + zero bias); padded label lanes get bias
    # -1e30 so they vanish in the softmax.  Matmul operands bf16, biases f32.
    w_ih_p = _pad_gate_cols(w_ih_t, H, Hp).astype(jnp.bfloat16)                  # (E,4Hp)
    w_hh_p = _pad_gate_cols(jnp.pad(w_hh_t, ((0, Hp - H), (0, 0))), H, Hp
                            ).astype(jnp.bfloat16)                               # (Hp,4Hp)
    bias_p = _pad_gate_cols(bias, H, Hp)                                         # (1,4Hp) f32
    w_out_p = jnp.pad(w_out_t, ((0, Hp - H), (0, Lp - L))).astype(jnp.bfloat16)  # (Hp,Lp)
    b_out_p = jnp.pad(b_out, ((0, 0), (0, Lp - L)),
                      constant_values=_NEG_BIG)                                  # (1,Lp) f32

    # Constant-index weights: single-buffered residents (halve weight VMEM).
    resident = functools.partial(pl.BlockSpec, pipeline_mode=pl.Buffered(1))

    out4d = pl.pallas_call(
        _lstm_ner_kernel,
        out_shape=jax.ShapeDtypeStruct((n_bt, Tp, Bt, Lp), jnp.float32),
        grid=(n_bt, n_tt),
        in_specs=[
            # embedding time tile: default double-buffered pipelined DMA
            pl.BlockSpec((None, Tt, Bt, E), lambda b, t: (b, t, 0, 0)),
            resident((E, 4 * Hp), lambda b, t: (0, 0)),
            resident((Hp, 4 * Hp), lambda b, t: (0, 0)),
            resident((1, 4 * Hp), lambda b, t: (0, 0)),
            resident((Hp, Lp), lambda b, t: (0, 0)),
            resident((1, Lp), lambda b, t: (0, 0)),
        ],
        out_specs=pl.BlockSpec((None, Tt, Bt, Lp), lambda b, t: (b, t, 0, 0)),
        scratch_shapes=[
            pltpu.VMEM((Bt, Hp), jnp.bfloat16),   # h state (persists across t)
            pltpu.VMEM((Bt, Hp), jnp.float32),    # c state (f32 for accuracy)
        ],
        compiler_params=pltpu.CompilerParams(
            # Batch tiles are independent (v7x megacore); the time axis is the
            # serial recurrence and must stay "arbitrary".
            dimension_semantics=("parallel", "arbitrary"),
            vmem_limit_bytes=int(budget),
        ),
    )(emb4d, w_ih_p, w_hh_p, bias_p, w_out_p, b_out_p)

    out = out4d.transpose(1, 0, 2, 3).reshape(Tp, Bp, Lp)[:T, :B, :L]    # (T,B,L)
    return jnp.transpose(out, (1, 0, 2))                                 # (B,T,L)


def _reference_forward(tokens, params):
    """Pure-JAX f32 reference for the same math (lax.scan LSTM)."""
    emb = jnp.take(params["emb"], tokens, axis=0)            # (B, T, E)
    B = emb.shape[0]
    H = params["w_hh_t"].shape[0]

    def cell(carry, x_t):
        h, c = carry
        gates = x_t @ params["w_ih_t"] + h @ params["w_hh_t"] + params["bias"]
        i_g = jax.nn.sigmoid(gates[:, 0:H])
        f_g = jax.nn.sigmoid(gates[:, H:2 * H])
        g_g = jnp.tanh(gates[:, 2 * H:3 * H])
        o_g = jax.nn.sigmoid(gates[:, 3 * H:4 * H])
        c_new = f_g * c + i_g * g_g
        h_new = o_g * jnp.tanh(c_new)
        return (h_new, c_new), h_new

    init = (jnp.zeros((B, H), jnp.float32), jnp.zeros((B, H), jnp.float32))
    _, hs = lax.scan(cell, init, jnp.transpose(emb, (1, 0, 2)))  # (T, B, H)
    hs = jnp.transpose(hs, (1, 0, 2))                            # (B, T, H)
    logits = hs @ params["w_out_t"] + params["b_out"]
    return jax.nn.log_softmax(logits, axis=2)


def init_params(key, n_tokens, n_labels, emb_dim, hid_dim):
    ks = jax.random.split(key, 6)
    scale = 1.0 / jnp.sqrt(hid_dim)
    emb = jax.random.normal(ks[0], (n_tokens, emb_dim), jnp.float32)
    emb = emb.at[0].set(0.0)  # padding_idx=0
    w_ih = jax.random.uniform(ks[1], (4 * hid_dim, emb_dim), jnp.float32,
                              -scale, scale)
    w_hh = jax.random.uniform(ks[2], (4 * hid_dim, hid_dim), jnp.float32,
                              -scale, scale)
    b_ih = jax.random.uniform(ks[3], (4 * hid_dim,), jnp.float32, -scale, scale)
    b_hh = jax.random.uniform(ks[4], (4 * hid_dim,), jnp.float32, -scale, scale)
    w_out = jax.random.uniform(ks[5], (n_labels, hid_dim), jnp.float32,
                               -scale, scale)
    b_out = jnp.zeros((n_labels,), jnp.float32)
    return {
        "emb": emb,
        "w_ih_t": w_ih.T,                       # (E, 4H)
        "w_hh_t": w_hh.T,                       # (H, 4H)
        "bias": (b_ih + b_hh)[None, :],         # (1, 4H)
        "w_out_t": w_out.T,                     # (H, L)
        "b_out": b_out[None, :],                # (1, L)
    }


if __name__ == "__main__":
    # Small shapes consistent with the module; hid_dim is a multiple of 128 so
    # the per-gate padding path adds no overhead (batch/label padding is still
    # exercised: B=2 -> 8 rows, L=9 -> 128 lanes).
    B, T = 2, 8
    n_tokens, n_labels = 50, 9
    emb_dim, hid_dim = 32, 128

    key = jax.random.PRNGKey(0)
    k_par, k_tok = jax.random.split(key)
    params = init_params(k_par, n_tokens, n_labels, emb_dim, hid_dim)
    tokens = jax.random.randint(k_tok, (B, T), 0, n_tokens, dtype=jnp.int32)

    out = jax.block_until_ready(bilstm_ner_forward(tokens, params))
    ref = jax.block_until_ready(_reference_forward(tokens, params))

    assert out.shape == (B, T, n_labels)
    # bf16 MXU operands (f32 accumulation) vs the pure-f32 reference.
    err = jnp.max(jnp.abs(out - ref))
    assert jnp.allclose(out, ref, atol=5e-2, rtol=5e-2), (
        f"mismatch vs reference: max abs err {err:.4f}")
    print("KERNEL_OK")
</pallas_src>

<mosaic_0001>
module attributes {stable_mosaic.version = 11 : i64} {
  func.func @_lstm_ner_kernel(%arg0: i32, %arg1: i32, %arg2: memref<1x8x8x32xbf16, #tpu.memory_space<vmem>>, %arg3: memref<32x512xbf16, #tpu.memory_space<vmem>>, %arg4: memref<128x512xbf16, #tpu.memory_space<vmem>>, %arg5: memref<1x512xf32, #tpu.memory_space<vmem>>, %arg6: memref<128x128xbf16, #tpu.memory_space<vmem>>, %arg7: memref<1x128xf32, #tpu.memory_space<vmem>>, %arg8: memref<1x8x8x128xf32, #tpu.memory_space<vmem>>, %arg9: memref<8x128xbf16, #tpu.memory_space<vmem>>, %arg10: memref<8x128xf32, #tpu.memory_space<vmem>>) attributes {dimension_semantics = [#tpu.dimension_semantics<parallel>, #tpu.dimension_semantics<arbitrary>], iteration_bounds = array<i64: 1, 1>, scalar_prefetch = 0 : i64, scratch_operands = 2 : i64, tpu.core_type = #tpu.core_type<tc>, window_params = [{transform_indices = @transform_0, window_bounds = array<i64: 1, 8, 8, 32>}, {pipeline_mode = #tpu.pipeline_mode<synchronous>, transform_indices = @transform_1, window_bounds = array<i64: 32, 512>}, {pipeline_mode = #tpu.pipeline_mode<synchronous>, transform_indices = @transform_2, window_bounds = array<i64: 128, 512>}, {pipeline_mode = #tpu.pipeline_mode<synchronous>, transform_indices = @transform_3, window_bounds = array<i64: 1, 512>}, {pipeline_mode = #tpu.pipeline_mode<synchronous>, transform_indices = @transform_4, window_bounds = array<i64: 128, 128>}, {pipeline_mode = #tpu.pipeline_mode<synchronous>, transform_indices = @transform_5, window_bounds = array<i64: 1, 128>}, {transform_indices = @transform_6, window_bounds = array<i64: 1, 8, 8, 128>}]} {
    %c0_i32 = arith.constant 0 : i32
    %0 = arith.cmpi eq, %arg1, %c0_i32 : i32
    %1 = arith.extui %0 : i1 to i32
    %c0_i32_0 = arith.constant 0 : i32
    %2 = arith.cmpi ne, %1, %c0_i32_0 : i32
    scf.if %2 {
      %cst_225 = arith.constant 0.000000e+00 : bf16
      %478 = vector.broadcast %cst_225 : bf16 to vector<8x128xbf16>
      %c0_226 = arith.constant 0 : index
      %c0_227 = arith.constant 0 : index
      %479 = vector.load %arg9[%c0_226, %c0_227] : memref<8x128xbf16, #tpu.memory_space<vmem>>, vector<8x128xbf16>
      tpu.vector_store %arg9[%c0_226, %c0_227], %478 {strides = array<i32>} : memref<8x128xbf16, #tpu.memory_space<vmem>>, vector<8x128xbf16>,
      %cst_228 = arith.constant 0.000000e+00 : f32
      %480 = vector.broadcast %cst_228 : f32 to vector<8x128xf32>
      %c0_229 = arith.constant 0 : index
      %c0_230 = arith.constant 0 : index
      %481 = vector.load %arg10[%c0_229, %c0_230] : memref<8x128xf32, #tpu.memory_space<vmem>>, vector<8x128xf32>
      tpu.vector_store %arg10[%c0_229, %c0_230], %480 {strides = array<i32>} : memref<8x128xf32, #tpu.memory_space<vmem>>, vector<8x128xf32>,
    } else {
    }
    %c0 = arith.constant 0 : index
    %c0_1 = arith.constant 0 : index
    %c0_2 = arith.constant 0 : index
    %c0_3 = arith.constant 0 : index
    %3 = vector.load %arg2[%c0, %c0_1, %c0_2, %c0_3] : memref<1x8x8x32xbf16, #tpu.memory_space<vmem>>, vector<1x1x8x32xbf16>
    %4 = vector.shape_cast %3 : vector<1x1x8x32xbf16> to vector<8x32xbf16>
    %c0_4 = arith.constant 0 : index
    %c0_5 = arith.constant 0 : index
    %5 = vector.load %arg3[%c0_4, %c0_5] : memref<32x512xbf16, #tpu.memory_space<vmem>>, vector<32x512xbf16>
    %cst = arith.constant dense<0.000000e+00> : vector<8x512xf32>
    %6 = tpu.matmul %4, %5, %cst {dimension_numbers = #tpu.dot_dimension_numbers<[1], [0], [0], [1], [0, 0, 1, 1], [], []>} : vector<8x32xbf16>, vector<32x512xbf16>, vector<8x512xf32> -> vector<8x512xf32>
    %c0_6 = arith.constant 0 : index
    %c0_7 = arith.constant 0 : index
    %7 = vector.load %arg5[%c0_6, %c0_7] : memref<1x512xf32, #tpu.memory_space<vmem>>, vector<1x512xf32>
    %8 = vector.broadcast %7 : vector<1x512xf32> to vector<8x512xf32>
    %9 = arith.addf %6, %8 : vector<8x512xf32>
    %c0_8 = arith.constant 0 : index
    %c0_9 = arith.constant 0 : index
    %10 = vector.load %arg9[%c0_8, %c0_9] : memref<8x128xbf16, #tpu.memory_space<vmem>>, vector<8x128xbf16>
    %c0_10 = arith.constant 0 : index
    %c0_11 = arith.constant 0 : index
    %11 = vector.load %arg10[%c0_10, %c0_11] : memref<8x128xf32, #tpu.memory_space<vmem>>, vector<8x128xf32>
    %c0_i32_12 = arith.constant 0 : i32
    %c1_i32 = arith.constant 1 : i32
    %12 = arith.addi %c0_i32_12, %c1_i32 : i32
    %c7_i32 = arith.constant 7 : i32
    %13 = arith.minsi %12, %c7_i32 : i32
    %c0_13 = arith.constant 0 : index
    %14 = arith.index_cast %13 : i32 to index
    %c0_14 = arith.constant 0 : index
    %c0_15 = arith.constant 0 : index
    %15 = vector.load %arg2[%c0_13, %14, %c0_14, %c0_15] : memref<1x8x8x32xbf16, #tpu.memory_space<vmem>>, vector<1x1x8x32xbf16>
    %16 = vector.shape_cast %15 : vector<1x1x8x32xbf16> to vector<8x32xbf16>
    %c0_16 = arith.constant 0 : index
    %c0_17 = arith.constant 0 : index
    %17 = vector.load %arg3[%c0_16, %c0_17] : memref<32x512xbf16, #tpu.memory_space<vmem>>, vector<32x512xbf16>
    %cst_18 = arith.constant dense<0.000000e+00> : vector<8x512xf32>
    %18 = tpu.matmul %16, %17, %cst_18 {dimension_numbers = #tpu.dot_dimension_numbers<[1], [0], [0], [1], [0, 0, 1, 1], [], []>} : vector<8x32xbf16>, vector<32x512xbf16>, vector<8x512xf32> -> vector<8x512xf32>
    %c0_19 = arith.constant 0 : index
    %c0_20 = arith.constant 0 : index
    %19 = vector.load %arg5[%c0_19, %c0_20] : memref<1x512xf32, #tpu.memory_space<vmem>>, vector<1x512xf32>
    %20 = vector.broadcast %19 : vector<1x512xf32> to vector<8x512xf32>
    %21 = arith.addf %18, %20 : vector<8x512xf32>
    %c0_21 = arith.constant 0 : index
    %c0_22 = arith.constant 0 : index
    %22 = vector.load %arg4[%c0_21, %c0_22] : memref<128x512xbf16, #tpu.memory_space<vmem>>, vector<128x512xbf16>
    %cst_23 = arith.constant dense<0.000000e+00> : vector<8x512xf32>
    %23 = tpu.matmul %10, %22, %cst_23 {dimension_numbers = #tpu.dot_dimension_numbers<[1], [0], [0], [1], [0, 0, 1, 1], [], []>} : vector<8x128xbf16>, vector<128x512xbf16>, vector<8x512xf32> -> vector<8x512xf32>
    %24 = arith.addf %9, %23 : vector<8x512xf32>
    %25 = vector.extract_strided_slice %24 {offsets = [0, 0], sizes = [8, 128], strides = [1, 1]} : vector<8x512xf32> to vector<8x128xf32>
    %26 = arith.negf %25 : vector<8x128xf32>
    %27 = math.exp %26 : vector<8x128xf32>
    %cst_24 = arith.constant 1.000000e+00 : f32
    %28 = vector.broadcast %cst_24 : f32 to vector<8x128xf32>
    %29 = arith.addf %28, %27 : vector<8x128xf32>
    %30 = arith.divf %28, %29 : vector<8x128xf32>
    %31 = vector.extract_strided_slice %24 {offsets = [0, 128], sizes = [8, 128], strides = [1, 1]} : vector<8x512xf32> to vector<8x128xf32>
    %32 = arith.negf %31 : vector<8x128xf32>
    %33 = math.exp %32 : vector<8x128xf32>
    %cst_25 = arith.constant 1.000000e+00 : f32
    %34 = vector.broadcast %cst_25 : f32 to vector<8x128xf32>
    %35 = arith.addf %34, %33 : vector<8x128xf32>
    %36 = arith.divf %34, %35 : vector<8x128xf32>
    %37 = vector.extract_strided_slice %24 {offsets = [0, 256], sizes = [8, 128], strides = [1, 1]} : vector<8x512xf32> to vector<8x128xf32>
    %38 = math.tanh %37 : vector<8x128xf32>
    %39 = vector.extract_strided_slice %24 {offsets = [0, 384], sizes = [8, 128], strides = [1, 1]} : vector<8x512xf32> to vector<8x128xf32>
    %40 = arith.negf %39 : vector<8x128xf32>
    %41 = math.exp %40 : vector<8x128xf32>
    %cst_26 = arith.constant 1.000000e+00 : f32
    %42 = vector.broadcast %cst_26 : f32 to vector<8x128xf32>
    %43 = arith.addf %42, %41 : vector<8x128xf32>
    %44 = arith.divf %42, %43 : vector<8x128xf32>
    %45 = arith.mulf %36, %11 : vector<8x128xf32>
    %46 = arith.mulf %30, %38 : vector<8x128xf32>
    %47 = arith.addf %45, %46 : vector<8x128xf32>
    %48 = math.tanh %47 : vector<8x128xf32>
    %49 = arith.mulf %44, %48 : vector<8x128xf32>
    %50 = arith.truncf %49 : vector<8x128xf32> to vector<8x128xbf16>
    %c0_27 = arith.constant 0 : index
    %c0_28 = arith.constant 0 : index
    %51 = vector.load %arg6[%c0_27, %c0_28] : memref<128x128xbf16, #tpu.memory_space<vmem>>, vector<128x128xbf16>
    %cst_29 = arith.constant dense<0.000000e+00> : vector<8x128xf32>
    %52 = tpu.matmul %50, %51, %cst_29 {dimension_numbers = #tpu.dot_dimension_numbers<[1], [0], [0], [1], [0, 0, 1, 1], [], []>} : vector<8x128xbf16>, vector<128x128xbf16>, vector<8x128xf32> -> vector<8x128xf32>
    %c0_30 = arith.constant 0 : index
    %c0_31 = arith.constant 0 : index
    %53 = vector.load %arg7[%c0_30, %c0_31] : memref<1x128xf32, #tpu.memory_space<vmem>>, vector<1x128xf32>
    %54 = vector.broadcast %53 : vector<1x128xf32> to vector<8x128xf32>
    %55 = arith.addf %52, %54 : vector<8x128xf32>
    %cst_32 = arith.constant dense<0xFF800000> : vector<8xf32>
    %56 = vector.multi_reduction <maximumf>, %55, %cst_32 [1] : vector<8x128xf32> to vector<8xf32>
    %57 = vector.shape_cast %56 : vector<8xf32> to vector<8x1xf32>
    %58 = vector.broadcast %57 : vector<8x1xf32> to vector<8x128xf32>
    %59 = arith.subf %55, %58 : vector<8x128xf32>
    %60 = math.exp %59 : vector<8x128xf32>
    %cst_33 = arith.constant dense<0.000000e+00> : vector<8xf32>
    %61 = vector.multi_reduction <add>, %60, %cst_33 [1] : vector<8x128xf32> to vector<8xf32>
    %62 = vector.shape_cast %61 : vector<8xf32> to vector<8x1xf32>
    %63 = math.log %62 : vector<8x1xf32>
    %64 = vector.broadcast %63 : vector<8x1xf32> to vector<8x128xf32>
    %65 = arith.subf %59, %64 : vector<8x128xf32>
    %c0_34 = arith.constant 0 : index
    %66 = arith.index_cast %c0_i32_12 : i32 to index
    %c0_35 = arith.constant 0 : index
    %c0_36 = arith.constant 0 : index
    %67 = vector.load %arg8[%c0_34, %66, %c0_35, %c0_36] : memref<1x8x8x128xf32, #tpu.memory_space<vmem>>, vector<1x1x8x128xf32>
    %68 = vector.shape_cast %67 : vector<1x1x8x128xf32> to vector<8x128xf32>
    %69 = vector.shape_cast %65 : vector<8x128xf32> to vector<1x1x8x128xf32>
    tpu.vector_store %arg8[%c0_34, %66, %c0_35, %c0_36], %69 {strides = array<i32>} : memref<1x8x8x128xf32, #tpu.memory_space<vmem>>, vector<1x1x8x128xf32>,
    %c1_i32_37 = arith.constant 1 : i32
    %c1_i32_38 = arith.constant 1 : i32
    %70 = arith.addi %c1_i32_37, %c1_i32_38 : i32
    %c7_i32_39 = arith.constant 7 : i32
    %71 = arith.minsi %70, %c7_i32_39 : i32
    %c0_40 = arith.constant 0 : index
    %72 = arith.index_cast %71 : i32 to index
    %c0_41 = arith.constant 0 : index
    %c0_42 = arith.constant 0 : index
    %73 = vector.load %arg2[%c0_40, %72, %c0_41, %c0_42] : memref<1x8x8x32xbf16, #tpu.memory_space<vmem>>, vector<1x1x8x32xbf16>
    %74 = vector.shape_cast %73 : vector<1x1x8x32xbf16> to vector<8x32xbf16>
    %c0_43 = arith.constant 0 : index
    %c0_44 = arith.constant 0 : index
    %75 = vector.load %arg3[%c0_43, %c0_44] : memref<32x512xbf16, #tpu.memory_space<vmem>>, vector<32x512xbf16>
    %cst_45 = arith.constant dense<0.000000e+00> : vector<8x512xf32>
    %76 = tpu.matmul %74, %75, %cst_45 {dimension_numbers = #tpu.dot_dimension_numbers<[1], [0], [0], [1], [0, 0, 1, 1], [], []>} : vector<8x32xbf16>, vector<32x512xbf16>, vector<8x512xf32> -> vector<8x512xf32>
    %c0_46 = arith.constant 0 : index
    %c0_47 = arith.constant 0 : index
    %77 = vector.load %arg5[%c0_46, %c0_47] : memref<1x512xf32, #tpu.memory_space<vmem>>, vector<1x512xf32>
    %78 = vector.broadcast %77 : vector<1x512xf32> to vector<8x512xf32>
    %79 = arith.addf %76, %78 : vector<8x512xf32>
    %c0_48 = arith.constant 0 : index
    %c0_49 = arith.constant 0 : index
    %80 = vector.load %arg4[%c0_48, %c0_49] : memref<128x512xbf16, #tpu.memory_space<vmem>>, vector<128x512xbf16>
    %cst_50 = arith.constant dense<0.000000e+00> : vector<8x512xf32>
    %81 = tpu.matmul %50, %80, %cst_50 {dimension_numbers = #tpu.dot_dimension_numbers<[1], [0], [0], [1], [0, 0, 1, 1], [], []>} : vector<8x128xbf16>, vector<128x512xbf16>, vector<8x512xf32> -> vector<8x512xf32>
    %82 = arith.addf %21, %81 : vector<8x512xf32>
    %83 = vector.extract_strided_slice %82 {offsets = [0, 0], sizes = [8, 128], strides = [1, 1]} : vector<8x512xf32> to vector<8x128xf32>
    %84 = arith.negf %83 : vector<8x128xf32>
    %85 = math.exp %84 : vector<8x128xf32>
    %cst_51 = arith.constant 1.000000e+00 : f32
    %86 = vector.broadcast %cst_51 : f32 to vector<8x128xf32>
    %87 = arith.addf %86, %85 : vector<8x128xf32>
    %88 = arith.divf %86, %87 : vector<8x128xf32>
    %89 = vector.extract_strided_slice %82 {offsets = [0, 128], sizes = [8, 128], strides = [1, 1]} : vector<8x512xf32> to vector<8x128xf32>
    %90 = arith.negf %89 : vector<8x128xf32>
    %91 = math.exp %90 : vector<8x128xf32>
    %cst_52 = arith.constant 1.000000e+00 : f32
    %92 = vector.broadcast %cst_52 : f32 to vector<8x128xf32>
    %93 = arith.addf %92, %91 : vector<8x128xf32>
    %94 = arith.divf %92, %93 : vector<8x128xf32>
    %95 = vector.extract_strided_slice %82 {offsets = [0, 256], sizes = [8, 128], strides = [1, 1]} : vector<8x512xf32> to vector<8x128xf32>
    %96 = math.tanh %95 : vector<8x128xf32>
    %97 = vector.extract_strided_slice %82 {offsets = [0, 384], sizes = [8, 128], strides = [1, 1]} : vector<8x512xf32> to vector<8x128xf32>
    %98 = arith.negf %97 : vector<8x128xf32>
    %99 = math.exp %98 : vector<8x128xf32>
    %cst_53 = arith.constant 1.000000e+00 : f32
    %100 = vector.broadcast %cst_53 : f32 to vector<8x128xf32>
    %101 = arith.addf %100, %99 : vector<8x128xf32>
    %102 = arith.divf %100, %101 : vector<8x128xf32>
    %103 = arith.mulf %94, %47 : vector<8x128xf32>
    %104 = arith.mulf %88, %96 : vector<8x128xf32>
    %105 = arith.addf %103, %104 : vector<8x128xf32>
    %106 = math.tanh %105 : vector<8x128xf32>
    %107 = arith.mulf %102, %106 : vector<8x128xf32>
    %108 = arith.truncf %107 : vector<8x128xf32> to vector<8x128xbf16>
    %c0_54 = arith.constant 0 : index
    %c0_55 = arith.constant 0 : index
    %109 = vector.load %arg6[%c0_54, %c0_55] : memref<128x128xbf16, #tpu.memory_space<vmem>>, vector<128x128xbf16>
    %cst_56 = arith.constant dense<0.000000e+00> : vector<8x128xf32>
    %110 = tpu.matmul %108, %109, %cst_56 {dimension_numbers = #tpu.dot_dimension_numbers<[1], [0], [0], [1], [0, 0, 1, 1], [], []>} : vector<8x128xbf16>, vector<128x128xbf16>, vector<8x128xf32> -> vector<8x128xf32>
    %c0_57 = arith.constant 0 : index
    %c0_58 = arith.constant 0 : index
    %111 = vector.load %arg7[%c0_57, %c0_58] : memref<1x128xf32, #tpu.memory_space<vmem>>, vector<1x128xf32>
    %112 = vector.broadcast %111 : vector<1x128xf32> to vector<8x128xf32>
    %113 = arith.addf %110, %112 : vector<8x128xf32>
    %cst_59 = arith.constant dense<0xFF800000> : vector<8xf32>
    %114 = vector.multi_reduction <maximumf>, %113, %cst_59 [1] : vector<8x128xf32> to vector<8xf32>
    %115 = vector.shape_cast %114 : vector<8xf32> to vector<8x1xf32>
    %116 = vector.broadcast %115 : vector<8x1xf32> to vector<8x128xf32>
    %117 = arith.subf %113, %116 : vector<8x128xf32>
    %118 = math.exp %117 : vector<8x128xf32>
    %cst_60 = arith.constant dense<0.000000e+00> : vector<8xf32>
    %119 = vector.multi_reduction <add>, %118, %cst_60 [1] : vector<8x128xf32> to vector<8xf32>
    %120 = vector.shape_cast %119 : vector<8xf32> to vector<8x1xf32>
    %121 = math.log %120 : vector<8x1xf32>
    %122 = vector.broadcast %121 : vector<8x1xf32> to vector<8x128xf32>
    %123 = arith.subf %117, %122 : vector<8x128xf32>
    %c0_61 = arith.constant 0 : index
    %124 = arith.index_cast %c1_i32_37 : i32 to index
    %c0_62 = arith.constant 0 : index
    %c0_63 = arith.constant 0 : index
    %125 = vector.load %arg8[%c0_61, %124, %c0_62, %c0_63] : memref<1x8x8x128xf32, #tpu.memory_space<vmem>>, vector<1x1x8x128xf32>
    %126 = vector.shape_cast %125 : vector<1x1x8x128xf32> to vector<8x128xf32>
    %127 = vector.shape_cast %123 : vector<8x128xf32> to vector<1x1x8x128xf32>
    tpu.vector_store %arg8[%c0_61, %124, %c0_62, %c0_63], %127 {strides = array<i32>} : memref<1x8x8x128xf32, #tpu.memory_space<vmem>>, vector<1x1x8x128xf32>,
    %c2_i32 = arith.constant 2 : i32
    %c1_i32_64 = arith.constant 1 : i32
    %128 = arith.addi %c2_i32, %c1_i32_64 : i32
    %c7_i32_65 = arith.constant 7 : i32
    %129 = arith.minsi %128, %c7_i32_65 : i32
    %c0_66 = arith.constant 0 : index
    %130 = arith.index_cast %129 : i32 to index
    %c0_67 = arith.constant 0 : index
    %c0_68 = arith.constant 0 : index
    %131 = vector.load %arg2[%c0_66, %130, %c0_67, %c0_68] : memref<1x8x8x32xbf16, #tpu.memory_space<vmem>>, vector<1x1x8x32xbf16>
    %132 = vector.shape_cast %131 : vector<1x1x8x32xbf16> to vector<8x32xbf16>
    %c0_69 = arith.constant 0 : index
    %c0_70 = arith.constant 0 : index
    %133 = vector.load %arg3[%c0_69, %c0_70] : memref<32x512xbf16, #tpu.memory_space<vmem>>, vector<32x512xbf16>
    %cst_71 = arith.constant dense<0.000000e+00> : vector<8x512xf32>
    %134 = tpu.matmul %132, %133, %cst_71 {dimension_numbers = #tpu.dot_dimension_numbers<[1], [0], [0], [1], [0, 0, 1, 1], [], []>} : vector<8x32xbf16>, vector<32x512xbf16>, vector<8x512xf32> -> vector<8x512xf32>
    %c0_72 = arith.constant 0 : index
    %c0_73 = arith.constant 0 : index
    %135 = vector.load %arg5[%c0_72, %c0_73] : memref<1x512xf32, #tpu.memory_space<vmem>>, vector<1x512xf32>
    %136 = vector.broadcast %135 : vector<1x512xf32> to vector<8x512xf32>
    %137 = arith.addf %134, %136 : vector<8x512xf32>
    %c0_74 = arith.constant 0 : index
    %c0_75 = arith.constant 0 : index
    %138 = vector.load %arg4[%c0_74, %c0_75] : memref<128x512xbf16, #tpu.memory_space<vmem>>, vector<128x512xbf16>
    %cst_76 = arith.constant dense<0.000000e+00> : vector<8x512xf32>
    %139 = tpu.matmul %108, %138, %cst_76 {dimension_numbers = #tpu.dot_dimension_numbers<[1], [0], [0], [1], [0, 0, 1, 1], [], []>} : vector<8x128xbf16>, vector<128x512xbf16>, vector<8x512xf32> -> vector<8x512xf32>
    %140 = arith.addf %79, %139 : vector<8x512xf32>
    %141 = vector.extract_strided_slice %140 {offsets = [0, 0], sizes = [8, 128], strides = [1, 1]} : vector<8x512xf32> to vector<8x128xf32>
    %142 = arith.negf %141 : vector<8x128xf32>
    %143 = math.exp %142 : vector<8x128xf32>
    %cst_77 = arith.constant 1.000000e+00 : f32
    %144 = vector.broadcast %cst_77 : f32 to vector<8x128xf32>
    %145 = arith.addf %144, %143 : vector<8x128xf32>
    %146 = arith.divf %144, %145 : vector<8x128xf32>
    %147 = vector.extract_strided_slice %140 {offsets = [0, 128], sizes = [8, 128], strides = [1, 1]} : vector<8x512xf32> to vector<8x128xf32>
    %148 = arith.negf %147 : vector<8x128xf32>
    %149 = math.exp %148 : vector<8x128xf32>
    %cst_78 = arith.constant 1.000000e+00 : f32
    %150 = vector.broadcast %cst_78 : f32 to vector<8x128xf32>
    %151 = arith.addf %150, %149 : vector<8x128xf32>
    %152 = arith.divf %150, %151 : vector<8x128xf32>
    %153 = vector.extract_strided_slice %140 {offsets = [0, 256], sizes = [8, 128], strides = [1, 1]} : vector<8x512xf32> to vector<8x128xf32>
    %154 = math.tanh %153 : vector<8x128xf32>
    %155 = vector.extract_strided_slice %140 {offsets = [0, 384], sizes = [8, 128], strides = [1, 1]} : vector<8x512xf32> to vector<8x128xf32>
    %156 = arith.negf %155 : vector<8x128xf32>
    %157 = math.exp %156 : vector<8x128xf32>
    %cst_79 = arith.constant 1.000000e+00 : f32
    %158 = vector.broadcast %cst_79 : f32 to vector<8x128xf32>
    %159 = arith.addf %158, %157 : vector<8x128xf32>
    %160 = arith.divf %158, %159 : vector<8x128xf32>
    %161 = arith.mulf %152, %105 : vector<8x128xf32>
    %162 = arith.mulf %146, %154 : vector<8x128xf32>
    %163 = arith.addf %161, %162 : vector<8x128xf32>
    %164 = math.tanh %163 : vector<8x128xf32>
    %165 = arith.mulf %160, %164 : vector<8x128xf32>
    %166 = arith.truncf %165 : vector<8x128xf32> to vector<8x128xbf16>
    %c0_80 = arith.constant 0 : index
    %c0_81 = arith.constant 0 : index
    %167 = vector.load %arg6[%c0_80, %c0_81] : memref<128x128xbf16, #tpu.memory_space<vmem>>, vector<128x128xbf16>
    %cst_82 = arith.constant dense<0.000000e+00> : vector<8x128xf32>
    %168 = tpu.matmul %166, %167, %cst_82 {dimension_numbers = #tpu.dot_dimension_numbers<[1], [0], [0], [1], [0, 0, 1, 1], [], []>} : vector<8x128xbf16>, vector<128x128xbf16>, vector<8x128xf32> -> vector<8x128xf32>
    %c0_83 = arith.constant 0 : index
    %c0_84 = arith.constant 0 : index
    %169 = vector.load %arg7[%c0_83, %c0_84] : memref<1x128xf32, #tpu.memory_space<vmem>>, vector<1x128xf32>
    %170 = vector.broadcast %169 : vector<1x128xf32> to vector<8x128xf32>
    %171 = arith.addf %168, %170 : vector<8x128xf32>
    %cst_85 = arith.constant dense<0xFF800000> : vector<8xf32>
    %172 = vector.multi_reduction <maximumf>, %171, %cst_85 [1] : vector<8x128xf32> to vector<8xf32>
    %173 = vector.shape_cast %172 : vector<8xf32> to vector<8x1xf32>
    %174 = vector.broadcast %173 : vector<8x1xf32> to vector<8x128xf32>
    %175 = arith.subf %171, %174 : vector<8x128xf32>
    %176 = math.exp %175 : vector<8x128xf32>
    %cst_86 = arith.constant dense<0.000000e+00> : vector<8xf32>
    %177 = vector.multi_reduction <add>, %176, %cst_86 [1] : vector<8x128xf32> to vector<8xf32>
    %178 = vector.shape_cast %177 : vector<8xf32> to vector<8x1xf32>
    %179 = math.log %178 : vector<8x1xf32>
    %180 = vector.broadcast %179 : vector<8x1xf32> to vector<8x128xf32>
    %181 = arith.subf %175, %180 : vector<8x128xf32>
    %c0_87 = arith.constant 0 : index
    %182 = arith.index_cast %c2_i32 : i32 to index
    %c0_88 = arith.constant 0 : index
    %c0_89 = arith.constant 0 : index
    %183 = vector.load %arg8[%c0_87, %182, %c0_88, %c0_89] : memref<1x8x8x128xf32, #tpu.memory_space<vmem>>, vector<1x1x8x128xf32>
    %184 = vector.shape_cast %183 : vector<1x1x8x128xf32> to vector<8x128xf32>
    %185 = vector.shape_cast %181 : vector<8x128xf32> to vector<1x1x8x128xf32>
    tpu.vector_store %arg8[%c0_87, %182, %c0_88, %c0_89], %185 {strides = array<i32>} : memref<1x8x8x128xf32, #tpu.memory_space<vmem>>, vector<1x1x8x128xf32>,
    %c3_i32 = arith.constant 3 : i32
    %c1_i32_90 = arith.constant 1 : i32
    %186 = arith.addi %c3_i32, %c1_i32_90 : i32
    %c7_i32_91 = arith.constant 7 : i32
    %187 = arith.minsi %186, %c7_i32_91 : i32
    %c0_92 = arith.constant 0 : index
    %188 = arith.index_cast %187 : i32 to index
    %c0_93 = arith.constant 0 : index
    %c0_94 = arith.constant 0 : index
    %189 = vector.load %arg2[%c0_92, %188, %c0_93, %c0_94] : memref<1x8x8x32xbf16, #tpu.memory_space<vmem>>, vector<1x1x8x32xbf16>
    %190 = vector.shape_cast %189 : vector<1x1x8x32xbf16> to vector<8x32xbf16>
    %c0_95 = arith.constant 0 : index
    %c0_96 = arith.constant 0 : index
    %191 = vector.load %arg3[%c0_95, %c0_96] : memref<32x512xbf16, #tpu.memory_space<vmem>>, vector<32x512xbf16>
    %cst_97 = arith.constant dense<0.000000e+00> : vector<8x512xf32>
    %192 = tpu.matmul %190, %191, %cst_97 {dimension_numbers = #tpu.dot_dimension_numbers<[1], [0], [0], [1], [0, 0, 1, 1], [], []>} : vector<8x32xbf16>, vector<32x512xbf16>, vector<8x512xf32> -> vector<8x512xf32>
    %c0_98 = arith.constant 0 : index
    %c0_99 = arith.constant 0 : index
    %193 = vector.load %arg5[%c0_98, %c0_99] : memref<1x512xf32, #tpu.memory_space<vmem>>, vector<1x512xf32>
    %194 = vector.broadcast %193 : vector<1x512xf32> to vector<8x512xf32>
    %195 = arith.addf %192, %194 : vector<8x512xf32>
    %c0_100 = arith.constant 0 : index
    %c0_101 = arith.constant 0 : index
    %196 = vector.load %arg4[%c0_100, %c0_101] : memref<128x512xbf16, #tpu.memory_space<vmem>>, vector<128x512xbf16>
    %cst_102 = arith.constant dense<0.000000e+00> : vector<8x512xf32>
    %197 = tpu.matmul %166, %196, %cst_102 {dimension_numbers = #tpu.dot_dimension_numbers<[1], [0], [0], [1], [0, 0, 1, 1], [], []>} : vector<8x128xbf16>, vector<128x512xbf16>, vector<8x512xf32> -> vector<8x512xf32>
    %198 = arith.addf %137, %197 : vector<8x512xf32>
    %199 = vector.extract_strided_slice %198 {offsets = [0, 0], sizes = [8, 128], strides = [1, 1]} : vector<8x512xf32> to vector<8x128xf32>
    %200 = arith.negf %199 : vector<8x128xf32>
    %201 = math.exp %200 : vector<8x128xf32>
    %cst_103 = arith.constant 1.000000e+00 : f32
    %202 = vector.broadcast %cst_103 : f32 to vector<8x128xf32>
    %203 = arith.addf %202, %201 : vector<8x128xf32>
    %204 = arith.divf %202, %203 : vector<8x128xf32>
    %205 = vector.extract_strided_slice %198 {offsets = [0, 128], sizes = [8, 128], strides = [1, 1]} : vector<8x512xf32> to vector<8x128xf32>
    %206 = arith.negf %205 : vector<8x128xf32>
    %207 = math.exp %206 : vector<8x128xf32>
    %cst_104 = arith.constant 1.000000e+00 : f32
    %208 = vector.broadcast %cst_104 : f32 to vector<8x128xf32>
    %209 = arith.addf %208, %207 : vector<8x128xf32>
    %210 = arith.divf %208, %209 : vector<8x128xf32>
    %211 = vector.extract_strided_slice %198 {offsets = [0, 256], sizes = [8, 128], strides = [1, 1]} : vector<8x512xf32> to vector<8x128xf32>
    %212 = math.tanh %211 : vector<8x128xf32>
    %213 = vector.extract_strided_slice %198 {offsets = [0, 384], sizes = [8, 128], strides = [1, 1]} : vector<8x512xf32> to vector<8x128xf32>
    %214 = arith.negf %213 : vector<8x128xf32>
    %215 = math.exp %214 : vector<8x128xf32>
    %cst_105 = arith.constant 1.000000e+00 : f32
    %216 = vector.broadcast %cst_105 : f32 to vector<8x128xf32>
    %217 = arith.addf %216, %215 : vector<8x128xf32>
    %218 = arith.divf %216, %217 : vector<8x128xf32>
    %219 = arith.mulf %210, %163 : vector<8x128xf32>
    %220 = arith.mulf %204, %212 : vector<8x128xf32>
    %221 = arith.addf %219, %220 : vector<8x128xf32>
    %222 = math.tanh %221 : vector<8x128xf32>
    %223 = arith.mulf %218, %222 : vector<8x128xf32>
    %224 = arith.truncf %223 : vector<8x128xf32> to vector<8x128xbf16>
    %c0_106 = arith.constant 0 : index
    %c0_107 = arith.constant 0 : index
    %225 = vector.load %arg6[%c0_106, %c0_107] : memref<128x128xbf16, #tpu.memory_space<vmem>>, vector<128x128xbf16>
    %cst_108 = arith.constant dense<0.000000e+00> : vector<8x128xf32>
    %226 = tpu.matmul %224, %225, %cst_108 {dimension_numbers = #tpu.dot_dimension_numbers<[1], [0], [0], [1], [0, 0, 1, 1], [], []>} : vector<8x128xbf16>, vector<128x128xbf16>, vector<8x128xf32> -> vector<8x128xf32>
    %c0_109 = arith.constant 0 : index
    %c0_110 = arith.constant 0 : index
    %227 = vector.load %arg7[%c0_109, %c0_110] : memref<1x128xf32, #tpu.memory_space<vmem>>, vector<1x128xf32>
    %228 = vector.broadcast %227 : vector<1x128xf32> to vector<8x128xf32>
    %229 = arith.addf %226, %228 : vector<8x128xf32>
    %cst_111 = arith.constant dense<0xFF800000> : vector<8xf32>
    %230 = vector.multi_reduction <maximumf>, %229, %cst_111 [1] : vector<8x128xf32> to vector<8xf32>
    %231 = vector.shape_cast %230 : vector<8xf32> to vector<8x1xf32>
    %232 = vector.broadcast %231 : vector<8x1xf32> to vector<8x128xf32>
    %233 = arith.subf %229, %232 : vector<8x128xf32>
    %234 = math.exp %233 : vector<8x128xf32>
    %cst_112 = arith.constant dense<0.000000e+00> : vector<8xf32>
    %235 = vector.multi_reduction <add>, %234, %cst_112 [1] : vector<8x128xf32> to vector<8xf32>
    %236 = vector.shape_cast %235 : vector<8xf32> to vector<8x1xf32>
    %237 = math.log %236 : vector<8x1xf32>
    %238 = vector.broadcast %237 : vector<8x1xf32> to vector<8x128xf32>
    %239 = arith.subf %233, %238 : vector<8x128xf32>
    %c0_113 = arith.constant 0 : index
    %240 = arith.index_cast %c3_i32 : i32 to index
    %c0_114 = arith.constant 0 : index
    %c0_115 = arith.constant 0 : index
    %241 = vector.load %arg8[%c0_113, %240, %c0_114, %c0_115] : memref<1x8x8x128xf32, #tpu.memory_space<vmem>>, vector<1x1x8x128xf32>
    %242 = vector.shape_cast %241 : vector<1x1x8x128xf32> to vector<8x128xf32>
    %243 = vector.shape_cast %239 : vector<8x128xf32> to vector<1x1x8x128xf32>
    tpu.vector_store %arg8[%c0_113, %240, %c0_114, %c0_115], %243 {strides = array<i32>} : memref<1x8x8x128xf32, #tpu.memory_space<vmem>>, vector<1x1x8x128xf32>,
    %c4_i32 = arith.constant 4 : i32
    %c1_i32_116 = arith.constant 1 : i32
    %244 = arith.addi %c4_i32, %c1_i32_116 : i32
    %c7_i32_117 = arith.constant 7 : i32
    %245 = arith.minsi %244, %c7_i32_117 : i32
    %c0_118 = arith.constant 0 : index
    %246 = arith.index_cast %245 : i32 to index
    %c0_119 = arith.constant 0 : index
    %c0_120 = arith.constant 0 : index
    %247 = vector.load %arg2[%c0_118, %246, %c0_119, %c0_120] : memref<1x8x8x32xbf16, #tpu.memory_space<vmem>>, vector<1x1x8x32xbf16>
    %248 = vector.shape_cast %247 : vector<1x1x8x32xbf16> to vector<8x32xbf16>
    %c0_121 = arith.constant 0 : index
    %c0_122 = arith.constant 0 : index
    %249 = vector.load %arg3[%c0_121, %c0_122] : memref<32x512xbf16, #tpu.memory_space<vmem>>, vector<32x512xbf16>
    %cst_123 = arith.constant dense<0.000000e+00> : vector<8x512xf32>
    %250 = tpu.matmul %248, %249, %cst_123 {dimension_numbers = #tpu.dot_dimension_numbers<[1], [0], [0], [1], [0, 0, 1, 1], [], []>} : vector<8x32xbf16>, vector<32x512xbf16>, vector<8x512xf32> -> vector<8x512xf32>
    %c0_124 = arith.constant 0 : index
    %c0_125 = arith.constant 0 : index
    %251 = vector.load %arg5[%c0_124, %c0_125] : memref<1x512xf32, #tpu.memory_space<vmem>>, vector<1x512xf32>
    %252 = vector.broadcast %251 : vector<1x512xf32> to vector<8x512xf32>
    %253 = arith.addf %250, %252 : vector<8x512xf32>
    %c0_126 = arith.constant 0 : index
    %c0_127 = arith.constant 0 : index
    %254 = vector.load %arg4[%c0_126, %c0_127] : memref<128x512xbf16, #tpu.memory_space<vmem>>, vector<128x512xbf16>
    %cst_128 = arith.constant dense<0.000000e+00> : vector<8x512xf32>
    %255 = tpu.matmul %224, %254, %cst_128 {dimension_numbers = #tpu.dot_dimension_numbers<[1], [0], [0], [1], [0, 0, 1, 1], [], []>} : vector<8x128xbf16>, vector<128x512xbf16>, vector<8x512xf32> -> vector<8x512xf32>
    %256 = arith.addf %195, %255 : vector<8x512xf32>
    %257 = vector.extract_strided_slice %256 {offsets = [0, 0], sizes = [8, 128], strides = [1, 1]} : vector<8x512xf32> to vector<8x128xf32>
    %258 = arith.negf %257 : vector<8x128xf32>
    %259 = math.exp %258 : vector<8x128xf32>
    %cst_129 = arith.constant 1.000000e+00 : f32
    %260 = vector.broadcast %cst_129 : f32 to vector<8x128xf32>
    %261 = arith.addf %260, %259 : vector<8x128xf32>
    %262 = arith.divf %260, %261 : vector<8x128xf32>
    %263 = vector.extract_strided_slice %256 {offsets = [0, 128], sizes = [8, 128], strides = [1, 1]} : vector<8x512xf32> to vector<8x128xf32>
    %264 = arith.negf %263 : vector<8x128xf32>
    %265 = math.exp %264 : vector<8x128xf32>
    %cst_130 = arith.constant 1.000000e+00 : f32
    %266 = vector.broadcast %cst_130 : f32 to vector<8x128xf32>
    %267 = arith.addf %266, %265 : vector<8x128xf32>
    %268 = arith.divf %266, %267 : vector<8x128xf32>
    %269 = vector.extract_strided_slice %256 {offsets = [0, 256], sizes = [8, 128], strides = [1, 1]} : vector<8x512xf32> to vector<8x128xf32>
    %270 = math.tanh %269 : vector<8x128xf32>
    %271 = vector.extract_strided_slice %256 {offsets = [0, 384], sizes = [8, 128], strides = [1, 1]} : vector<8x512xf32> to vector<8x128xf32>
    %272 = arith.negf %271 : vector<8x128xf32>
    %273 = math.exp %272 : vector<8x128xf32>
    %cst_131 = arith.constant 1.000000e+00 : f32
    %274 = vector.broadcast %cst_131 : f32 to vector<8x128xf32>
    %275 = arith.addf %274, %273 : vector<8x128xf32>
    %276 = arith.divf %274, %275 : vector<8x128xf32>
    %277 = arith.mulf %268, %221 : vector<8x128xf32>
    %278 = arith.mulf %262, %270 : vector<8x128xf32>
    %279 = arith.addf %277, %278 : vector<8x128xf32>
    %280 = math.tanh %279 : vector<8x128xf32>
    %281 = arith.mulf %276, %280 : vector<8x128xf32>
    %282 = arith.truncf %281 : vector<8x128xf32> to vector<8x128xbf16>
    %c0_132 = arith.constant 0 : index
    %c0_133 = arith.constant 0 : index
    %283 = vector.load %arg6[%c0_132, %c0_133] : memref<128x128xbf16, #tpu.memory_space<vmem>>, vector<128x128xbf16>
    %cst_134 = arith.constant dense<0.000000e+00> : vector<8x128xf32>
    %284 = tpu.matmul %282, %283, %cst_134 {dimension_numbers = #tpu.dot_dimension_numbers<[1], [0], [0], [1], [0, 0, 1, 1], [], []>} : vector<8x128xbf16>, vector<128x128xbf16>, vector<8x128xf32> -> vector<8x128xf32>
    %c0_135 = arith.constant 0 : index
    %c0_136 = arith.constant 0 : index
    %285 = vector.load %arg7[%c0_135, %c0_136] : memref<1x128xf32, #tpu.memory_space<vmem>>, vector<1x128xf32>
    %286 = vector.broadcast %285 : vector<1x128xf32> to vector<8x128xf32>
    %287 = arith.addf %284, %286 : vector<8x128xf32>
    %cst_137 = arith.constant dense<0xFF800000> : vector<8xf32>
    %288 = vector.multi_reduction <maximumf>, %287, %cst_137 [1] : vector<8x128xf32> to vector<8xf32>
    %289 = vector.shape_cast %288 : vector<8xf32> to vector<8x1xf32>
    %290 = vector.broadcast %289 : vector<8x1xf32> to vector<8x128xf32>
    %291 = arith.subf %287, %290 : vector<8x128xf32>
    %292 = math.exp %291 : vector<8x128xf32>
    %cst_138 = arith.constant dense<0.000000e+00> : vector<8xf32>
    %293 = vector.multi_reduction <add>, %292, %cst_138 [1] : vector<8x128xf32> to vector<8xf32>
    %294 = vector.shape_cast %293 : vector<8xf32> to vector<8x1xf32>
    %295 = math.log %294 : vector<8x1xf32>
    %296 = vector.broadcast %295 : vector<8x1xf32> to vector<8x128xf32>
    %297 = arith.subf %291, %296 : vector<8x128xf32>
    %c0_139 = arith.constant 0 : index
    %298 = arith.index_cast %c4_i32 : i32 to index
    %c0_140 = arith.constant 0 : index
    %c0_141 = arith.constant 0 : index
    %299 = vector.load %arg8[%c0_139, %298, %c0_140, %c0_141] : memref<1x8x8x128xf32, #tpu.memory_space<vmem>>, vector<1x1x8x128xf32>
    %300 = vector.shape_cast %299 : vector<1x1x8x128xf32> to vector<8x128xf32>
    %301 = vector.shape_cast %297 : vector<8x128xf32> to vector<1x1x8x128xf32>
    tpu.vector_store %arg8[%c0_139, %298, %c0_140, %c0_141], %301 {strides = array<i32>} : memref<1x8x8x128xf32, #tpu.memory_space<vmem>>, vector<1x1x8x128xf32>,
    %c5_i32 = arith.constant 5 : i32
    %c1_i32_142 = arith.constant 1 : i32
    %302 = arith.addi %c5_i32, %c1_i32_142 : i32
    %c7_i32_143 = arith.constant 7 : i32
    %303 = arith.minsi %302, %c7_i32_143 : i32
    %c0_144 = arith.constant 0 : index
    %304 = arith.index_cast %303 : i32 to index
    %c0_145 = arith.constant 0 : index
    %c0_146 = arith.constant 0 : index
    %305 = vector.load %arg2[%c0_144, %304, %c0_145, %c0_146] : memref<1x8x8x32xbf16, #tpu.memory_space<vmem>>, vector<1x1x8x32xbf16>
    %306 = vector.shape_cast %305 : vector<1x1x8x32xbf16> to vector<8x32xbf16>
    %c0_147 = arith.constant 0 : index
    %c0_148 = arith.constant 0 : index
    %307 = vector.load %arg3[%c0_147, %c0_148] : memref<32x512xbf16, #tpu.memory_space<vmem>>, vector<32x512xbf16>
    %cst_149 = arith.constant dense<0.000000e+00> : vector<8x512xf32>
    %308 = tpu.matmul %306, %307, %cst_149 {dimension_numbers = #tpu.dot_dimension_numbers<[1], [0], [0], [1], [0, 0, 1, 1], [], []>} : vector<8x32xbf16>, vector<32x512xbf16>, vector<8x512xf32> -> vector<8x512xf32>
    %c0_150 = arith.constant 0 : index
    %c0_151 = arith.constant 0 : index
    %309 = vector.load %arg5[%c0_150, %c0_151] : memref<1x512xf32, #tpu.memory_space<vmem>>, vector<1x512xf32>
    %310 = vector.broadcast %309 : vector<1x512xf32> to vector<8x512xf32>
    %311 = arith.addf %308, %310 : vector<8x512xf32>
    %c0_152 = arith.constant 0 : index
    %c0_153 = arith.constant 0 : index
    %312 = vector.load %arg4[%c0_152, %c0_153] : memref<128x512xbf16, #tpu.memory_space<vmem>>, vector<128x512xbf16>
    %cst_154 = arith.constant dense<0.000000e+00> : vector<8x512xf32>
    %313 = tpu.matmul %282, %312, %cst_154 {dimension_numbers = #tpu.dot_dimension_numbers<[1], [0], [0], [1], [0, 0, 1, 1], [], []>} : vector<8x128xbf16>, vector<128x512xbf16>, vector<8x512xf32> -> vector<8x512xf32>
    %314 = arith.addf %253, %313 : vector<8x512xf32>
    %315 = vector.extract_strided_slice %314 {offsets = [0, 0], sizes = [8, 128], strides = [1, 1]} : vector<8x512xf32> to vector<8x128xf32>
    %316 = arith.negf %315 : vector<8x128xf32>
    %317 = math.exp %316 : vector<8x128xf32>
    %cst_155 = arith.constant 1.000000e+00 : f32
    %318 = vector.broadcast %cst_155 : f32 to vector<8x128xf32>
    %319 = arith.addf %318, %317 : vector<8x128xf32>
    %320 = arith.divf %318, %319 : vector<8x128xf32>
    %321 = vector.extract_strided_slice %314 {offsets = [0, 128], sizes = [8, 128], strides = [1, 1]} : vector<8x512xf32> to vector<8x128xf32>
    %322 = arith.negf %321 : vector<8x128xf32>
    %323 = math.exp %322 : vector<8x128xf32>
    %cst_156 = arith.constant 1.000000e+00 : f32
    %324 = vector.broadcast %cst_156 : f32 to vector<8x128xf32>
    %325 = arith.addf %324, %323 : vector<8x128xf32>
    %326 = arith.divf %324, %325 : vector<8x128xf32>
    %327 = vector.extract_strided_slice %314 {offsets = [0, 256], sizes = [8, 128], strides = [1, 1]} : vector<8x512xf32> to vector<8x128xf32>
    %328 = math.tanh %327 : vector<8x128xf32>
    %329 = vector.extract_strided_slice %314 {offsets = [0, 384], sizes = [8, 128], strides = [1, 1]} : vector<8x512xf32> to vector<8x128xf32>
    %330 = arith.negf %329 : vector<8x128xf32>
    %331 = math.exp %330 : vector<8x128xf32>
    %cst_157 = arith.constant 1.000000e+00 : f32
    %332 = vector.broadcast %cst_157 : f32 to vector<8x128xf32>
    %333 = arith.addf %332, %331 : vector<8x128xf32>
    %334 = arith.divf %332, %333 : vector<8x128xf32>
    %335 = arith.mulf %326, %279 : vector<8x128xf32>
    %336 = arith.mulf %320, %328 : vector<8x128xf32>
    %337 = arith.addf %335, %336 : vector<8x128xf32>
    %338 = math.tanh %337 : vector<8x128xf32>
    %339 = arith.mulf %334, %338 : vector<8x128xf32>
    %340 = arith.truncf %339 : vector<8x128xf32> to vector<8x128xbf16>
    %c0_158 = arith.constant 0 : index
    %c0_159 = arith.constant 0 : index
    %341 = vector.load %arg6[%c0_158, %c0_159] : memref<128x128xbf16, #tpu.memory_space<vmem>>, vector<128x128xbf16>
    %cst_160 = arith.constant dense<0.000000e+00> : vector<8x128xf32>
    %342 = tpu.matmul %340, %341, %cst_160 {dimension_numbers = #tpu.dot_dimension_numbers<[1], [0], [0], [1], [0, 0, 1, 1], [], []>} : vector<8x128xbf16>, vector<128x128xbf16>, vector<8x128xf32> -> vector<8x128xf32>
    %c0_161 = arith.constant 0 : index
    %c0_162 = arith.constant 0 : index
    %343 = vector.load %arg7[%c0_161, %c0_162] : memref<1x128xf32, #tpu.memory_space<vmem>>, vector<1x128xf32>
    %344 = vector.broadcast %343 : vector<1x128xf32> to vector<8x128xf32>
    %345 = arith.addf %342, %344 : vector<8x128xf32>
    %cst_163 = arith.constant dense<0xFF800000> : vector<8xf32>
    %346 = vector.multi_reduction <maximumf>, %345, %cst_163 [1] : vector<8x128xf32> to vector<8xf32>
    %347 = vector.shape_cast %346 : vector<8xf32> to vector<8x1xf32>
    %348 = vector.broadcast %347 : vector<8x1xf32> to vector<8x128xf32>
    %349 = arith.subf %345, %348 : vector<8x128xf32>
    %350 = math.exp %349 : vector<8x128xf32>
    %cst_164 = arith.constant dense<0.000000e+00> : vector<8xf32>
    %351 = vector.multi_reduction <add>, %350, %cst_164 [1] : vector<8x128xf32> to vector<8xf32>
    %352 = vector.shape_cast %351 : vector<8xf32> to vector<8x1xf32>
    %353 = math.log %352 : vector<8x1xf32>
    %354 = vector.broadcast %353 : vector<8x1xf32> to vector<8x128xf32>
    %355 = arith.subf %349, %354 : vector<8x128xf32>
    %c0_165 = arith.constant 0 : index
    %356 = arith.index_cast %c5_i32 : i32 to index
    %c0_166 = arith.constant 0 : index
    %c0_167 = arith.constant 0 : index
    %357 = vector.load %arg8[%c0_165, %356, %c0_166, %c0_167] : memref<1x8x8x128xf32, #tpu.memory_space<vmem>>, vector<1x1x8x128xf32>
    %358 = vector.shape_cast %357 : vector<1x1x8x128xf32> to vector<8x128xf32>
    %359 = vector.shape_cast %355 : vector<8x128xf32> to vector<1x1x8x128xf32>
    tpu.vector_store %arg8[%c0_165, %356, %c0_166, %c0_167], %359 {strides = array<i32>} : memref<1x8x8x128xf32, #tpu.memory_space<vmem>>, vector<1x1x8x128xf32>,
    %c6_i32 = arith.constant 6 : i32
    %c1_i32_168 = arith.constant 1 : i32
    %360 = arith.addi %c6_i32, %c1_i32_168 : i32
    %c7_i32_169 = arith.constant 7 : i32
    %361 = arith.minsi %360, %c7_i32_169 : i32
    %c0_170 = arith.constant 0 : index
    %362 = arith.index_cast %361 : i32 to index
    %c0_171 = arith.constant 0 : index
    %c0_172 = arith.constant 0 : index
    %363 = vector.load %arg2[%c0_170, %362, %c0_171, %c0_172] : memref<1x8x8x32xbf16, #tpu.memory_space<vmem>>, vector<1x1x8x32xbf16>
    %364 = vector.shape_cast %363 : vector<1x1x8x32xbf16> to vector<8x32xbf16>
    %c0_173 = arith.constant 0 : index
    %c0_174 = arith.constant 0 : index
    %365 = vector.load %arg3[%c0_173, %c0_174] : memref<32x512xbf16, #tpu.memory_space<vmem>>, vector<32x512xbf16>
    %cst_175 = arith.constant dense<0.000000e+00> : vector<8x512xf32>
    %366 = tpu.matmul %364, %365, %cst_175 {dimension_numbers = #tpu.dot_dimension_numbers<[1], [0], [0], [1], [0, 0, 1, 1], [], []>} : vector<8x32xbf16>, vector<32x512xbf16>, vector<8x512xf32> -> vector<8x512xf32>
    %c0_176 = arith.constant 0 : index
    %c0_177 = arith.constant 0 : index
    %367 = vector.load %arg5[%c0_176, %c0_177] : memref<1x512xf32, #tpu.memory_space<vmem>>, vector<1x512xf32>
    %368 = vector.broadcast %367 : vector<1x512xf32> to vector<8x512xf32>
    %369 = arith.addf %366, %368 : vector<8x512xf32>
    %c0_178 = arith.constant 0 : index
    %c0_179 = arith.constant 0 : index
    %370 = vector.load %arg4[%c0_178, %c0_179] : memref<128x512xbf16, #tpu.memory_space<vmem>>, vector<128x512xbf16>
    %cst_180 = arith.constant dense<0.000000e+00> : vector<8x512xf32>
    %371 = tpu.matmul %340, %370, %cst_180 {dimension_numbers = #tpu.dot_dimension_numbers<[1], [0], [0], [1], [0, 0, 1, 1], [], []>} : vector<8x128xbf16>, vector<128x512xbf16>, vector<8x512xf32> -> vector<8x512xf32>
    %372 = arith.addf %311, %371 : vector<8x512xf32>
    %373 = vector.extract_strided_slice %372 {offsets = [0, 0], sizes = [8, 128], strides = [1, 1]} : vector<8x512xf32> to vector<8x128xf32>
    %374 = arith.negf %373 : vector<8x128xf32>
    %375 = math.exp %374 : vector<8x128xf32>
    %cst_181 = arith.constant 1.000000e+00 : f32
    %376 = vector.broadcast %cst_181 : f32 to vector<8x128xf32>
    %377 = arith.addf %376, %375 : vector<8x128xf32>
    %378 = arith.divf %376, %377 : vector<8x128xf32>
    %379 = vector.extract_strided_slice %372 {offsets = [0, 128], sizes = [8, 128], strides = [1, 1]} : vector<8x512xf32> to vector<8x128xf32>
    %380 = arith.negf %379 : vector<8x128xf32>
    %381 = math.exp %380 : vector<8x128xf32>
    %cst_182 = arith.constant 1.000000e+00 : f32
    %382 = vector.broadcast %cst_182 : f32 to vector<8x128xf32>
    %383 = arith.addf %382, %381 : vector<8x128xf32>
    %384 = arith.divf %382, %383 : vector<8x128xf32>
    %385 = vector.extract_strided_slice %372 {offsets = [0, 256], sizes = [8, 128], strides = [1, 1]} : vector<8x512xf32> to vector<8x128xf32>
    %386 = math.tanh %385 : vector<8x128xf32>
    %387 = vector.extract_strided_slice %372 {offsets = [0, 384], sizes = [8, 128], strides = [1, 1]} : vector<8x512xf32> to vector<8x128xf32>
    %388 = arith.negf %387 : vector<8x128xf32>
    %389 = math.exp %388 : vector<8x128xf32>
    %cst_183 = arith.constant 1.000000e+00 : f32
    %390 = vector.broadcast %cst_183 : f32 to vector<8x128xf32>
    %391 = arith.addf %390, %389 : vector<8x128xf32>
    %392 = arith.divf %390, %391 : vector<8x128xf32>
    %393 = arith.mulf %384, %337 : vector<8x128xf32>
    %394 = arith.mulf %378, %386 : vector<8x128xf32>
    %395 = arith.addf %393, %394 : vector<8x128xf32>
    %396 = math.tanh %395 : vector<8x128xf32>
    %397 = arith.mulf %392, %396 : vector<8x128xf32>
    %398 = arith.truncf %397 : vector<8x128xf32> to vector<8x128xbf16>
    %c0_184 = arith.constant 0 : index
    %c0_185 = arith.constant 0 : index
    %399 = vector.load %arg6[%c0_184, %c0_185] : memref<128x128xbf16, #tpu.memory_space<vmem>>, vector<128x128xbf16>
    %cst_186 = arith.constant dense<0.000000e+00> : vector<8x128xf32>
    %400 = tpu.matmul %398, %399, %cst_186 {dimension_numbers = #tpu.dot_dimension_numbers<[1], [0], [0], [1], [0, 0, 1, 1], [], []>} : vector<8x128xbf16>, vector<128x128xbf16>, vector<8x128xf32> -> vector<8x128xf32>
    %c0_187 = arith.constant 0 : index
    %c0_188 = arith.constant 0 : index
    %401 = vector.load %arg7[%c0_187, %c0_188] : memref<1x128xf32, #tpu.memory_space<vmem>>, vector<1x128xf32>
    %402 = vector.broadcast %401 : vector<1x128xf32> to vector<8x128xf32>
    %403 = arith.addf %400, %402 : vector<8x128xf32>
    %cst_189 = arith.constant dense<0xFF800000> : vector<8xf32>
    %404 = vector.multi_reduction <maximumf>, %403, %cst_189 [1] : vector<8x128xf32> to vector<8xf32>
    %405 = vector.shape_cast %404 : vector<8xf32> to vector<8x1xf32>
    %406 = vector.broadcast %405 : vector<8x1xf32> to vector<8x128xf32>
    %407 = arith.subf %403, %406 : vector<8x128xf32>
    %408 = math.exp %407 : vector<8x128xf32>
    %cst_190 = arith.constant dense<0.000000e+00> : vector<8xf32>
    %409 = vector.multi_reduction <add>, %408, %cst_190 [1] : vector<8x128xf32> to vector<8xf32>
    %410 = vector.shape_cast %409 : vector<8xf32> to vector<8x1xf32>
    %411 = math.log %410 : vector<8x1xf32>
    %412 = vector.broadcast %411 : vector<8x1xf32> to vector<8x128xf32>
    %413 = arith.subf %407, %412 : vector<8x128xf32>
    %c0_191 = arith.constant 0 : index
    %414 = arith.index_cast %c6_i32 : i32 to index
    %c0_192 = arith.constant 0 : index
    %c0_193 = arith.constant 0 : index
    %415 = vector.load %arg8[%c0_191, %414, %c0_192, %c0_193] : memref<1x8x8x128xf32, #tpu.memory_space<vmem>>, vector<1x1x8x128xf32>
    %416 = vector.shape_cast %415 : vector<1x1x8x128xf32> to vector<8x128xf32>
    %417 = vector.shape_cast %413 : vector<8x128xf32> to vector<1x1x8x128xf32>
    tpu.vector_store %arg8[%c0_191, %414, %c0_192, %c0_193], %417 {strides = array<i32>} : memref<1x8x8x128xf32, #tpu.memory_space<vmem>>, vector<1x1x8x128xf32>,
    %c7_i32_194 = arith.constant 7 : i32
    %c1_i32_195 = arith.constant 1 : i32
    %418 = arith.addi %c7_i32_194, %c1_i32_195 : i32
    %c7_i32_196 = arith.constant 7 : i32
    %419 = arith.minsi %418, %c7_i32_196 : i32
    %c0_197 = arith.constant 0 : index
    %420 = arith.index_cast %419 : i32 to index
    %c0_198 = arith.constant 0 : index
    %c0_199 = arith.constant 0 : index
    %421 = vector.load %arg2[%c0_197, %420, %c0_198, %c0_199] : memref<1x8x8x32xbf16, #tpu.memory_space<vmem>>, vector<1x1x8x32xbf16>
    %422 = vector.shape_cast %421 : vector<1x1x8x32xbf16> to vector<8x32xbf16>
    %c0_200 = arith.constant 0 : index
    %c0_201 = arith.constant 0 : index
    %423 = vector.load %arg3[%c0_200, %c0_201] : memref<32x512xbf16, #tpu.memory_space<vmem>>, vector<32x512xbf16>
    %cst_202 = arith.constant dense<0.000000e+00> : vector<8x512xf32>
    %424 = tpu.matmul %422, %423, %cst_202 {dimension_numbers = #tpu.dot_dimension_numbers<[1], [0], [0], [1], [0, 0, 1, 1], [], []>} : vector<8x32xbf16>, vector<32x512xbf16>, vector<8x512xf32> -> vector<8x512xf32>
    %c0_203 = arith.constant 0 : index
    %c0_204 = arith.constant 0 : index
    %425 = vector.load %arg5[%c0_203, %c0_204] : memref<1x512xf32, #tpu.memory_space<vmem>>, vector<1x512xf32>
    %426 = vector.broadcast %425 : vector<1x512xf32> to vector<8x512xf32>
    %427 = arith.addf %424, %426 : vector<8x512xf32>
    %c0_205 = arith.constant 0 : index
    %c0_206 = arith.constant 0 : index
    %428 = vector.load %arg4[%c0_205, %c0_206] : memref<128x512xbf16, #tpu.memory_space<vmem>>, vector<128x512xbf16>
    %cst_207 = arith.constant dense<0.000000e+00> : vector<8x512xf32>
    %429 = tpu.matmul %398, %428, %cst_207 {dimension_numbers = #tpu.dot_dimension_numbers<[1], [0], [0], [1], [0, 0, 1, 1], [], []>} : vector<8x128xbf16>, vector<128x512xbf16>, vector<8x512xf32> -> vector<8x512xf32>
    %430 = arith.addf %369, %429 : vector<8x512xf32>
    %431 = vector.extract_strided_slice %430 {offsets = [0, 0], sizes = [8, 128], strides = [1, 1]} : vector<8x512xf32> to vector<8x128xf32>
    %432 = arith.negf %431 : vector<8x128xf32>
    %433 = math.exp %432 : vector<8x128xf32>
    %cst_208 = arith.constant 1.000000e+00 : f32
    %434 = vector.broadcast %cst_208 : f32 to vector<8x128xf32>
    %435 = arith.addf %434, %433 : vector<8x128xf32>
    %436 = arith.divf %434, %435 : vector<8x128xf32>
    %437 = vector.extract_strided_slice %430 {offsets = [0, 128], sizes = [8, 128], strides = [1, 1]} : vector<8x512xf32> to vector<8x128xf32>
    %438 = arith.negf %437 : vector<8x128xf32>
    %439 = math.exp %438 : vector<8x128xf32>
    %cst_209 = arith.constant 1.000000e+00 : f32
    %440 = vector.broadcast %cst_209 : f32 to vector<8x128xf32>
    %441 = arith.addf %440, %439 : vector<8x128xf32>
    %442 = arith.divf %440, %441 : vector<8x128xf32>
    %443 = vector.extract_strided_slice %430 {offsets = [0, 256], sizes = [8, 128], strides = [1, 1]} : vector<8x512xf32> to vector<8x128xf32>
    %444 = math.tanh %443 : vector<8x128xf32>
    %445 = vector.extract_strided_slice %430 {offsets = [0, 384], sizes = [8, 128], strides = [1, 1]} : vector<8x512xf32> to vector<8x128xf32>
    %446 = arith.negf %445 : vector<8x128xf32>
    %447 = math.exp %446 : vector<8x128xf32>
    %cst_210 = arith.constant 1.000000e+00 : f32
    %448 = vector.broadcast %cst_210 : f32 to vector<8x128xf32>
    %449 = arith.addf %448, %447 : vector<8x128xf32>
    %450 = arith.divf %448, %449 : vector<8x128xf32>
    %451 = arith.mulf %442, %395 : vector<8x128xf32>
    %452 = arith.mulf %436, %444 : vector<8x128xf32>
    %453 = arith.addf %451, %452 : vector<8x128xf32>
    %454 = math.tanh %453 : vector<8x128xf32>
    %455 = arith.mulf %450, %454 : vector<8x128xf32>
    %456 = arith.truncf %455 : vector<8x128xf32> to vector<8x128xbf16>
    %c0_211 = arith.constant 0 : index
    %c0_212 = arith.constant 0 : index
    %457 = vector.load %arg6[%c0_211, %c0_212] : memref<128x128xbf16, #tpu.memory_space<vmem>>, vector<128x128xbf16>
    %cst_213 = arith.constant dense<0.000000e+00> : vector<8x128xf32>
    %458 = tpu.matmul %456, %457, %cst_213 {dimension_numbers = #tpu.dot_dimension_numbers<[1], [0], [0], [1], [0, 0, 1, 1], [], []>} : vector<8x128xbf16>, vector<128x128xbf16>, vector<8x128xf32> -> vector<8x128xf32>
    %c0_214 = arith.constant 0 : index
    %c0_215 = arith.constant 0 : index
    %459 = vector.load %arg7[%c0_214, %c0_215] : memref<1x128xf32, #tpu.memory_space<vmem>>, vector<1x128xf32>
    %460 = vector.broadcast %459 : vector<1x128xf32> to vector<8x128xf32>
    %461 = arith.addf %458, %460 : vector<8x128xf32>
    %cst_216 = arith.constant dense<0xFF800000> : vector<8xf32>
    %462 = vector.multi_reduction <maximumf>, %461, %cst_216 [1] : vector<8x128xf32> to vector<8xf32>
    %463 = vector.shape_cast %462 : vector<8xf32> to vector<8x1xf32>
    %464 = vector.broadcast %463 : vector<8x1xf32> to vector<8x128xf32>
    %465 = arith.subf %461, %464 : vector<8x128xf32>
    %466 = math.exp %465 : vector<8x128xf32>
    %cst_217 = arith.constant dense<0.000000e+00> : vector<8xf32>
    %467 = vector.multi_reduction <add>, %466, %cst_217 [1] : vector<8x128xf32> to vector<8xf32>
    %468 = vector.shape_cast %467 : vector<8xf32> to vector<8x1xf32>
    %469 = math.log %468 : vector<8x1xf32>
    %470 = vector.broadcast %469 : vector<8x1xf32> to vector<8x128xf32>
    %471 = arith.subf %465, %470 : vector<8x128xf32>
    %c0_218 = arith.constant 0 : index
    %472 = arith.index_cast %c7_i32_194 : i32 to index
    %c0_219 = arith.constant 0 : index
    %c0_220 = arith.constant 0 : index
    %473 = vector.load %arg8[%c0_218, %472, %c0_219, %c0_220] : memref<1x8x8x128xf32, #tpu.memory_space<vmem>>, vector<1x1x8x128xf32>
    %474 = vector.shape_cast %473 : vector<1x1x8x128xf32> to vector<8x128xf32>
    %475 = vector.shape_cast %471 : vector<8x128xf32> to vector<1x1x8x128xf32>
    tpu.vector_store %arg8[%c0_218, %472, %c0_219, %c0_220], %475 {strides = array<i32>} : memref<1x8x8x128xf32, #tpu.memory_space<vmem>>, vector<1x1x8x128xf32>,
    %c8_i32 = arith.constant 8 : i32
    %c0_221 = arith.constant 0 : index
    %c0_222 = arith.constant 0 : index
    %476 = vector.load %arg9[%c0_221, %c0_222] : memref<8x128xbf16, #tpu.memory_space<vmem>>, vector<8x128xbf16>
    tpu.vector_store %arg9[%c0_221, %c0_222], %456 {strides = array<i32>} : memref<8x128xbf16, #tpu.memory_space<vmem>>, vector<8x128xbf16>,
    %c0_223 = arith.constant 0 : index
    %c0_224 = arith.constant 0 : index
    %477 = vector.load %arg10[%c0_223, %c0_224] : memref<8x128xf32, #tpu.memory_space<vmem>>, vector<8x128xf32>
    tpu.vector_store %arg10[%c0_223, %c0_224], %453 {strides = array<i32>} : memref<8x128xf32, #tpu.memory_space<vmem>>, vector<8x128xf32>,
    return
  }
  func.func @transform_0(%arg0: i32, %arg1: i32) -> (i32, i32, i32, i32) {
    %c0_i32 = arith.constant 0 : i32
    %c0_i32_0 = arith.constant 0 : i32
    %c0_i32_1 = arith.constant 0 : i32
    return %arg0, %arg1, %c0_i32, %c0_i32_0 : i32, i32, i32, i32
  }
  func.func @transform_1(%arg0: i32, %arg1: i32) -> (i32, i32) {
    %c0_i32 = arith.constant 0 : i32
    %c0_i32_0 = arith.constant 0 : i32
    %c0_i32_1 = arith.constant 0 : i32
    return %c0_i32, %c0_i32_0 : i32, i32
  }
  func.func @transform_2(%arg0: i32, %arg1: i32) -> (i32, i32) {
    %c0_i32 = arith.constant 0 : i32
    %c0_i32_0 = arith.constant 0 : i32
    %c0_i32_1 = arith.constant 0 : i32
    return %c0_i32, %c0_i32_0 : i32, i32
  }
  func.func @transform_3(%arg0: i32, %arg1: i32) -> (i32, i32) {
    %c0_i32 = arith.constant 0 : i32
    %c0_i32_0 = arith.constant 0 : i32
    %c0_i32_1 = arith.constant 0 : i32
    return %c0_i32, %c0_i32_0 : i32, i32
  }
  func.func @transform_4(%arg0: i32, %arg1: i32) -> (i32, i32) {
    %c0_i32 = arith.constant 0 : i32
    %c0_i32_0 = arith.constant 0 : i32
    %c0_i32_1 = arith.constant 0 : i32
    return %c0_i32, %c0_i32_0 : i32, i32
  }
  func.func @transform_5(%arg0: i32, %arg1: i32) -> (i32, i32) {
    %c0_i32 = arith.constant 0 : i32
    %c0_i32_0 = arith.constant 0 : i32
    %c0_i32_1 = arith.constant 0 : i32
    return %c0_i32, %c0_i32_0 : i32, i32
  }
  func.func @transform_6(%arg0: i32, %arg1: i32) -> (i32, i32, i32, i32) {
    %c0_i32 = arith.constant 0 : i32
    %c0_i32_0 = arith.constant 0 : i32
    %c0_i32_1 = arith.constant 0 : i32
    return %arg0, %arg1, %c0_i32, %c0_i32_0 : i32, i32, i32, i32
  }
}

</mosaic_0001>

<bundles_post_ra>
// kernel: bilstm_ner_forward.1
= control target key start
LH: loop header
LB: loop body
LE: loop exit
PB: predicated region body
PF: predicated region fallthrough
CT: control target
= control target key end

     0   :  { %v7314_v1 = vmov 0   ;;  %vm101_vm0 = vcmask 261120   ;;  %v7312_v46 = vmov 0.0   ;;  %vm5808_vm1 = vmmov 0   ;;  %s7305_s1 = inlined_call_operand.vmem [shape: bf16[32,512], index: 1, kind: input, shape index: {}]   ;;  %s7306_s2 = inlined_call_operand.vmem [shape: bf16[128,512], index: 2, kind: input, shape index: {}]   ;;  %s7307_s0 = inlined_call_operand.vmem [shape: bf16[1,8,8,32], index: 0, kind: input, shape index: {}]   ;;  %s7308_s4 = inlined_call_operand.vmem [shape: bf16[128,128], index: 4, kind: input, shape index: {}]   ;;  %s7309_s3 = inlined_call_operand.vmem [shape: f32[1,512], index: 3, kind: input, shape index: {}]   ;;  %s7310_s5 = inlined_call_operand.vmem [shape: f32[1,128], index: 5, kind: input, shape index: {}]   ;;  %s7311_s6 = inlined_call_operand.vmem [shape: f32[1,8,8,128], index: 6, kind: output, shape index: {}]  }
   0x1   :  { %v5847_v0 = vld [vmem:[%s7305_s1 + $0x4] ss:$16 sps:$4 sm:$0xff]   ;;  %137 = vmatprep.mubr.bf16.mxu0 %v7314_v1  ;;  %28 = vst [vmem:[#allocation2] sm:$0xf] %v7314_v1  ;;  %178 = vmatprep.mubr.bf16.mxu1 %v7314_v1  ;;  %v5855_v2 = vld [vmem:[%s7305_s1 + $0xc] ss:$16 sps:$4 sm:$0xff]   ;;  %v41_v54 = vlaneseq }
   0x2   :  { %105 = vmatprep.subr.bf16.mxu0 %v5847_v0  ;;  %v5861_v3 = vld [vmem:[%s7305_s1] ss:$16 sps:$4 sm:$0xff]   ;;  %v5866_v4 = vld [vmem:[%s7305_s1 + $0x8] ss:$16 sps:$4 sm:$0xff]   ;;  %146 = vmatprep.subr.bf16.mxu1 %v5855_v2  ;;  %v5872_v5 = vld [vmem:[%s7305_s1 + $0x24] ss:$16 sps:$4 sm:$0xff]  }
   0x3   :  { %106 = vmatpush1.bf16.msra.mxu0 %v5861_v3  ;;  %147 = vmatpush1.bf16.msra.mxu1 %v5866_v4  ;;  %v5879_v6 = vld [vmem:[%s7305_s1 + $0x2c] ss:$16 sps:$4 sm:$0xff]   ;;  %v5884_v7 = vld [vmem:[%s7305_s1 + $0x20] ss:$16 sps:$4 sm:$0xff]   ;;  %v5890_v8 = vld [vmem:[%s7305_s1 + $0x28] ss:$16 sps:$4 sm:$0xff]  }
   0x4   :  { %107 = vmatprep.subr.bf16.mxu0 %v5872_v5  ;;  %148 = vmatprep.subr.bf16.mxu1 %v5879_v6  ;;  %v30_v9 = vld [vmem:[%s7307_s0] sm:$0xf]  ;;  %v5909_v10 = vld [vmem:[%s7306_s2 + $0x4] ss:$16 sps:$4 sm:$0xff]   ;;  %v5914_v11 = vld [vmem:[%s7306_s2 + $0xc] ss:$16 sps:$4 sm:$0xff]  }
   0x5   :  { %v5921_v12 = vld [vmem:[%s7306_s2] ss:$16 sps:$4 sm:$0xff]   ;;  %v5928_v13 = vld [vmem:[%s7306_s2 + $0x8] ss:$16 sps:$4 sm:$0xff]   ;;  %v4641_v14 = vld [vmem:[%s7307_s0 + $0x4] sm:$0xf] }
   0x6   :  { %v5938_v15 = vld [vmem:[%s7306_s2 + $0x24] ss:$16 sps:$4 sm:$0xff]   ;;  %v5943_v16 = vld [vmem:[%s7306_s2 + $0x2c] ss:$16 sps:$4 sm:$0xff]   ;;  %v5952_v17 = vld [vmem:[%s7306_s2 + $0x20] ss:$16 sps:$4 sm:$0xff]  }
   0x7   :  { %108 = vmatpush1.bf16.msra.mxu0 %v5884_v7  ;;  %149 = vmatpush1.bf16.msra.mxu1 %v5890_v8  ;;  %v5957_v18 = vld [vmem:[%s7306_s2 + $0x28] ss:$16 sps:$4 sm:$0xff]   ;;  %v5964_v19 = vld [vmem:[%s7306_s2 + $0x44] ss:$16 sps:$4 sm:$0xff]   ;;  %v5969_v20 = vld [vmem:[%s7306_s2 + $0x4c] ss:$16 sps:$4 sm:$0xff]  }
   0x8   :  { %194 = vmatprep.subr.bf16.mxu0 %v5847_v0  ;;  %235 = vmatprep.subr.bf16.mxu1 %v5855_v2  ;;  %v5978_v21 = vld [vmem:[%s7306_s2 + $0x40] ss:$16 sps:$4 sm:$0xff]   ;;  %v5983_v22 = vld [vmem:[%s7306_s2 + $0x48] ss:$16 sps:$4 sm:$0xff]   ;;  %v5990_v23 = vld [vmem:[%s7306_s2 + $0x64] ss:$16 sps:$4 sm:$0xff]  }
   0x9   :  { %v5995_v24 = vld [vmem:[%s7306_s2 + $0x6c] ss:$16 sps:$4 sm:$0xff]   ;;  %v6000_v25 = vld [vmem:[%s7306_s2 + $0x60] ss:$16 sps:$4 sm:$0xff]   ;;  %v6005_v26 = vld [vmem:[%s7306_s2 + $0x68] ss:$16 sps:$4 sm:$0xff]  }
   0xa   :  { %4639 = vmatmul.mubr.msk.bf16.vlgmr.msra.gmra.mrb[0].mxu0 %vm101_vm0, %v30_v9  ;;  %4640 = vmatmul.mubr.msk.bf16.vlgmr.msra.gmra.mrb[0].mxu1 %vm101_vm0, %v30_v9  ;;  %v6010_v27 = vld [vmem:[%s7306_s2 + $0x84] ss:$16 sps:$4 sm:$0xff]   ;;  %v6015_v28 = vld [vmem:[%s7306_s2 + $0x8c] ss:$16 sps:$4 sm:$0xff]   ;;  %v6024_v29 = vld [vmem:[%s7306_s2 + $0x80] ss:$16 sps:$4 sm:$0xff]  }
   0xb   :  { %195 = vmatpush1.bf16.msra.mxu0 %v5861_v3  ;;  %236 = vmatpush1.bf16.msra.mxu1 %v5866_v4  ;;  %v6029_v30 = vld [vmem:[%s7306_s2 + $0x88] ss:$16 sps:$4 sm:$0xff]   ;;  %v6034_v31 = vld [vmem:[%s7306_s2 + $0xa4] ss:$16 sps:$4 sm:$0xff]   ;;  %v6039_v32 = vld [vmem:[%s7306_s2 + $0xac] ss:$16 sps:$4 sm:$0xff]  }
   0xc   :  { %196 = vmatprep.subr.bf16.mxu0 %v5872_v5  ;;  %237 = vmatprep.subr.bf16.mxu1 %v5879_v6  ;;  %v6048_v33 = vld [vmem:[%s7306_s2 + $0xa0] ss:$16 sps:$4 sm:$0xff]   ;;  %v6053_v34 = vld [vmem:[%s7306_s2 + $0xa8] ss:$16 sps:$4 sm:$0xff]   ;;  %v6058_v35 = vld [vmem:[%s7306_s2 + $0xc4] ss:$16 sps:$4 sm:$0xff]  }
   0xd   :  { %226 = vmatprep.mubr.bf16.mxu0 %v7314_v1  ;;  %267 = vmatprep.mubr.bf16.mxu1 %v7314_v1  ;;  %v6063_v36 = vld [vmem:[%s7306_s2 + $0xcc] ss:$16 sps:$4 sm:$0xff]   ;;  %v6072_v37 = vld [vmem:[%s7306_s2 + $0xc0] ss:$16 sps:$4 sm:$0xff]   ;;  %v6077_v38 = vld [vmem:[%s7306_s2 + $0xc8] ss:$16 sps:$4 sm:$0xff]  }
   0xe   :  { %v6082_v39 = vld [vmem:[%s7306_s2 + $0xe4] ss:$16 sps:$4 sm:$0xff]   ;;  %v6087_v40 = vld [vmem:[%s7306_s2 + $0xec] ss:$16 sps:$4 sm:$0xff]   ;;  %v6096_v41 = vld [vmem:[%s7306_s2 + $0xe0] ss:$16 sps:$4 sm:$0xff]  }
   0xf   :  { %197 = vmatpush1.bf16.msra.mxu0 %v5884_v7  ;;  %238 = vmatpush1.bf16.msra.mxu1 %v5890_v8  ;;  %v6101_v42 = vld [vmem:[%s7306_s2 + $0xe8] ss:$16 sps:$4 sm:$0xff]   ;;  %v5460_v45 = vld [vmem:[%s7308_s4] sm:$0xff]   ;;  %v5462_v48 = vld [vmem:[%s7308_s4 + $0x10] sm:$0xff]   ;;  %v42_v55 = vshrl.u32 %v41_v54, 7 }
  0x10   :  { %468 = vmatprep.subr.bf16.mxu0 %v5909_v10  ;;  %509 = vmatprep.subr.bf16.mxu1 %v5914_v11  ;;  %v187_v43 = vld [vmem:[#allocation2] sm:$0xf]  ;;  %v5463_v49 = vld [vmem:[%s7308_s4 + $0x18] sm:$0xff]   ;;  %v5464_v50 = vld [vmem:[%s7308_s4 + $0x20] sm:$0xff]  }
  0x11   :  { %v4688_v44 = vld [vmem:[%s7307_s0 + $0x8] sm:$0xf]  ;;  %v5466_v52 = vld [vmem:[%s7308_s4 + $0x30] sm:$0xff]   ;;  %v5467_v53 = vld [vmem:[%s7308_s4 + $0x38] sm:$0xff]   ;;  %v6177_v56 = vsub.s32 0, %v42_v55  ;;  %v6182_v58 = vsub.s32 1, %v42_v55 }
  0x12   :  { %4642 = vmatmul.mubr.msk.bf16.vlgmr.msra.gmra.mrb[4].mxu0 %vm101_vm0, %v4641_v14  ;;  %4643 = vmatmul.mubr.msk.bf16.vlgmr.msra.gmra.mrb[4].mxu1 %vm101_vm0, %v4641_v14  ;;  %v5461_v47 = vld [vmem:[%s7308_s4 + $0x8] sm:$0xff]   ;;  %v39_v57 = vld [vmem:[%s7309_s3] sm:$0xf]  ;;  %v6190_v63 = vsub.s32 3, %v42_v55  ;;  %v6197_v14 = vsub.s32 2, %v42_v55 }
  0x13   :  { %469 = vmatpush1.bf16.msra.mxu0 %v5921_v12  ;;  %510 = vmatpush1.bf16.msra.mxu1 %v5928_v13  ;;  %v5465_v51 = vld [vmem:[%s7308_s4 + $0x28] sm:$0xff]   ;;  %v6185_v59 = vrot.slane %v39_v57, %v6177_v56  ;;  %v6188_v60 = vrot.slane %v39_v57, %v6182_v58 }
  0x14   :  { %470 = vmatprep.subr.bf16.mxu0 %v5938_v15  ;;  %511 = vmatprep.subr.bf16.mxu1 %v5943_v16 }
  0x15   :  { %500 = vmatprep.mubr.bf16.mxu0 %v7314_v1  ;;  %541 = vmatprep.mubr.bf16.mxu1 %v7314_v1 }
  0x17   :  { %471 = vmatpush1.bf16.msra.mxu0 %v5952_v17  ;;  %512 = vmatpush1.bf16.msra.mxu1 %v5957_v18 }
  0x18   :  { %472 = vmatprep.subr.bf16.mxu0 %v5964_v19  ;;  %513 = vmatprep.subr.bf16.mxu1 %v5969_v20 }
  0x1b   :  { %473 = vmatpush1.bf16.msra.mxu0 %v5978_v21  ;;  %514 = vmatpush1.bf16.msra.mxu1 %v5983_v22 }
  0x1c   :  { %474 = vmatprep.subr.bf16.mxu0 %v5990_v23  ;;  %515 = vmatprep.subr.bf16.mxu1 %v5995_v24 }
  0x1f   :  { %475 = vmatpush1.bf16.msra.mxu0 %v6000_v25  ;;  %516 = vmatpush1.bf16.msra.mxu1 %v6005_v26 }
  0x20   :  { %476 = vmatprep.subr.bf16.mxu0 %v6010_v27  ;;  %517 = vmatprep.subr.bf16.mxu1 %v6015_v28 }
  0x23   :  { %477 = vmatpush1.bf16.msra.mxu0 %v6024_v29  ;;  %518 = vmatpush1.bf16.msra.mxu1 %v6029_v30 }
  0x24   :  { %478 = vmatprep.subr.bf16.mxu0 %v6034_v31  ;;  %519 = vmatprep.subr.bf16.mxu1 %v6039_v32 }
  0x27   :  { %479 = vmatpush1.bf16.msra.mxu0 %v6048_v33  ;;  %520 = vmatpush1.bf16.msra.mxu1 %v6053_v34 }
  0x28   :  { %480 = vmatprep.subr.bf16.mxu0 %v6058_v35  ;;  %521 = vmatprep.subr.bf16.mxu1 %v6063_v36 }
  0x2b   :  { %481 = vmatpush1.bf16.msra.mxu0 %v6072_v37  ;;  %522 = vmatpush1.bf16.msra.mxu1 %v6077_v38 }
  0x2c   :  { %482 = vmatprep.subr.bf16.mxu0 %v6082_v39  ;;  %523 = vmatprep.subr.bf16.mxu1 %v6087_v40 }
  0x2f   :  { %483 = vmatpush1.bf16.msra.mxu0 %v6096_v41  ;;  %524 = vmatpush1.bf16.msra.mxu1 %v6101_v42 }
  0x30   :  { %776 = vmatprep.subr.bf16.mxu1 %v5847_v0  ;;  %5141 = vmatprep.subr.bf16.mxu0 %v7312_v46 }
  0x32   :  { %501 = vmatmul.mubr.bf16.vlgmr.msra.gmra.mrb[0].mxu0 %v187_v43  ;;  %542 = vmatmul.mubr.bf16.vlgmr.msra.gmra.mrb[0].mxu1 %v187_v43 }
  0x33   :  { %777 = vmatpush1.bf16.msra.mxu1 %v5861_v3  ;;  %808 = vmatprep.mubr.bf16.mxu1 %v7314_v1 }
  0x34   :  { %778 = vmatprep.subr.bf16.mxu1 %v5872_v5  ;;  %5142 = vmatpush3.bf16.msra.mxu0 %v5460_v45 }
  0x35   :  { %5143 = vmatprep.subr.bf16.mxu0 %v7312_v46  ;;  %5157 = vmatprep.mubr.msk.bf16.mxu0 %vm5808_vm1, %v7312_v46 }
  0x37   :  { %779 = vmatpush1.bf16.msra.mxu1 %v5884_v7 }
  0x38   :  { %817 = vmatprep.subr.bf16.mxu1 %v5855_v2  ;;  %5144 = vmatpush3.bf16.msra.mxu0 %v5461_v47 }
  0x39   :  { %5145 = vmatprep.subr.bf16.mxu0 %v7312_v46 }
  0x3a   :  { %4697 = vmatmul.mubr.msk.bf16.vlgmr.msra.gmra.mrb[8].mxu1 %vm101_vm0, %v4688_v44 }
  0x3b   :  { %818 = vmatpush1.bf16.msra.mxu1 %v5866_v4  ;;  %849 = vmatprep.mubr.bf16.mxu1 %v7314_v1 }
  0x3c   :  { %819 = vmatprep.subr.bf16.mxu1 %v5879_v6  ;;  %5146 = vmatpush3.bf16.msra.mxu0 %v5462_v48 }
  0x3d   :  { %5147 = vmatprep.subr.bf16.mxu0 %v7312_v46 }
  0x3f   :  { %820 = vmatpush1.bf16.msra.mxu1 %v5890_v8 }
  0x40   :  { %1091 = vmatprep.subr.bf16.mxu1 %v5914_v11  ;;  %5148 = vmatpush3.bf16.msra.mxu0 %v5463_v49 }
  0x41   :  { %5149 = vmatprep.subr.bf16.mxu0 %v7312_v46 }
  0x42   :  { %4698 = vmatmul.mubr.msk.bf16.vlgmr.msra.gmra.mrb[12].mxu1 %vm101_vm0, %v4688_v44  ;;  %v6201_v44 = vrot.slane %v39_v57, %v6197_v14 }
  0x43   :  { %1092 = vmatpush1.bf16.msra.mxu1 %v5928_v13  ;;  %1123 = vmatprep.mubr.bf16.mxu1 %v7314_v1  ;;  %v6195_v13 = vrot.slane %v39_v57, %v6190_v63 }
  0x44   :  { %1093 = vmatprep.subr.bf16.mxu1 %v5943_v16  ;;  %5150 = vmatpush3.bf16.msra.mxu0 %v5464_v50 }
  0x45   :  { %5151 = vmatprep.subr.bf16.mxu0 %v7312_v46 }
  0x47   :  { %1094 = vmatpush1.bf16.msra.mxu1 %v5957_v18 }
  0x48   :  { %1095 = vmatprep.subr.bf16.mxu1 %v5969_v20  ;;  %5152 = vmatpush3.bf16.msra.mxu0 %v5465_v51 }
  0x49   :  { %5153 = vmatprep.subr.bf16.mxu0 %v7312_v46 }
  0x4b   :  { %1096 = vmatpush1.bf16.msra.mxu1 %v5983_v22 }
  0x4c   :  { %1097 = vmatprep.subr.bf16.mxu1 %v5995_v24  ;;  %5154 = vmatpush3.bf16.msra.mxu0 %v5466_v52 }
  0x4d   :  { %5155 = vmatprep.subr.bf16.mxu0 %v7312_v46 }
  0x4f   :  { %1098 = vmatpush1.bf16.msra.mxu1 %v6005_v26 }
  0x50   :  { %1099 = vmatprep.subr.bf16.mxu1 %v6015_v28  ;;  %5156 = vmatpush3.bf16.msra.mxu0 %v5467_v53 }
  0x51   :  { %1050 = vmatprep.subr.bf16.mxu0 %v5909_v10 }
  0x53   :  { %1100 = vmatpush1.bf16.msra.mxu1 %v6029_v30 }
  0x54   :  { %1101 = vmatprep.subr.bf16.mxu1 %v6039_v32 }
  0x57   :  { %1102 = vmatpush1.bf16.msra.mxu1 %v6053_v34 }
  0x58   :  { %1103 = vmatprep.subr.bf16.mxu1 %v6063_v36 }
  0x5b   :  { %1104 = vmatpush1.bf16.msra.mxu1 %v6077_v38 }
  0x5c   :  { %1105 = vmatprep.subr.bf16.mxu1 %v6087_v40 }
  0x5f   :  { %1106 = vmatpush1.bf16.msra.mxu1 %v6101_v42 }
  0x60   :  { %5161 = vmatprep.subr.bf16.mxu1 %v7312_v46 }
 0x105   :  { %v502_v61 = vpop.f32.mrb[0].mxu0  ;;  %v543_v62 = vpop.f32.mrb[0].mxu1 }
 0x106   :  { %v5301_v0 = vadd.f32 %v502_v61, %v6185_v59  ;;  %v504_v2 = vpop.f32.mrb[1].mxu0  ;;  %v545_v3 = vpop.f32.mrb[1].mxu1  ;;  %v5303_v47 = vadd.f32 %v543_v62, %v6201_v44 }
 0x107   :  { %v5302_v4 = vadd.f32 %v504_v2, %v6188_v60  ;;  %v506_v5 = vpop.f32.mrb[2].mxu0  ;;  %v547_v6 = vpop.f32.mrb[2].mxu1  ;;  %v5304_v43 = vadd.f32 %v545_v3, %v6195_v13 }
 0x108   :  { %v4676_v7 = vmul.f32 -1.442695, %v5301_v0  ;;  %v507_v8 = vpop.f32.mrb[3].mxu0  ;;  %v548_v9 = vpop.f32.mrb[3].mxu1  ;;  %v5468_v6 = vld [vmem:[%s7308_s4] sm:$0xff]  }
 0x109   :  { %v4677_v11 = vmul.f32 -1.442695, %v5302_v4  ;;  %v4678_v45 = vmul.f32 -1.442695, %v5304_v43  ;;  %v5470_v8 = vld [vmem:[%s7308_s4 + $0x10] sm:$0xff]   ;;  %v5471_v9 = vld [vmem:[%s7308_s4 + $0x18] sm:$0xff]  }
 0x10a   :  { %5644 = vpow2.f32 %v4676_v7  ;;  %v5469_v7 = vld [vmem:[%s7308_s4 + $0x8] sm:$0xff]  }
 0x10b   :  { %5646 = vpow2.f32 %v4677_v11  ;;  %v5472_v11 = vld [vmem:[%s7308_s4 + $0x20] sm:$0xff]   ;;  %v5473_v43 = vld [vmem:[%s7308_s4 + $0x28] sm:$0xff]  }
 0x10c   :  { %5648 = vpow2.f32 %v4678_v45  ;;  %v5474_v45 = vld [vmem:[%s7308_s4 + $0x30] sm:$0xff]  }
 0x10d   :  { %5650 = vtanh.f32 %v5303_v47  ;;  %v5475_v47 = vld [vmem:[%s7308_s4 + $0x38] sm:$0xff]  }
 0x114   :  { %v5645_v48 = vpop.eup %5644 }
 0x115   :  { %v5647_v49 = vpop.eup %5646  ;;  %v557_v50 = vadd.f32 1.0, %v5645_v48  ;;  %v6261_v48 = vld [vmem:[%s7310_s5] ss:$0 sm:$0xff] }
 0x116   :  { %v563_v51 = vadd.f32 1.0, %v5647_v49  ;;  %v5649_v52 = vpop.eup %5648 }
 0x117   :  { %5652 = vrcp.f32 %v557_v50  ;;  %v5651_v53 = vpop.eup %5650  ;;  %v570_v0 = vadd.f32 1.0, %v5649_v52 }
 0x118   :  { %5654 = vrcp.f32 %v563_v51 }
 0x119   :  { %5656 = vrcp.f32 %v570_v0 }
 0x121   :  { %v5653_v54 = vpop.eup %5652 }
 0x122   :  { %v5655_v55 = vpop.eup %5654  ;;  %v574_v61 = vmul.f32 %v5653_v54, %v5651_v53 }
 0x123   :  { %v573_v2 = vmul.f32 0.0, %v5655_v55  ;;  %v5657_v62 = vpop.eup %5656 }
 0x125   :  { %v6204_v57 = vadd.f32 %v574_v61, %v573_v2 }
 0x127   :  { %5658 = vtanh.f32 %v6204_v57 }
 0x131   :  { %v5659_v3 = vpop.eup %5658 }
 0x132   :  { %v577_v4 = vmul.f32 %v5659_v3, %v5657_v62 }
 0x134   :  { %v578_v5 = vpack.c.bf16 %v577_v4, %v577_v4 }
 0x136   :  { %5158 = vmatmul.mubr.bf16.vlgmr.msra.gmra.mrb[8].mxu0 %v578_v5  ;;  %1124 = vmatmul.mubr.bf16.vlgmr.msra.gmra.mrb[4].mxu1 %v578_v5 }
 0x137   :  { %1051 = vmatpush1.bf16.msra.mxu0 %v5921_v12  ;;  %1082 = vmatprep.mubr.bf16.mxu0 %v7314_v1 }
 0x138   :  { %1052 = vmatprep.subr.bf16.mxu0 %v5938_v15  ;;  %5177 = vmatprep.mubr.msk.bf16.mxu1 %vm5808_vm1, %v7312_v46 }
 0x139   :  { %5162 = vmatpush3.bf16.msra.mxu1 %v5468_v6 }
 0x13a   :  { %5163 = vmatprep.subr.bf16.mxu1 %v7312_v46 }
 0x13b   :  { %1053 = vmatpush1.bf16.msra.mxu0 %v5952_v17 }
 0x13c   :  { %1054 = vmatprep.subr.bf16.mxu0 %v5964_v19 }
 0x13d   :  { %5164 = vmatpush3.bf16.msra.mxu1 %v5469_v7 }
 0x13e   :  { %5165 = vmatprep.subr.bf16.mxu1 %v7312_v46 }
 0x13f   :  { %1055 = vmatpush1.bf16.msra.mxu0 %v5978_v21 }
 0x140   :  { %1056 = vmatprep.subr.bf16.mxu0 %v5990_v23 }
 0x141   :  { %5166 = vmatpush3.bf16.msra.mxu1 %v5470_v8 }
 0x142   :  { %5167 = vmatprep.subr.bf16.mxu1 %v7312_v46 }
 0x143   :  { %1057 = vmatpush1.bf16.msra.mxu0 %v6000_v25 }
 0x144   :  { %1058 = vmatprep.subr.bf16.mxu0 %v6010_v27 }
 0x145   :  { %5168 = vmatpush3.bf16.msra.mxu1 %v5471_v9 }
 0x146   :  { %5169 = vmatprep.subr.bf16.mxu1 %v7312_v46 }
 0x147   :  { %1059 = vmatpush1.bf16.msra.mxu0 %v6024_v29 }
 0x148   :  { %1060 = vmatprep.subr.bf16.mxu0 %v6034_v31 }
 0x149   :  { %5170 = vmatpush3.bf16.msra.mxu1 %v5472_v11 }
 0x14a   :  { %5171 = vmatprep.subr.bf16.mxu1 %v7312_v46 }
 0x14b   :  { %1061 = vmatpush1.bf16.msra.mxu0 %v6048_v33 }
 0x14c   :  { %1062 = vmatprep.subr.bf16.mxu0 %v6058_v35 }
 0x14d   :  { %5172 = vmatpush3.bf16.msra.mxu1 %v5473_v43 }
 0x14e   :  { %5173 = vmatprep.subr.bf16.mxu1 %v7312_v46 }
 0x14f   :  { %1063 = vmatpush1.bf16.msra.mxu0 %v6072_v37 }
 0x150   :  { %1064 = vmatprep.subr.bf16.mxu0 %v6082_v39 }
 0x151   :  { %5174 = vmatpush3.bf16.msra.mxu1 %v5474_v45 }
 0x152   :  { %5175 = vmatprep.subr.bf16.mxu1 %v7312_v46 }
 0x153   :  { %1065 = vmatpush1.bf16.msra.mxu0 %v6096_v41 }
 0x155   :  { %5176 = vmatpush3.bf16.msra.mxu1 %v5475_v47 }
 0x156   :  { %1083 = vmatmul.mubr.bf16.vlgmr.msra.gmra.mrb[4].mxu0 %v578_v5  ;;  %1633 = vmatprep.subr.bf16.mxu1 %v5909_v10 }
 0x157   :  { %1391 = vmatprep.mubr.bf16.mxu0 %v7314_v1 }
 0x209   :  { %v684_v49 = vpop.f32.mrb[8].mxu0  ;;  %v1125_v50 = vpop.f32.mrb[4].mxu1 }
 0x20a   :  { %v6264_v51 = vadd.f32 %v6261_v48, %v684_v49  ;;  %v5159_v52 = vpop.f32.mrb[9].mxu0  ;;  %v1127_v53 = vpop.f32.mrb[5].mxu1  ;;  %v5307_v11 = vadd.f32 %v1125_v50, %v6201_v44 }
 0x20b   :  { %v687_v54 = vpop.f32.mrb[10].mxu0  ;;  %v1129_v55 = vpop.f32.mrb[6].mxu1  ;;  %v5308_v8 = vadd.f32 %v1127_v53, %v6195_v13 }
 0x20c   :  { %v1130_v61 = vpop.f32.mrb[7].mxu1  ;;  %690 = vmax.xlane.f32.xlu0 %v6264_v51  ;;  %v5160_v0 = vpop.f32.mrb[11].mxu0 }
 0x20d   :  { %v4733_v9 = vmul.f32 -1.442695, %v5308_v8 }
 0x229   :  { %v1084_v2 = vpop.f32.mrb[4].mxu0 }
 0x22a   :  { %v5305_v10 = vadd.f32 %v1084_v2, %v6185_v59  ;;  %v1086_v62 = vpop.f32.mrb[5].mxu0 }
 0x22b   :  { %v5306_v3 = vadd.f32 %v1086_v62, %v6188_v60  ;;  %v1088_v4 = vpop.f32.mrb[6].mxu0 }
 0x22c   :  { %v4731_v5 = vmul.f32 -1.442695, %v5305_v10  ;;  %v1089_v6 = vpop.f32.mrb[7].mxu0 }
 0x22d   :  { %v4732_v7 = vmul.f32 -1.442695, %v5306_v3 }
 0x22e   :  { %5660 = vpow2.f32 %v4731_v5 }
 0x22f   :  { %5662 = vpow2.f32 %v4732_v7 }
 0x230   :  { %5664 = vpow2.f32 %v4733_v9 }
 0x231   :  { %5666 = vtanh.f32 %v5307_v11 }
 0x238   :  { %v5661_v43 = vpop.eup %5660 }
 0x239   :  { %v5663_v45 = vpop.eup %5662  ;;  %v1139_v47 = vadd.f32 1.0, %v5661_v43 }
 0x23a   :  { %v1145_v59 = vadd.f32 1.0, %v5663_v45  ;;  %v5665_v60 = vpop.eup %5664 }
 0x23b   :  { %5668 = vrcp.f32 %v1139_v47  ;;  %v5667_v49 = vpop.eup %5666  ;;  %v1152_v55 = vadd.f32 1.0, %v5665_v60 }
 0x23c   :  { %5670 = vrcp.f32 %v1145_v59 }
 0x23d   :  { %5672 = vrcp.f32 %v1152_v55 }
 0x245   :  { %v5669_v52 = vpop.eup %5668 }
 0x246   :  { %v5671_v54 = vpop.eup %5670  ;;  %v1156_v61 = vmul.f32 %v5669_v52, %v5667_v49 }
 0x247   :  { %v1155_v0 = vmul.f32 %v5671_v54, %v6204_v57  ;;  %v5673_v44 = vpop.eup %5672 }
 0x249   :  { %v6272_v13 = vadd.f32 %v1156_v61, %v1155_v0 }
 0x24b   :  { %5674 = vtanh.f32 %v6272_v13 }
 0x255   :  { %v5675_v50 = vpop.eup %5674 }
 0x256   :  { %v1159_v53 = vmul.f32 %v5675_v50, %v5673_v44 }
 0x258   :  { %v1160_v2 = vpack.c.bf16 %v1159_v53, %v1159_v53 }
 0x25a   :  { %5178 = vmatmul.mubr.bf16.vlgmr.msra.gmra.mrb[16].mxu1 %v1160_v2 }
 0x25b   :  { %1634 = vmatpush1.bf16.msra.mxu1 %v5921_v12  ;;  %1665 = vmatprep.mubr.bf16.mxu1 %v7314_v1  ;;  %v5804_v12 = vld [vmem:[%s7306_s2 + $0xc] ss:$16 sps:$4 sm:$0xff]  }
 0x25c   :  { %1635 = vmatprep.subr.bf16.mxu1 %v5938_v15  ;;  %v5805_v15 = vld [vmem:[%s7306_s2 + $0x8] ss:$16 sps:$4 sm:$0xff]  }
 0x25f   :  { %1636 = vmatpush1.bf16.msra.mxu1 %v5952_v17  ;;  %v6323_v17 = vld [vmem:[%s7305_s1] ss:$16 sps:$4 sm:$0xff]  }
 0x260   :  { %1637 = vmatprep.subr.bf16.mxu1 %v5964_v19  ;;  %v6335_v19 = vld [vmem:[%s7305_s1 + $0x20] ss:$16 sps:$4 sm:$0xff]  }
 0x263   :  { %1638 = vmatpush1.bf16.msra.mxu1 %v5978_v21  ;;  %v6347_v21 = vld [vmem:[%s7305_s1 + $0x8] ss:$16 sps:$4 sm:$0xff]  }
 0x264   :  { %1639 = vmatprep.subr.bf16.mxu1 %v5990_v23  ;;  %v6358_v23 = vld [vmem:[%s7305_s1 + $0x2c] ss:$16 sps:$4 sm:$0xff]  }
 0x267   :  { %1640 = vmatpush1.bf16.msra.mxu1 %v6000_v25  ;;  %v5488_v25 = vld [vmem:[%s7308_s4] sm:$0xff]  }
 0x268   :  { %1641 = vmatprep.subr.bf16.mxu1 %v6010_v27  ;;  %v5490_v27 = vld [vmem:[%s7308_s4 + $0x10] sm:$0xff]  }
 0x26b   :  { %1642 = vmatpush1.bf16.msra.mxu1 %v6024_v29  ;;  %v5492_v29 = vld [vmem:[%s7308_s4 + $0x20] sm:$0xff]  }
 0x26c   :  { %1643 = vmatprep.subr.bf16.mxu1 %v6034_v31  ;;  %v5494_v31 = vld [vmem:[%s7308_s4 + $0x30] sm:$0xff]  }
 0x26f   :  { %1644 = vmatpush1.bf16.msra.mxu1 %v6048_v33 }
 0x270   :  { %1645 = vmatprep.subr.bf16.mxu1 %v6058_v35 }
 0x273   :  { %1646 = vmatpush1.bf16.msra.mxu1 %v6072_v37 }
 0x274   :  { %1647 = vmatprep.subr.bf16.mxu1 %v6082_v39  ;;  %v711_v39 = vld [vmem:[%s7309_s3] sm:$0xf] }
 0x275   :  { %v720_v57 = vrot.slane %v711_v39, %v6182_v58  ;;  %v716_v10 = vrot.slane %v711_v39, %v6177_v56  ;;  %v724_v9 = vrot.slane %v711_v39, %v6197_v14  ;;  %v728_v43 = vrot.slane %v711_v39, %v6190_v63  ;;  %v6505_v39 = vld [vmem:[%s7306_s2 + $0xa0] ss:$16 sps:$4 sm:$0xff]  }
 0x277   :  { %1648 = vmatpush1.bf16.msra.mxu1 %v6096_v41 }
 0x278   :  { %1674 = vmatprep.subr.bf16.mxu1 %v5804_v12 }
 0x27a   :  { %1666 = vmatmul.mubr.bf16.vlgmr.msra.gmra.mrb[8].mxu1 %v1160_v2 }
 0x27b   :  { %1675 = vmatpush1.bf16.msra.mxu1 %v5805_v15  ;;  %1706 = vmatprep.mubr.bf16.mxu1 %v7314_v1 }
 0x27c   :  { %1676 = vmatprep.subr.bf16.mxu1 %v5943_v16  ;;  %v6318_v16 = vld [vmem:[%s7305_s1 + $0x4] ss:$16 sps:$4 sm:$0xff]  }
 0x27d   :  { %1359 = vmatprep.subr.bf16.mxu0 %v6318_v16 }
 0x27e   :  { %1360 = vmatpush1.bf16.msra.mxu0 %v6323_v17 }
 0x27f   :  { %1677 = vmatpush1.bf16.msra.mxu1 %v5957_v18  ;;  %v6330_v18 = vld [vmem:[%s7305_s1 + $0x24] ss:$16 sps:$4 sm:$0xff]  }
 0x280   :  { %1678 = vmatprep.subr.bf16.mxu1 %v5969_v20  ;;  %1361 = vmatprep.subr.bf16.mxu0 %v6330_v18  ;;  %v6342_v20 = vld [vmem:[%s7305_s1 + $0xc] ss:$16 sps:$4 sm:$0xff]  }
 0x282   :  { %1362 = vmatpush1.bf16.msra.mxu0 %v6335_v19 }
 0x283   :  { %1679 = vmatpush1.bf16.msra.mxu1 %v5983_v22  ;;  %1400 = vmatprep.subr.bf16.mxu0 %v6342_v20  ;;  %v4744_v22 = vld [vmem:[%s7307_s0 + $0xc] sm:$0xf] }
 0x284   :  { %1680 = vmatprep.subr.bf16.mxu1 %v5995_v24  ;;  %v6364_v24 = vld [vmem:[%s7305_s1 + $0x28] ss:$16 sps:$4 sm:$0xff]  }
 0x285   :  { %4753 = vmatmul.mubr.msk.bf16.vlgmr.msra.gmra.mrb[12].mxu0 %vm101_vm0, %v4744_v22 }
 0x286   :  { %1401 = vmatpush1.bf16.msra.mxu0 %v6347_v21  ;;  %1432 = vmatprep.mubr.bf16.mxu0 %v7314_v1 }
 0x287   :  { %1681 = vmatpush1.bf16.msra.mxu1 %v6005_v26  ;;  %1402 = vmatprep.subr.bf16.mxu0 %v6358_v23  ;;  %v5489_v26 = vld [vmem:[%s7308_s4 + $0x8] sm:$0xff]  }
 0x288   :  { %1682 = vmatprep.subr.bf16.mxu1 %v6015_v28  ;;  %v5491_v28 = vld [vmem:[%s7308_s4 + $0x18] sm:$0xff]  }
 0x28a   :  { %1403 = vmatpush1.bf16.msra.mxu0 %v6364_v24 }
 0x28b   :  { %1683 = vmatpush1.bf16.msra.mxu1 %v6029_v30  ;;  %5181 = vmatprep.subr.bf16.mxu0 %v7312_v46  ;;  %v5493_v30 = vld [vmem:[%s7308_s4 + $0x28] sm:$0xff]  }
 0x28c   :  { %1684 = vmatprep.subr.bf16.mxu1 %v6039_v32  ;;  %v5495_v32 = vld [vmem:[%s7308_s4 + $0x38] sm:$0xff]  }
 0x28d   :  { %4754 = vmatmul.mubr.msk.bf16.vlgmr.msra.gmra.mrb[16].mxu0 %vm101_vm0, %v4744_v22 }
 0x28e   :  { %5182 = vmatpush3.bf16.msra.mxu0 %v5488_v25  ;;  %5197 = vmatprep.mubr.msk.bf16.mxu0 %vm5808_vm1, %v7312_v46 }
 0x28f   :  { %1685 = vmatpush1.bf16.msra.mxu1 %v6053_v34  ;;  %5183 = vmatprep.subr.bf16.mxu0 %v7312_v46 }
 0x290   :  { %1686 = vmatprep.subr.bf16.mxu1 %v6063_v36 }
 0x292   :  { %5184 = vmatpush3.bf16.msra.mxu0 %v5489_v26 }
 0x293   :  { %1687 = vmatpush1.bf16.msra.mxu1 %v6077_v38  ;;  %5185 = vmatprep.subr.bf16.mxu0 %v7312_v46 }
 0x294   :  { %1688 = vmatprep.subr.bf16.mxu1 %v6087_v40 }
 0x296   :  { %5186 = vmatpush3.bf16.msra.mxu0 %v5490_v27  ;;  %v6437_v27 = vld [vmem:[%s7306_s2 + $0x4] ss:$16 sps:$4 sm:$0xff]  }
 0x297   :  { %1689 = vmatpush1.bf16.msra.mxu1 %v6101_v42  ;;  %5187 = vmatprep.subr.bf16.mxu0 %v7312_v46 }
 0x298   :  { %5201 = vmatprep.subr.bf16.mxu1 %v7312_v46 }
 0x29a   :  { %1707 = vmatmul.mubr.bf16.vlgmr.msra.gmra.mrb[12].mxu1 %v1160_v2  ;;  %5188 = vmatpush3.bf16.msra.mxu0 %v5491_v28  ;;  %v6443_v28 = vld [vmem:[%s7306_s2] ss:$16 sps:$4 sm:$0xff]  }
 0x29b   :  { %5217 = vmatprep.mubr.msk.bf16.mxu1 %vm5808_vm1, %v7312_v46  ;;  %5189 = vmatprep.subr.bf16.mxu0 %v7312_v46 }
 0x29e   :  { %5190 = vmatpush3.bf16.msra.mxu0 %v5492_v29  ;;  %v6449_v29 = vld [vmem:[%s7306_s2 + $0x24] ss:$16 sps:$4 sm:$0xff]  }
 0x29f   :  { %5191 = vmatprep.subr.bf16.mxu0 %v7312_v46 }
 0x2a2   :  { %5192 = vmatpush3.bf16.msra.mxu0 %v5493_v30  ;;  %v6456_v30 = vld [vmem:[%s7306_s2 + $0x20] ss:$16 sps:$4 sm:$0xff]  }
 0x2a3   :  { %5193 = vmatprep.subr.bf16.mxu0 %v7312_v46 }
 0x2a6   :  { %5194 = vmatpush3.bf16.msra.mxu0 %v5494_v31  ;;  %v6463_v31 = vld [vmem:[%s7306_s2 + $0x44] ss:$16 sps:$4 sm:$0xff]  }
 0x2a7   :  { %5195 = vmatprep.subr.bf16.mxu0 %v7312_v46 }
 0x2aa   :  { %5196 = vmatpush3.bf16.msra.mxu0 %v5495_v32  ;;  %v6469_v32 = vld [vmem:[%s7306_s2 + $0x40] ss:$16 sps:$4 sm:$0xff]  }
 0x2ab   :  { %1942 = vmatprep.subr.bf16.mxu0 %v6318_v16 }
 0x32d   :  { %v1266_v33 = vpop.f32.mrb[16].mxu1 }
 0x32e   :  { %v6405_v34 = vadd.f32 %v6261_v48, %v1266_v33  ;;  %v5179_v35 = vpop.f32.mrb[17].mxu1  ;;  %v6475_v33 = vld [vmem:[%s7306_s2 + $0x64] ss:$16 sps:$4 sm:$0xff]  }
 0x32f   :  { %v1269_v36 = vpop.f32.mrb[18].mxu1  ;;  %v6481_v35 = vld [vmem:[%s7306_s2 + $0x60] ss:$16 sps:$4 sm:$0xff]  }
 0x330   :  { %7318 = vst [vmem:[#allocation4_spill] sm:$0xff] %v6405_v34  ;;  %1272 = vmax.xlane.f32.xlu0 %v6405_v34  ;;  %v5180_v37 = vpop.f32.mrb[19].mxu1  ;;  %v6487_v36 = vld [vmem:[%s7306_s2 + $0x84] ss:$16 sps:$4 sm:$0xff]  }
 0x331   :  { %v6493_v37 = vld [vmem:[%s7306_s2 + $0x80] ss:$16 sps:$4 sm:$0xff]  }
 0x34d   :  { %v1667_v38 = vpop.f32.mrb[8].mxu1 }
 0x34e   :  { %v1669_v40 = vpop.f32.mrb[9].mxu1  ;;  %v5309_v3 = vadd.f32 %v1667_v38, %v716_v10  ;;  %v6499_v38 = vld [vmem:[%s7306_s2 + $0xa4] ss:$16 sps:$4 sm:$0xff]   ;;  %v6535_v10 = vld [vmem:[%s7306_s2 + $0xc] ss:$16 sps:$4 sm:$0xff]  }
 0x34f   :  { %v1671_v41 = vpop.f32.mrb[10].mxu1  ;;  %v5310_v62 = vadd.f32 %v1669_v40, %v720_v57  ;;  %v6511_v40 = vld [vmem:[%s7306_s2 + $0xc4] ss:$16 sps:$4 sm:$0xff]   ;;  %v6529_v57 = vld [vmem:[%s7306_s2 + $0xe0] ss:$16 sps:$4 sm:$0xff]  }
 0x350   :  { %v1672_v42 = vpop.f32.mrb[11].mxu1  ;;  %v4787_v5 = vmul.f32 -1.442695, %v5309_v3  ;;  %v6517_v41 = vld [vmem:[%s7306_s2 + $0xc0] ss:$16 sps:$4 sm:$0xff]  }
 0x351   :  { %v4788_v4 = vmul.f32 -1.442695, %v5310_v62  ;;  %v6523_v42 = vld [vmem:[%s7306_s2 + $0xe4] ss:$16 sps:$4 sm:$0xff]   ;;  %v6541_v62 = vld [vmem:[%s7306_s2 + $0x8] ss:$16 sps:$4 sm:$0xff]  }
 0x352   :  { %v6547_v3 = vld [vmem:[%s7306_s2 + $0x2c] ss:$16 sps:$4 sm:$0xff]  }
 0x353   :  { %5676 = vpow2.f32 %v4788_v4  ;;  %v6554_v4 = vld [vmem:[%s7306_s2 + $0x28] ss:$16 sps:$4 sm:$0xff]  }
 0x354   :  { %5678 = vpow2.f32 %v4787_v5  ;;  %v6561_v5 = vld [vmem:[%s7306_s2 + $0x4c] ss:$16 sps:$4 sm:$0xff]  }
 0x35d   :  { %v5677_v6 = vpop.eup %5676 }
 0x35e   :  { %v5679_v7 = vpop.eup %5678  ;;  %v1728_v8 = vadd.f32 1.0, %v5677_v6  ;;  %v6567_v6 = vld [vmem:[%s7306_s2 + $0x48] ss:$16 sps:$4 sm:$0xff]  }
 0x35f   :  { %v1722_v11 = vadd.f32 1.0, %v5679_v7  ;;  %v6573_v7 = vld [vmem:[%s7306_s2 + $0x6c] ss:$16 sps:$4 sm:$0xff]  }
 0x360   :  { %5680 = vrcp.f32 %v1728_v8  ;;  %v6579_v8 = vld [vmem:[%s7306_s2 + $0x68] ss:$16 sps:$4 sm:$0xff]  }
 0x361   :  { %5682 = vrcp.f32 %v1722_v11  ;;  %v6591_v11 = vld [vmem:[%s7306_s2 + $0x88] ss:$16 sps:$4 sm:$0xff]  }
 0x36a   :  { %v5681_v55 = vpop.eup %5680 }
 0x36b   :  { %v5683_v61 = vpop.eup %5682  ;;  %v1738_v44 = vmul.f32 %v5681_v55, %v6272_v13  ;;  %v4800_v13 = vld [vmem:[%s7307_s0 + $0x10] sm:$0xf] }
 0x36c   :  { %v5546_v55 = vld [vmem:[%s7308_s4 + $0x10] sm:$0xff]  }
 0x36d   :  { %v1708_v45 = vpop.f32.mrb[12].mxu1 }
 0x36e   :  { %v5311_v47 = vadd.f32 %v1708_v45, %v724_v9  ;;  %v1710_v59 = vpop.f32.mrb[13].mxu1  ;;  %v6585_v9 = vld [vmem:[%s7306_s2 + $0x8c] ss:$16 sps:$4 sm:$0xff]   ;;  %v6603_v45 = vld [vmem:[%s7306_s2 + $0xa8] ss:$16 sps:$4 sm:$0xff]  }
 0x36f   :  { %v5312_v60 = vadd.f32 %v1710_v59, %v728_v43  ;;  %v1712_v49 = vpop.f32.mrb[14].mxu1  ;;  %v6597_v43 = vld [vmem:[%s7306_s2 + $0xac] ss:$16 sps:$4 sm:$0xff]   ;;  %v6615_v59 = vld [vmem:[%s7306_s2 + $0xc8] ss:$16 sps:$4 sm:$0xff]  }
 0x370   :  { %5684 = vtanh.f32 %v5311_v47  ;;  %v1713_v52 = vpop.f32.mrb[15].mxu1  ;;  %v6609_v47 = vld [vmem:[%s7306_s2 + $0xcc] ss:$16 sps:$4 sm:$0xff]   ;;  %v6627_v49 = vld [vmem:[%s7306_s2 + $0xe8] ss:$16 sps:$4 sm:$0xff]  }
 0x371   :  { %v4789_v54 = vmul.f32 -1.442695, %v5312_v60  ;;  %v6621_v60 = vld [vmem:[%s7306_s2 + $0xec] ss:$16 sps:$4 sm:$0xff]   ;;  %v5544_v52 = vld [vmem:[%s7308_s4] sm:$0xff]  }
 0x372   :  { %5202 = vmatpush3.bf16.msra.mxu1 %v5544_v52  ;;  %v1294_v52 = vld [vmem:[%s7309_s3] sm:$0xf] }
 0x373   :  { %5686 = vpow2.f32 %v4789_v54  ;;  %5203 = vmatprep.subr.bf16.mxu1 %v7312_v46  ;;  %v5545_v54 = vld [vmem:[%s7308_s4 + $0x8] sm:$0xff]  }
 0x376   :  { %5204 = vmatpush3.bf16.msra.mxu1 %v5545_v54 }
 0x377   :  { %5205 = vmatprep.subr.bf16.mxu1 %v7312_v46 }
 0x37a   :  { %v5685_v0 = vpop.eup %5684  ;;  %5206 = vmatpush3.bf16.msra.mxu1 %v5546_v55 }
 0x37b   :  { %v1739_v50 = vmul.f32 %v5685_v0, %v5683_v61  ;;  %5207 = vmatprep.subr.bf16.mxu1 %v7312_v46  ;;  %v5547_v61 = vld [vmem:[%s7308_s4 + $0x18] sm:$0xff]   ;;  %v5548_v0 = vld [vmem:[%s7308_s4 + $0x20] sm:$0xff]  }
 0x37d   :  { %v5687_v53 = vpop.eup %5686  ;;  %v6416_v2 = vadd.f32 %v1739_v50, %v1738_v44  ;;  %v5549_v44 = vld [vmem:[%s7308_s4 + $0x28] sm:$0xff]   ;;  %v5550_v50 = vld [vmem:[%s7308_s4 + $0x30] sm:$0xff]  }
 0x37e   :  { %v1735_v12 = vadd.f32 1.0, %v5687_v53  ;;  %5208 = vmatpush3.bf16.msra.mxu1 %v5547_v61  ;;  %v5551_v53 = vld [vmem:[%s7308_s4 + $0x38] sm:$0xff]  }
 0x37f   :  { %5688 = vtanh.f32 %v6416_v2  ;;  %5209 = vmatprep.subr.bf16.mxu1 %v7312_v46 }
 0x380   :  { %5690 = vrcp.f32 %v1735_v12 }
 0x382   :  { %5210 = vmatpush3.bf16.msra.mxu1 %v5548_v0  ;;  %v1303_v0 = vrot.slane %v1294_v52, %v6182_v58 }
 0x383   :  { %5211 = vmatprep.subr.bf16.mxu1 %v7312_v46 }
 0x386   :  { %5212 = vmatpush3.bf16.msra.mxu1 %v5549_v44 }
 0x387   :  { %5213 = vmatprep.subr.bf16.mxu1 %v7312_v46 }
 0x389   :  { %v5689_v15 = vpop.eup %5688 }
 0x38a   :  { %v5691_v22 = vpop.eup %5690  ;;  %5214 = vmatpush3.bf16.msra.mxu1 %v5550_v50 }
 0x38b   :  { %v1742_v25 = vmul.f32 %v5691_v22, %v5689_v15  ;;  %5215 = vmatprep.subr.bf16.mxu1 %v7312_v46 }
 0x38d   :  { %v6419_v26 = vpack.c.bf16 %v1742_v25, %v1742_v25 }
 0x38e   :  { %5216 = vmatpush3.bf16.msra.mxu1 %v5551_v53 }
 0x38f   :  { %5198 = vmatmul.mubr.bf16.vlgmr.msra.gmra.mrb[20].mxu0 %v6419_v26  ;;  %2525 = vmatprep.subr.bf16.mxu1 %v6318_v16  ;;  %v1299_v16 = vrot.slane %v1294_v52, %v6177_v56 }
 0x390   :  { %1943 = vmatpush1.bf16.msra.mxu0 %v6323_v17  ;;  %1974 = vmatprep.mubr.bf16.mxu0 %v7314_v1 }
 0x391   :  { %1944 = vmatprep.subr.bf16.mxu0 %v6330_v18 }
 0x394   :  { %1945 = vmatpush1.bf16.msra.mxu0 %v6335_v19 }
 0x395   :  { %1983 = vmatprep.subr.bf16.mxu0 %v6342_v20 }
 0x397   :  { %4809 = vmatmul.mubr.msk.bf16.vlgmr.msra.gmra.mrb[24].mxu0 %vm101_vm0, %v4800_v13 }
 0x398   :  { %1984 = vmatpush1.bf16.msra.mxu0 %v6347_v21  ;;  %2015 = vmatprep.mubr.bf16.mxu0 %v7314_v1 }
 0x399   :  { %1985 = vmatprep.subr.bf16.mxu0 %v6358_v23 }
 0x39c   :  { %1986 = vmatpush1.bf16.msra.mxu0 %v6364_v24 }
 0x39d   :  { %2216 = vmatprep.subr.bf16.mxu0 %v6437_v27 }
 0x39f   :  { %4810 = vmatmul.mubr.msk.bf16.vlgmr.msra.gmra.mrb[28].mxu0 %vm101_vm0, %v4800_v13 }
 0x3a0   :  { %2217 = vmatpush1.bf16.msra.mxu0 %v6443_v28  ;;  %2248 = vmatprep.mubr.bf16.mxu0 %v7314_v1 }
 0x3a1   :  { %2218 = vmatprep.subr.bf16.mxu0 %v6449_v29 }
 0x3a4   :  { %2219 = vmatpush1.bf16.msra.mxu0 %v6456_v30 }
 0x3a5   :  { %2220 = vmatprep.subr.bf16.mxu0 %v6463_v31 }
 0x3a8   :  { %2221 = vmatpush1.bf16.msra.mxu0 %v6469_v32 }
 0x3a9   :  { %2222 = vmatprep.subr.bf16.mxu0 %v6475_v33 }
 0x3ac   :  { %2223 = vmatpush1.bf16.msra.mxu0 %v6481_v35 }
 0x3ad   :  { %2224 = vmatprep.subr.bf16.mxu0 %v6487_v36 }
 0x3b0   :  { %2225 = vmatpush1.bf16.msra.mxu0 %v6493_v37 }
 0x3b1   :  { %2226 = vmatprep.subr.bf16.mxu0 %v6499_v38 }
 0x3b4   :  { %2227 = vmatpush1.bf16.msra.mxu0 %v6505_v39 }
 0x3b5   :  { %2228 = vmatprep.subr.bf16.mxu0 %v6511_v40 }
 0x3b8   :  { %2229 = vmatpush1.bf16.msra.mxu0 %v6517_v41 }
 0x3b9   :  { %2230 = vmatprep.subr.bf16.mxu0 %v6523_v42 }
 0x3bc   :  { %2231 = vmatpush1.bf16.msra.mxu0 %v6529_v57 }
 0x3bd   :  { %2257 = vmatprep.subr.bf16.mxu0 %v6535_v10 }
 0x3bf   :  { %2249 = vmatmul.mubr.bf16.vlgmr.msra.gmra.mrb[12].mxu0 %v6419_v26 }
 0x3c0   :  { %2258 = vmatpush1.bf16.msra.mxu0 %v6541_v62  ;;  %2289 = vmatprep.mubr.bf16.mxu0 %v7314_v1 }
 0x3c1   :  { %2259 = vmatprep.subr.bf16.mxu0 %v6547_v3 }
 0x3c4   :  { %2260 = vmatpush1.bf16.msra.mxu0 %v6554_v4 }
 0x3c5   :  { %2261 = vmatprep.subr.bf16.mxu0 %v6561_v5 }
 0x3c8   :  { %2262 = vmatpush1.bf16.msra.mxu0 %v6567_v6 }
 0x3c9   :  { %2263 = vmatprep.subr.bf16.mxu0 %v6573_v7 }
 0x3cc   :  { %2264 = vmatpush1.bf16.msra.mxu0 %v6579_v8 }
 0x3cd   :  { %2265 = vmatprep.subr.bf16.mxu0 %v6585_v9 }
 0x3d0   :  { %2266 = vmatpush1.bf16.msra.mxu0 %v6591_v11 }
 0x3d1   :  { %2267 = vmatprep.subr.bf16.mxu0 %v6597_v43 }
 0x3d4   :  { %2268 = vmatpush1.bf16.msra.mxu0 %v6603_v45 }
 0x3d5   :  { %2269 = vmatprep.subr.bf16.mxu0 %v6609_v47 }
 0x3d8   :  { %2270 = vmatpush1.bf16.msra.mxu0 %v6615_v59 }
 0x3d9   :  { %2271 = vmatprep.subr.bf16.mxu0 %v6621_v60 }
 0x3dc   :  { %2272 = vmatpush1.bf16.msra.mxu0 %v6627_v49 }
 0x3dd   :  { %2799 = vmatprep.subr.bf16.mxu0 %v6437_v27 }
 0x3df   :  { %2290 = vmatmul.mubr.bf16.vlgmr.msra.gmra.mrb[16].mxu0 %v6419_v26 }
 0x3e0   :  { %2800 = vmatpush1.bf16.msra.mxu0 %v6443_v28  ;;  %2831 = vmatprep.mubr.bf16.mxu0 %v7314_v1  ;;  %v1311_v1 = vrot.slane %v1294_v52, %v6190_v63 }
 0x3e1   :  { %2801 = vmatprep.subr.bf16.mxu0 %v6449_v29 }
 0x3e4   :  { %2802 = vmatpush1.bf16.msra.mxu0 %v6456_v30 }
 0x3e5   :  { %2803 = vmatprep.subr.bf16.mxu0 %v6463_v31 }
 0x3e8   :  { %2804 = vmatpush1.bf16.msra.mxu0 %v6469_v32 }
 0x3e9   :  { %2805 = vmatprep.subr.bf16.mxu0 %v6475_v33 }
 0x3ec   :  { %2806 = vmatpush1.bf16.msra.mxu0 %v6481_v35 }
 0x3ed   :  { %2807 = vmatprep.subr.bf16.mxu0 %v6487_v36 }
 0x3f0   :  { %2808 = vmatpush1.bf16.msra.mxu0 %v6493_v37 }
 0x3f1   :  { %2809 = vmatprep.subr.bf16.mxu0 %v6499_v38 }
 0x3f4   :  { %2810 = vmatpush1.bf16.msra.mxu0 %v6505_v39 }
 0x3f5   :  { %2811 = vmatprep.subr.bf16.mxu0 %v6511_v40 }
 0x3f8   :  { %2812 = vmatpush1.bf16.msra.mxu0 %v6517_v41 }
 0x3f9   :  { %2813 = vmatprep.subr.bf16.mxu0 %v6523_v42 }
 0x3fc   :  { %2814 = vmatpush1.bf16.msra.mxu0 %v6529_v57 }
 0x3fd   :  { %2840 = vmatprep.subr.bf16.mxu0 %v6535_v10 }
 0x462   :  { %v1849_v12 = vpop.f32.mrb[20].mxu0 }
 0x463   :  { %v6683_v15 = vadd.f32 %v6261_v48, %v1849_v12  ;;  %v5199_v22 = vpop.f32.mrb[21].mxu0 }
 0x464   :  { %v1852_v25 = vpop.f32.mrb[22].mxu0 }
 0x465   :  { %7319 = vst [vmem:[#allocation5_spill] sm:$0xff] %v6683_v15  ;;  %1855 = vmax.xlane.f32.xlu1 %v6683_v15  ;;  %v5200_v26 = vpop.f32.mrb[23].mxu0 }
 0x466   :  { %v1307_v26 = vrot.slane %v1294_v52, %v6197_v14 }
 0x492   :  { %v2250_v13 = vpop.f32.mrb[12].mxu0 }
 0x493   :  { %v2252_v54 = vpop.f32.mrb[13].mxu0  ;;  %v5313_v48 = vadd.f32 %v2250_v13, %v1299_v16 }
 0x494   :  { %v2254_v55 = vpop.f32.mrb[14].mxu0  ;;  %v5314_v44 = vadd.f32 %v2252_v54, %v1303_v0 }
 0x495   :  { %v2255_v61 = vpop.f32.mrb[15].mxu0  ;;  %v4843_v53 = vmul.f32 -1.442695, %v5313_v48 }
 0x496   :  { %v4844_v50 = vmul.f32 -1.442695, %v5314_v44 }
 0x498   :  { %5692 = vpow2.f32 %v4844_v50 }
 0x499   :  { %5694 = vpow2.f32 %v4843_v53 }
 0x4a2   :  { %v5693_v12 = vpop.eup %5692 }
 0x4a3   :  { %v5695_v22 = vpop.eup %5694  ;;  %v2311_v25 = vadd.f32 1.0, %v5693_v12 }
 0x4a4   :  { %v2305_v46 = vadd.f32 1.0, %v5695_v22 }
 0x4a5   :  { %5696 = vrcp.f32 %v2311_v25 }
 0x4a6   :  { %5698 = vrcp.f32 %v2305_v46 }
 0x4af   :  { %v5697_v16 = vpop.eup %5696 }
 0x4b0   :  { %v5699_v44 = vpop.eup %5698  ;;  %v2321_v50 = vmul.f32 %v5697_v16, %v6416_v2  ;;  %v5557_v2 = vld [vmem:[%s7308_s4 + $0x28] sm:$0xff]  }
 0x4b2   :  { %v2291_v55 = vpop.f32.mrb[16].mxu0 }
 0x4b3   :  { %v5315_v61 = vadd.f32 %v2291_v55, %v1307_v26  ;;  %v2293_v34 = vpop.f32.mrb[17].mxu0  ;;  %v5558_v26 = vld [vmem:[%s7308_s4 + $0x30] sm:$0xff]   ;;  %v5559_v55 = vld [vmem:[%s7308_s4 + $0x38] sm:$0xff]  }
 0x4b4   :  { %v5316_v15 = vadd.f32 %v2293_v34, %v1311_v1  ;;  %v2295_v54 = vpop.f32.mrb[18].mxu0 }
 0x4b5   :  { %5700 = vtanh.f32 %v5315_v61  ;;  %v2296_v13 = vpop.f32.mrb[19].mxu0  ;;  %v6767_v61 = vld [vmem:[%s7305_s1 + $0x4] ss:$16 sps:$4 sm:$0xff]   ;;  %v6773_v54 = vld [vmem:[%s7310_s5] ss:$0 sm:$0xff] }
 0x4b6   :  { %v4845_v0 = vmul.f32 -1.442695, %v5316_v15  ;;  %v7320_v15 = vmov 0  }
 0x4b8   :  { %5702 = vpow2.f32 %v4845_v0 }
 0x4bf   :  { %v5701_v48 = vpop.eup %5700 }
 0x4c0   :  { %v2322_v53 = vmul.f32 %v5701_v48, %v5699_v44  ;;  %v1877_v44 = vld [vmem:[%s7309_s3] sm:$0xf] }
 0x4c2   :  { %v5703_v12 = vpop.eup %5702  ;;  %v6694_v22 = vadd.f32 %v2322_v53, %v2321_v50 }
 0x4c3   :  { %v2318_v52 = vadd.f32 1.0, %v5703_v12 }
 0x4c4   :  { %5704 = vtanh.f32 %v6694_v22 }
 0x4c5   :  { %5706 = vrcp.f32 %v2318_v52 }
 0x4ce   :  { %v5705_v46 = vpop.eup %5704 }
 0x4cf   :  { %v5707_v1 = vpop.eup %5706 }
 0x4d0   :  { %v2325_v34 = vmul.f32 %v5707_v1, %v5705_v46  ;;  %v1886_v1 = vrot.slane %v1877_v44, %v6182_v58 }
 0x4d2   :  { %v2326_v25 = vpack.c.bf16 %v2325_v34, %v2325_v34  ;;  %v1882_v34 = vrot.slane %v1877_v44, %v6177_v56 }
 0x4d4   :  { %5218 = vmatmul.mubr.bf16.vlgmr.msra.gmra.mrb[20].mxu1 %v2326_v25  ;;  %2832 = vmatmul.mubr.bf16.vlgmr.msra.gmra.mrb[24].mxu0 %v2326_v25 }
 0x4d5   :  { %2841 = vmatpush1.bf16.msra.mxu0 %v6541_v62  ;;  %2872 = vmatprep.mubr.bf16.mxu0 %v7320_v15 }
 0x4d6   :  { %2842 = vmatprep.subr.bf16.mxu0 %v6547_v3  ;;  %2526 = vmatpush1.bf16.msra.mxu1 %v6323_v17  ;;  %v7321_v17 = vmov 0.0  }
 0x4d7   :  { %2527 = vmatprep.subr.bf16.mxu1 %v6330_v18  ;;  %2557 = vmatprep.mubr.bf16.mxu1 %v7320_v15  ;;  %v4856_v18 = vld [vmem:[%s7307_s0 + $0x14] sm:$0xf] }
 0x4d9   :  { %2843 = vmatpush1.bf16.msra.mxu0 %v6554_v4 }
 0x4da   :  { %2844 = vmatprep.subr.bf16.mxu0 %v6561_v5  ;;  %2528 = vmatpush1.bf16.msra.mxu1 %v6335_v19  ;;  %v5552_v19 = vld [vmem:[%s7308_s4] sm:$0xff]  }
 0x4db   :  { %2566 = vmatprep.subr.bf16.mxu1 %v6342_v20  ;;  %v5553_v20 = vld [vmem:[%s7308_s4 + $0x8] sm:$0xff]  }
 0x4dd   :  { %2845 = vmatpush1.bf16.msra.mxu0 %v6567_v6  ;;  %4865 = vmatmul.mubr.msk.bf16.vlgmr.msra.gmra.mrb[24].mxu1 %vm101_vm0, %v4856_v18 }
 0x4de   :  { %2846 = vmatprep.subr.bf16.mxu0 %v6573_v7  ;;  %2567 = vmatpush1.bf16.msra.mxu1 %v6347_v21  ;;  %v5554_v21 = vld [vmem:[%s7308_s4 + $0x10] sm:$0xff]  }
 0x4df   :  { %2598 = vmatprep.mubr.bf16.mxu1 %v7320_v15  ;;  %2568 = vmatprep.subr.bf16.mxu1 %v6358_v23  ;;  %v5555_v23 = vld [vmem:[%s7308_s4 + $0x18] sm:$0xff]  }
 0x4e1   :  { %2847 = vmatpush1.bf16.msra.mxu0 %v6579_v8 }
 0x4e2   :  { %2848 = vmatprep.subr.bf16.mxu0 %v6585_v9  ;;  %2569 = vmatpush1.bf16.msra.mxu1 %v6364_v24  ;;  %v5556_v24 = vld [vmem:[%s7308_s4 + $0x20] sm:$0xff]  }
 0x4e3   :  { %5221 = vmatprep.subr.bf16.mxu1 %v7321_v17 }
 0x4e5   :  { %2849 = vmatpush1.bf16.msra.mxu0 %v6591_v11  ;;  %4866 = vmatmul.mubr.msk.bf16.vlgmr.msra.gmra.mrb[28].mxu1 %vm101_vm0, %v4856_v18 }
 0x4e6   :  { %2850 = vmatprep.subr.bf16.mxu0 %v6597_v43  ;;  %5222 = vmatpush3.bf16.msra.mxu1 %v5552_v19 }
 0x4e7   :  { %5237 = vmatprep.mubr.msk.bf16.mxu1 %vm5808_vm1, %v7321_v17  ;;  %5223 = vmatprep.subr.bf16.mxu1 %v7321_v17 }
 0x4e9   :  { %2851 = vmatpush1.bf16.msra.mxu0 %v6603_v45 }
 0x4ea   :  { %2852 = vmatprep.subr.bf16.mxu0 %v6609_v47  ;;  %5224 = vmatpush3.bf16.msra.mxu1 %v5553_v20 }
 0x4eb   :  { %5225 = vmatprep.subr.bf16.mxu1 %v7321_v17 }
 0x4ed   :  { %2853 = vmatpush1.bf16.msra.mxu0 %v6615_v59 }
 0x4ee   :  { %2854 = vmatprep.subr.bf16.mxu0 %v6621_v60  ;;  %5226 = vmatpush3.bf16.msra.mxu1 %v5554_v21 }
 0x4ef   :  { %5227 = vmatprep.subr.bf16.mxu1 %v7321_v17 }
 0x4f1   :  { %2855 = vmatpush1.bf16.msra.mxu0 %v6627_v49 }
 0x4f2   :  { %5241 = vmatprep.subr.bf16.mxu0 %v7321_v17  ;;  %5228 = vmatpush3.bf16.msra.mxu1 %v5555_v23 }
 0x4f3   :  { %5229 = vmatprep.subr.bf16.mxu1 %v7321_v17 }
 0x4f4   :  { %2873 = vmatmul.mubr.bf16.vlgmr.msra.gmra.mrb[28].mxu0 %v2326_v25 }
 0x4f5   :  { %5257 = vmatprep.mubr.msk.bf16.mxu0 %vm5808_vm1, %v7321_v17 }
 0x4f6   :  { %5230 = vmatpush3.bf16.msra.mxu1 %v5556_v24 }
 0x4f7   :  { %5231 = vmatprep.subr.bf16.mxu1 %v7321_v17 }
 0x4fa   :  { %5232 = vmatpush3.bf16.msra.mxu1 %v5557_v2  ;;  %v1890_v2 = vrot.slane %v1877_v44, %v6197_v14 }
 0x4fb   :  { %5233 = vmatprep.subr.bf16.mxu1 %v7321_v17 }
 0x4fe   :  { %5234 = vmatpush3.bf16.msra.mxu1 %v5558_v26 }
 0x4ff   :  { %5235 = vmatprep.subr.bf16.mxu1 %v7321_v17 }
 0x502   :  { %5236 = vmatpush3.bf16.msra.mxu1 %v5559_v55  ;;  %v1894_v55 = vrot.slane %v1877_v44, %v6190_v63 }
 0x503   :  { %3108 = vmatprep.subr.bf16.mxu1 %v6767_v61 }
 0x5a7   :  { %v2432_v13 = vpop.f32.mrb[20].mxu1  ;;  %v2833_v0 = vpop.f32.mrb[24].mxu0 }
 0x5a8   :  { %v6776_v16 = vadd.f32 %v6773_v54, %v2432_v13  ;;  %v5219_v48 = vpop.f32.mrb[21].mxu1  ;;  %v2835_v50 = vpop.f32.mrb[25].mxu0  ;;  %v5317_v18 = vadd.f32 %v2833_v0, %v1882_v34 }
 0x5a9   :  { %v2435_v53 = vpop.f32.mrb[22].mxu1  ;;  %v2837_v12 = vpop.f32.mrb[26].mxu0  ;;  %v5318_v25 = vadd.f32 %v2835_v50, %v1886_v1 }
 0x5aa   :  { %2438 = vmax.xlane.f32.xlu1 %v6776_v16  ;;  %v5220_v52 = vpop.f32.mrb[23].mxu1  ;;  %v2838_v46 = vpop.f32.mrb[27].mxu0  ;;  %v4899_v20 = vmul.f32 -1.442695, %v5317_v18 }
 0x5ab   :  { %v4900_v19 = vmul.f32 -1.442695, %v5318_v25 }
 0x5ad   :  { %5708 = vpow2.f32 %v4900_v19 }
 0x5ae   :  { %5710 = vpow2.f32 %v4899_v20 }
 0x5b7   :  { %v5709_v21 = vpop.eup %5708 }
 0x5b8   :  { %v5711_v23 = vpop.eup %5710  ;;  %v2894_v24 = vadd.f32 1.0, %v5709_v21 }
 0x5b9   :  { %v2888_v26 = vadd.f32 1.0, %v5711_v23 }
 0x5ba   :  { %5712 = vrcp.f32 %v2894_v24 }
 0x5bb   :  { %5714 = vrcp.f32 %v2888_v26 }
 0x5c4   :  { %v5713_v46 = vpop.eup %5712 }
 0x5c5   :  { %v5715_v1 = vpop.eup %5714  ;;  %v2904_v25 = vmul.f32 %v5713_v46, %v6694_v22  ;;  %v6798_v22 = vld [vmem:[%s7305_s1 + $0x24] ss:$16 sps:$4 sm:$0xff]  }
 0x5c7   :  { %v2874_v13 = vpop.f32.mrb[28].mxu0 }
 0x5c8   :  { %v5319_v48 = vadd.f32 %v2874_v13, %v1890_v2  ;;  %v2876_v53 = vpop.f32.mrb[29].mxu0  ;;  %v6793_v2 = vld [vmem:[%s7305_s1] ss:$16 sps:$4 sm:$0xff]   ;;  %v6811_v13 = vld [vmem:[%s7305_s1 + $0xc] ss:$16 sps:$4 sm:$0xff]  }
 0x5c9   :  { %v5320_v12 = vadd.f32 %v2876_v53, %v1894_v55  ;;  %v2878_v50 = vpop.f32.mrb[30].mxu0  ;;  %v6804_v55 = vld [vmem:[%s7305_s1 + $0x20] ss:$16 sps:$4 sm:$0xff]   ;;  %v4912_v53 = vld [vmem:[%s7307_s0 + $0x18] sm:$0xf] }
 0x5ca   :  { %5716 = vtanh.f32 %v5319_v48  ;;  %v2879_v0 = vpop.f32.mrb[31].mxu0  ;;  %v6817_v48 = vld [vmem:[%s7305_s1 + $0x8] ss:$16 sps:$4 sm:$0xff]  }
 0x5cb   :  { %v4901_v52 = vmul.f32 -1.442695, %v5320_v12  ;;  %v6826_v12 = vld [vmem:[%s7305_s1 + $0x2c] ss:$16 sps:$4 sm:$0xff]   ;;  %v6833_v50 = vld [vmem:[%s7305_s1 + $0x28] ss:$16 sps:$4 sm:$0xff]  }
 0x5cd   :  { %5718 = vpow2.f32 %v4901_v52 }
 0x5d4   :  { %v5717_v34 = vpop.eup %5716 }
 0x5d5   :  { %v2905_v18 = vmul.f32 %v5717_v34, %v5715_v1 }
 0x5d7   :  { %v5719_v19 = vpop.eup %5718  ;;  %v6787_v20 = vadd.f32 %v2905_v18, %v2904_v25 }
 0x5d8   :  { %v2901_v44 = vadd.f32 1.0, %v5719_v19 }
 0x5d9   :  { %5720 = vtanh.f32 %v6787_v20 }
 0x5da   :  { %5722 = vrcp.f32 %v2901_v44 }
 0x5e3   :  { %v5721_v21 = vpop.eup %5720 }
 0x5e4   :  { %v5723_v23 = vpop.eup %5722 }
 0x5e5   :  { %v2908_v24 = vmul.f32 %v5723_v23, %v5721_v21 }
 0x5e7   :  { %v2909_v26 = vpack.c.bf16 %v2908_v24, %v2908_v24 }
 0x5e9   :  { %5238 = vmatmul.mubr.bf16.vlgmr.msra.gmra.mrb[32].mxu1 %v2909_v26 }
 0x5ea   :  { %3109 = vmatpush1.bf16.msra.mxu1 %v6793_v2  ;;  %3140 = vmatprep.mubr.bf16.mxu1 %v7320_v15 }
 0x5eb   :  { %3110 = vmatprep.subr.bf16.mxu1 %v6798_v22 }
 0x5ee   :  { %3111 = vmatpush1.bf16.msra.mxu1 %v6804_v55 }
 0x5ef   :  { %3149 = vmatprep.subr.bf16.mxu1 %v6811_v13 }
 0x5f1   :  { %4921 = vmatmul.mubr.msk.bf16.vlgmr.msra.gmra.mrb[36].mxu1 %vm101_vm0, %v4912_v53 }
 0x5f2   :  { %3150 = vmatpush1.bf16.msra.mxu1 %v6817_v48  ;;  %3181 = vmatprep.mubr.bf16.mxu1 %v7320_v15 }
 0x5f3   :  { %3151 = vmatprep.subr.bf16.mxu1 %v6826_v12 }
 0x5f6   :  { %3152 = vmatpush1.bf16.msra.mxu1 %v6833_v50 }
 0x5f7   :  { %3382 = vmatprep.subr.bf16.mxu1 %v6437_v27  ;;  %v6877_v27 = vld [vmem:[%s7306_s2 + $0x4] ss:$16 sps:$4 sm:$0xff]  }
 0x5f9   :  { %4922 = vmatmul.mubr.msk.bf16.vlgmr.msra.gmra.mrb[40].mxu1 %vm101_vm0, %v4912_v53 }
 0x5fa   :  { %3383 = vmatpush1.bf16.msra.mxu1 %v6443_v28  ;;  %3414 = vmatprep.mubr.bf16.mxu1 %v7320_v15  ;;  %v6882_v28 = vld [vmem:[%s7306_s2] ss:$16 sps:$4 sm:$0xff]  }
 0x5fb   :  { %3384 = vmatprep.subr.bf16.mxu1 %v6449_v29  ;;  %v5575_v29 = vld [vmem:[%s7308_s4] sm:$0xff]  }
 0x5fc   :  { %5242 = vmatpush3.bf16.msra.mxu0 %v5575_v29 }
 0x5fd   :  { %5243 = vmatprep.subr.bf16.mxu0 %v7321_v17 }
 0x5fe   :  { %3385 = vmatpush1.bf16.msra.mxu1 %v6456_v30  ;;  %v6892_v30 = vld [vmem:[%s7306_s2 + $0x24] ss:$16 sps:$4 sm:$0xff]  }
 0x5ff   :  { %3386 = vmatprep.subr.bf16.mxu1 %v6463_v31  ;;  %v6897_v31 = vld [vmem:[%s7306_s2 + $0x20] ss:$16 sps:$4 sm:$0xff]  }
 0x602   :  { %3387 = vmatpush1.bf16.msra.mxu1 %v6469_v32  ;;  %v5579_v32 = vld [vmem:[%s7308_s4 + $0x8] sm:$0xff]  }
 0x603   :  { %3388 = vmatprep.subr.bf16.mxu1 %v6475_v33  ;;  %5244 = vmatpush3.bf16.msra.mxu0 %v5579_v32  ;;  %v6908_v33 = vld [vmem:[%s7306_s2 + $0x44] ss:$16 sps:$4 sm:$0xff]  }
 0x604   :  { %5245 = vmatprep.subr.bf16.mxu0 %v7321_v17 }
 0x606   :  { %3389 = vmatpush1.bf16.msra.mxu1 %v6481_v35  ;;  %v6913_v35 = vld [vmem:[%s7306_s2 + $0x40] ss:$16 sps:$4 sm:$0xff]  }
 0x607   :  { %3390 = vmatprep.subr.bf16.mxu1 %v6487_v36  ;;  %v5583_v36 = vld [vmem:[%s7308_s4 + $0x10] sm:$0xff]  }
 0x608   :  { %5246 = vmatpush3.bf16.msra.mxu0 %v5583_v36 }
 0x609   :  { %5247 = vmatprep.subr.bf16.mxu0 %v7321_v17 }
 0x60a   :  { %3391 = vmatpush1.bf16.msra.mxu1 %v6493_v37  ;;  %v6924_v37 = vld [vmem:[%s7306_s2 + $0x64] ss:$16 sps:$4 sm:$0xff]  }
 0x60b   :  { %3392 = vmatprep.subr.bf16.mxu1 %v6499_v38  ;;  %v6929_v38 = vld [vmem:[%s7306_s2 + $0x60] ss:$16 sps:$4 sm:$0xff]  }
 0x60e   :  { %3393 = vmatpush1.bf16.msra.mxu1 %v6505_v39  ;;  %v5587_v39 = vld [vmem:[%s7308_s4 + $0x18] sm:$0xff]  }
 0x60f   :  { %3394 = vmatprep.subr.bf16.mxu1 %v6511_v40  ;;  %5248 = vmatpush3.bf16.msra.mxu0 %v5587_v39  ;;  %v6940_v40 = vld [vmem:[%s7306_s2 + $0x84] ss:$16 sps:$4 sm:$0xff]  }
 0x610   :  { %5249 = vmatprep.subr.bf16.mxu0 %v7321_v17 }
 0x612   :  { %3395 = vmatpush1.bf16.msra.mxu1 %v6517_v41  ;;  %v6945_v41 = vld [vmem:[%s7306_s2 + $0x80] ss:$16 sps:$4 sm:$0xff]  }
 0x613   :  { %3396 = vmatprep.subr.bf16.mxu1 %v6523_v42  ;;  %v5591_v42 = vld [vmem:[%s7308_s4 + $0x20] sm:$0xff]  }
 0x614   :  { %5250 = vmatpush3.bf16.msra.mxu0 %v5591_v42 }
 0x615   :  { %5251 = vmatprep.subr.bf16.mxu0 %v7321_v17 }
 0x616   :  { %3397 = vmatpush1.bf16.msra.mxu1 %v6529_v57  ;;  %v6956_v57 = vld [vmem:[%s7306_s2 + $0xa0] ss:$16 sps:$4 sm:$0xff]  }
 0x617   :  { %3423 = vmatprep.subr.bf16.mxu1 %v6535_v10  ;;  %v6961_v10 = vld [vmem:[%s7306_s2 + $0xa4] ss:$16 sps:$4 sm:$0xff]  }
 0x619   :  { %3415 = vmatmul.mubr.bf16.vlgmr.msra.gmra.mrb[24].mxu1 %v2909_v26 }
 0x61a   :  { %3424 = vmatpush1.bf16.msra.mxu1 %v6541_v62  ;;  %3455 = vmatprep.mubr.bf16.mxu1 %v7320_v15  ;;  %v5595_v62 = vld [vmem:[%s7308_s4 + $0x28] sm:$0xff]  }
 0x61b   :  { %3425 = vmatprep.subr.bf16.mxu1 %v6547_v3  ;;  %v6970_v3 = vld [vmem:[%s7306_s2 + $0xc4] ss:$16 sps:$4 sm:$0xff]   ;;  %5252 = vmatpush3.bf16.msra.mxu0 %v5595_v62 }
 0x61c   :  { %5253 = vmatprep.subr.bf16.mxu0 %v7321_v17 }
 0x61e   :  { %3426 = vmatpush1.bf16.msra.mxu1 %v6554_v4  ;;  %v6977_v4 = vld [vmem:[%s7306_s2 + $0xc0] ss:$16 sps:$4 sm:$0xff]  }
 0x61f   :  { %3427 = vmatprep.subr.bf16.mxu1 %v6561_v5  ;;  %v5599_v5 = vld [vmem:[%s7308_s4 + $0x30] sm:$0xff]  }
 0x620   :  { %5254 = vmatpush3.bf16.msra.mxu0 %v5599_v5 }
 0x621   :  { %5255 = vmatprep.subr.bf16.mxu0 %v7321_v17 }
 0x622   :  { %3428 = vmatpush1.bf16.msra.mxu1 %v6567_v6  ;;  %v6986_v6 = vld [vmem:[%s7306_s2 + $0xe4] ss:$16 sps:$4 sm:$0xff]  }
 0x623   :  { %3429 = vmatprep.subr.bf16.mxu1 %v6573_v7  ;;  %v6993_v7 = vld [vmem:[%s7306_s2 + $0xe0] ss:$16 sps:$4 sm:$0xff]  }
 0x626   :  { %3430 = vmatpush1.bf16.msra.mxu1 %v6579_v8  ;;  %v5603_v8 = vld [vmem:[%s7308_s4 + $0x38] sm:$0xff]  }
 0x627   :  { %3431 = vmatprep.subr.bf16.mxu1 %v6585_v9  ;;  %v7002_v9 = vld [vmem:[%s7306_s2 + $0xc] ss:$16 sps:$4 sm:$0xff]   ;;  %5256 = vmatpush3.bf16.msra.mxu0 %v5603_v8 }
 0x628   :  { %3691 = vmatprep.subr.bf16.mxu0 %v6767_v61 }
 0x62a   :  { %3432 = vmatpush1.bf16.msra.mxu1 %v6591_v11 }
 0x62b   :  { %3433 = vmatprep.subr.bf16.mxu1 %v6597_v43 }
 0x62e   :  { %3434 = vmatpush1.bf16.msra.mxu1 %v6603_v45 }
 0x62f   :  { %3435 = vmatprep.subr.bf16.mxu1 %v6609_v47 }
 0x632   :  { %3436 = vmatpush1.bf16.msra.mxu1 %v6615_v59 }
 0x633   :  { %3437 = vmatprep.subr.bf16.mxu1 %v6621_v60 }
 0x636   :  { %3438 = vmatpush1.bf16.msra.mxu1 %v6627_v49  ;;  %v2460_v49 = vld [vmem:[%s7309_s3] sm:$0xf] }
 0x637   :  { %3965 = vmatprep.subr.bf16.mxu1 %v6877_v27  ;;  %v2469_v1 = vrot.slane %v2460_v49, %v6182_v58  ;;  %v2465_v61 = vrot.slane %v2460_v49, %v6177_v56  ;;  %v2473_v24 = vrot.slane %v2460_v49, %v6197_v14  ;;  %v2477_v53 = vrot.slane %v2460_v49, %v6190_v63 }
 0x639   :  { %3456 = vmatmul.mubr.bf16.vlgmr.msra.gmra.mrb[28].mxu1 %v2909_v26 }
 0x63a   :  { %3997 = vmatprep.mubr.bf16.mxu1 %v7320_v15  ;;  %3966 = vmatpush1.bf16.msra.mxu1 %v6882_v28 }
 0x63b   :  { %3967 = vmatprep.subr.bf16.mxu1 %v6892_v30 }
 0x63e   :  { %3968 = vmatpush1.bf16.msra.mxu1 %v6897_v31 }
 0x63f   :  { %3969 = vmatprep.subr.bf16.mxu1 %v6908_v33 }
 0x642   :  { %3970 = vmatpush1.bf16.msra.mxu1 %v6913_v35 }
 0x643   :  { %3971 = vmatprep.subr.bf16.mxu1 %v6924_v37 }
 0x646   :  { %3972 = vmatpush1.bf16.msra.mxu1 %v6929_v38 }
 0x647   :  { %3973 = vmatprep.subr.bf16.mxu1 %v6940_v40 }
 0x64a   :  { %3974 = vmatpush1.bf16.msra.mxu1 %v6945_v41 }
 0x64b   :  { %3975 = vmatprep.subr.bf16.mxu1 %v6961_v10 }
 0x64e   :  { %3976 = vmatpush1.bf16.msra.mxu1 %v6956_v57 }
 0x64f   :  { %3977 = vmatprep.subr.bf16.mxu1 %v6970_v3 }
 0x652   :  { %3978 = vmatpush1.bf16.msra.mxu1 %v6977_v4 }
 0x653   :  { %3979 = vmatprep.subr.bf16.mxu1 %v6986_v6 }
 0x656   :  { %3980 = vmatpush1.bf16.msra.mxu1 %v6993_v7 }
 0x657   :  { %4006 = vmatprep.subr.bf16.mxu1 %v7002_v9 }
 0x6bc   :  { %v3015_v11 = vpop.f32.mrb[32].mxu1 }
 0x6bd   :  { %v7009_v43 = vadd.f32 %v6773_v54, %v3015_v11  ;;  %v5239_v45 = vpop.f32.mrb[33].mxu1 }
 0x6be   :  { %v3018_v47 = vpop.f32.mrb[34].mxu1 }
 0x6bf   :  { %3021 = vmax.xlane.f32.xlu0 %v7009_v43  ;;  %v5240_v59 = vpop.f32.mrb[35].mxu1 }
 0x6ec   :  { %v3416_v60 = vpop.f32.mrb[24].mxu1 }
 0x6ed   :  { %v3418_v0 = vpop.f32.mrb[25].mxu1  ;;  %v5321_v25 = vadd.f32 %v3416_v60, %v2465_v61  ;;  %v7026_v61 = vld [vmem:[%s7306_s2 + $0x8] ss:$16 sps:$4 sm:$0xff]  }
 0x6ee   :  { %v3420_v52 = vpop.f32.mrb[26].mxu1  ;;  %v5322_v34 = vadd.f32 %v3418_v0, %v2469_v1 }
 0x6ef   :  { %v3421_v46 = vpop.f32.mrb[27].mxu1  ;;  %v4955_v19 = vmul.f32 -1.442695, %v5321_v25  ;;  %v7037_v25 = vld [vmem:[%s7306_s2 + $0x28] ss:$16 sps:$4 sm:$0xff]  }
 0x6f0   :  { %v4956_v18 = vmul.f32 -1.442695, %v5322_v34 }
 0x6f2   :  { %5724 = vpow2.f32 %v4956_v18  ;;  %v7044_v18 = vld [vmem:[%s7306_s2 + $0x4c] ss:$16 sps:$4 sm:$0xff]  }
 0x6f3   :  { %5726 = vpow2.f32 %v4955_v19  ;;  %v7053_v19 = vld [vmem:[%s7306_s2 + $0x48] ss:$16 sps:$4 sm:$0xff]  }
 0x6fc   :  { %v5725_v44 = vpop.eup %5724 }
 0x6fd   :  { %v5727_v21 = vpop.eup %5726  ;;  %v3477_v23 = vadd.f32 1.0, %v5725_v44  ;;  %v7059_v44 = vld [vmem:[%s7306_s2 + $0x6c] ss:$16 sps:$4 sm:$0xff]  }
 0x6fe   :  { %v3471_v26 = vadd.f32 1.0, %v5727_v21  ;;  %v7091_v21 = vld [vmem:[%s7306_s2 + $0xa8] ss:$16 sps:$4 sm:$0xff]  }
 0x6ff   :  { %5728 = vrcp.f32 %v3477_v23  ;;  %v7097_v23 = vld [vmem:[%s7306_s2 + $0xcc] ss:$16 sps:$4 sm:$0xff]  }
 0x700   :  { %5730 = vrcp.f32 %v3471_v26  ;;  %v7109_v26 = vld [vmem:[%s7306_s2 + $0xec] ss:$16 sps:$4 sm:$0xff]  }
 0x709   :  { %v5729_v8 = vpop.eup %5728 }
 0x70a   :  { %v5731_v11 = vpop.eup %5730  ;;  %v3487_v47 = vmul.f32 %v5729_v8, %v6787_v20  ;;  %v7031_v20 = vld [vmem:[%s7306_s2 + $0x2c] ss:$16 sps:$4 sm:$0xff]  }
 0x70c   :  { %v3457_v29 = vpop.f32.mrb[28].mxu1 }
 0x70d   :  { %v5323_v32 = vadd.f32 %v3457_v29, %v2473_v24  ;;  %v3459_v36 = vpop.f32.mrb[29].mxu1  ;;  %v7103_v24 = vld [vmem:[%s7306_s2 + $0xc8] ss:$16 sps:$4 sm:$0xff]   ;;  %v4968_v29 = vld [vmem:[%s7307_s0 + $0x1c] sm:$0xf] }
 0x70e   :  { %v5324_v39 = vadd.f32 %v3459_v36, %v2477_v53  ;;  %v3461_v42 = vpop.f32.mrb[30].mxu1  ;;  %v7115_v53 = vld [vmem:[%s7306_s2 + $0xe8] ss:$16 sps:$4 sm:$0xff]   ;;  %v5632_v36 = vld [vmem:[%s7308_s4 + $0x20] sm:$0xff]  }
 0x70f   :  { %5732 = vtanh.f32 %v5323_v32  ;;  %v3462_v62 = vpop.f32.mrb[31].mxu1  ;;  %v5628_v32 = vld [vmem:[%s7308_s4] sm:$0xff]   ;;  %v5634_v42 = vld [vmem:[%s7308_s4 + $0x30] sm:$0xff]  }
 0x710   :  { %v4957_v5 = vmul.f32 -1.442695, %v5324_v39  ;;  %v5633_v39 = vld [vmem:[%s7308_s4 + $0x28] sm:$0xff]   ;;  %v5635_v62 = vld [vmem:[%s7308_s4 + $0x38] sm:$0xff]  }
 0x712   :  { %5734 = vpow2.f32 %v4957_v5 }
 0x719   :  { %v5733_v45 = vpop.eup %5732 }
 0x71a   :  { %v3488_v59 = vmul.f32 %v5733_v45, %v5731_v11  ;;  %v3043_v45 = vld [vmem:[%s7309_s3] sm:$0xf] }
 0x71c   :  { %v5735_v60 = vpop.eup %5734  ;;  %v7020_v0 = vadd.f32 %v3488_v59, %v3487_v47 }
 0x71d   :  { %v3484_v49 = vadd.f32 1.0, %v5735_v60 }
 0x71e   :  { %5736 = vtanh.f32 %v7020_v0 }
 0x71f   :  { %5738 = vrcp.f32 %v3484_v49 }
 0x728   :  { %v5737_v52 = vpop.eup %5736 }
 0x729   :  { %v5739_v46 = vpop.eup %5738 }
 0x72a   :  { %v3491_v1 = vmul.f32 %v5739_v46, %v5737_v52 }
 0x72c   :  { %v3492_v34 = vpack.c.bf16 %v3491_v1, %v3491_v1  ;;  %v3052_v1 = vrot.slane %v3043_v45, %v6182_v58 }
 0x72e   :  { %5258 = vmatmul.mubr.bf16.vlgmr.msra.gmra.mrb[32].mxu0 %v3492_v34  ;;  %3998 = vmatmul.mubr.bf16.vlgmr.msra.gmra.mrb[36].mxu1 %v3492_v34 }
 0x72f   :  { %4007 = vmatpush1.bf16.msra.mxu1 %v7026_v61  ;;  %4038 = vmatprep.mubr.bf16.mxu1 %v7320_v15 }
 0x730   :  { %4008 = vmatprep.subr.bf16.mxu1 %v7031_v20  ;;  %3692 = vmatpush1.bf16.msra.mxu0 %v6793_v2  ;;  %v7067_v2 = vld [vmem:[%s7306_s2 + $0x68] ss:$16 sps:$4 sm:$0xff]  }
 0x731   :  { %3693 = vmatprep.subr.bf16.mxu0 %v6798_v22  ;;  %3723 = vmatprep.mubr.bf16.mxu0 %v7320_v15  ;;  %v7073_v22 = vld [vmem:[%s7306_s2 + $0x8c] ss:$16 sps:$4 sm:$0xff]  }
 0x733   :  { %4009 = vmatpush1.bf16.msra.mxu1 %v7037_v25 }
 0x734   :  { %4010 = vmatprep.subr.bf16.mxu1 %v7044_v18  ;;  %3694 = vmatpush1.bf16.msra.mxu0 %v6804_v55  ;;  %v7079_v55 = vld [vmem:[%s7306_s2 + $0x88] ss:$16 sps:$4 sm:$0xff]  }
 0x735   :  { %3732 = vmatprep.subr.bf16.mxu0 %v6811_v13  ;;  %v7085_v13 = vld [vmem:[%s7306_s2 + $0xac] ss:$16 sps:$4 sm:$0xff]  }
 0x737   :  { %4011 = vmatpush1.bf16.msra.mxu1 %v7053_v19  ;;  %4977 = vmatmul.mubr.msk.bf16.vlgmr.msra.gmra.mrb[36].mxu0 %vm101_vm0, %v4968_v29 }
 0x738   :  { %4012 = vmatprep.subr.bf16.mxu1 %v7059_v44  ;;  %3733 = vmatpush1.bf16.msra.mxu0 %v6817_v48  ;;  %v5629_v48 = vld [vmem:[%s7308_s4 + $0x8] sm:$0xff]  }
 0x739   :  { %3764 = vmatprep.mubr.bf16.mxu0 %v7320_v15  ;;  %3734 = vmatprep.subr.bf16.mxu0 %v6826_v12  ;;  %v5630_v12 = vld [vmem:[%s7308_s4 + $0x10] sm:$0xff]  }
 0x73b   :  { %4013 = vmatpush1.bf16.msra.mxu1 %v7067_v2 }
 0x73c   :  { %4014 = vmatprep.subr.bf16.mxu1 %v7073_v22  ;;  %3735 = vmatpush1.bf16.msra.mxu0 %v6833_v50  ;;  %v5631_v50 = vld [vmem:[%s7308_s4 + $0x18] sm:$0xff]  }
 0x73d   :  { %5261 = vmatprep.subr.bf16.mxu0 %v7321_v17 }
 0x73f   :  { %4015 = vmatpush1.bf16.msra.mxu1 %v7079_v55  ;;  %4978 = vmatmul.mubr.msk.bf16.vlgmr.msra.gmra.mrb[40].mxu0 %vm101_vm0, %v4968_v29 }
 0x740   :  { %4016 = vmatprep.subr.bf16.mxu1 %v7085_v13  ;;  %5262 = vmatpush3.bf16.msra.mxu0 %v5628_v32 }
 0x741   :  { %5277 = vmatprep.mubr.msk.bf16.mxu0 %vm5808_vm1, %v7321_v17  ;;  %5263 = vmatprep.subr.bf16.mxu0 %v7321_v17 }
 0x743   :  { %4017 = vmatpush1.bf16.msra.mxu1 %v7091_v21 }
 0x744   :  { %4018 = vmatprep.subr.bf16.mxu1 %v7097_v23  ;;  %5264 = vmatpush3.bf16.msra.mxu0 %v5629_v48 }
 0x745   :  { %5265 = vmatprep.subr.bf16.mxu0 %v7321_v17 }
 0x747   :  { %4019 = vmatpush1.bf16.msra.mxu1 %v7103_v24 }
 0x748   :  { %4020 = vmatprep.subr.bf16.mxu1 %v7109_v26  ;;  %5266 = vmatpush3.bf16.msra.mxu0 %v5630_v12 }
 0x749   :  { %5267 = vmatprep.subr.bf16.mxu0 %v7321_v17 }
 0x74b   :  { %4021 = vmatpush1.bf16.msra.mxu1 %v7115_v53 }
 0x74c   :  { %5281 = vmatprep.subr.bf16.mxu1 %v7321_v17  ;;  %5268 = vmatpush3.bf16.msra.mxu0 %v5631_v50 }
 0x74d   :  { %5269 = vmatprep.subr.bf16.mxu0 %v7321_v17 }
 0x74e   :  { %4039 = vmatmul.mubr.bf16.vlgmr.msra.gmra.mrb[40].mxu1 %v3492_v34 }
 0x74f   :  { %5297 = vmatprep.mubr.msk.bf16.mxu1 %vm5808_vm1, %v7321_v17 }
 0x750   :  { %5270 = vmatpush3.bf16.msra.mxu0 %v5632_v36  ;;  %v3056_v36 = vrot.slane %v3043_v45, %v6197_v14 }
 0x751   :  { %5271 = vmatprep.subr.bf16.mxu0 %v7321_v17 }
 0x754   :  { %5272 = vmatpush3.bf16.msra.mxu0 %v5633_v39 }
 0x755   :  { %5273 = vmatprep.subr.bf16.mxu0 %v7321_v17 }
 0x758   :  { %5274 = vmatpush3.bf16.msra.mxu0 %v5634_v42  ;;  %v3060_v42 = vrot.slane %v3043_v45, %v6190_v63 }
 0x759   :  { %5275 = vmatprep.subr.bf16.mxu0 %v7321_v17 }
 0x75c   :  { %5276 = vmatpush3.bf16.msra.mxu0 %v5635_v62 }
 0x75d   :  { %4391 = vmatprep.subr.bf16.mxu0 %v6877_v27  ;;  %v3048_v27 = vrot.slane %v3043_v45, %v6177_v56 }
 0x801   :  { %v3598_v5 = vpop.f32.mrb[32].mxu0  ;;  %v3999_v8 = vpop.f32.mrb[36].mxu1 }
 0x802   :  { %v7167_v11 = vadd.f32 %v6773_v54, %v3598_v5  ;;  %v5259_v47 = vpop.f32.mrb[33].mxu0  ;;  %v4001_v59 = vpop.f32.mrb[37].mxu1  ;;  %v5325_v29 = vadd.f32 %v3999_v8, %v3048_v27 }
 0x803   :  { %v3601_v60 = vpop.f32.mrb[34].mxu0  ;;  %v4003_v49 = vpop.f32.mrb[38].mxu1  ;;  %v5326_v34 = vadd.f32 %v4001_v59, %v3052_v1 }
 0x804   :  { %v4004_v52 = vpop.f32.mrb[39].mxu1  ;;  %3604 = vmax.xlane.f32.xlu1 %v7167_v11  ;;  %v5260_v46 = vpop.f32.mrb[35].mxu0  ;;  %v5011_v32 = vmul.f32 -1.442695, %v5325_v29 }
 0x805   :  { %v5012_v54 = vmul.f32 -1.442695, %v5326_v34 }
 0x807   :  { %5740 = vpow2.f32 %v5012_v54 }
 0x808   :  { %5742 = vpow2.f32 %v5011_v32 }
 0x811   :  { %v5741_v48 = vpop.eup %5740 }
 0x812   :  { %v5743_v12 = vpop.eup %5742  ;;  %v4060_v50 = vadd.f32 1.0, %v5741_v48 }
 0x813   :  { %v4054_v39 = vadd.f32 1.0, %v5743_v12 }
 0x814   :  { %5744 = vrcp.f32 %v4060_v50 }
 0x815   :  { %5746 = vrcp.f32 %v4054_v39 }
 0x81e   :  { %v5745_v52 = vpop.eup %5744 }
 0x81f   :  { %v5747_v46 = vpop.eup %5746  ;;  %v4070_v27 = vmul.f32 %v5745_v52, %v7020_v0 }
 0x821   :  { %v4040_v62 = vpop.f32.mrb[40].mxu1 }
 0x822   :  { %v5327_v5 = vadd.f32 %v4040_v62, %v3056_v36  ;;  %v4042_v47 = vpop.f32.mrb[41].mxu1 }
 0x823   :  { %v5328_v60 = vadd.f32 %v4042_v47, %v3060_v42  ;;  %v4044_v59 = vpop.f32.mrb[42].mxu1 }
 0x824   :  { %5748 = vtanh.f32 %v5327_v5  ;;  %v4045_v8 = vpop.f32.mrb[43].mxu1 }
 0x825   :  { %v5013_v49 = vmul.f32 -1.442695, %v5328_v60 }
 0x827   :  { %5750 = vpow2.f32 %v5013_v49 }
 0x82e   :  { %v5749_v1 = vpop.eup %5748 }
 0x82f   :  { %v4071_v34 = vmul.f32 %v5749_v1, %v5747_v46 }
 0x831   :  { %v5751_v29 = vpop.eup %5750  ;;  %v7178_v54 = vadd.f32 %v4071_v34, %v4070_v27 }
 0x832   :  { %v4067_v45 = vadd.f32 1.0, %v5751_v29 }
 0x833   :  { %5752 = vtanh.f32 %v7178_v54 }
 0x834   :  { %5754 = vrcp.f32 %v4067_v45 }
 0x83d   :  { %v5753_v32 = vpop.eup %5752 }
 0x83e   :  { %v5755_v48 = vpop.eup %5754 }
 0x83f   :  { %v4074_v12 = vmul.f32 %v5755_v48, %v5753_v32 }
 0x841   :  { %v4075_v50 = vpack.c.bf16 %v4074_v12, %v4074_v12 }
 0x843   :  { %5278 = vmatmul.mubr.bf16.vlgmr.msra.gmra.mrb[44].mxu0 %v4075_v50 }
 0x844   :  { %4392 = vmatpush1.bf16.msra.mxu0 %v6882_v28  ;;  %4423 = vmatprep.mubr.bf16.mxu0 %v7320_v15  ;;  %v5637_v28 = vld [vmem:[%s7308_s4 + $0x8] sm:$0xff]  }
 0x845   :  { %4393 = vmatprep.subr.bf16.mxu0 %v6892_v30  ;;  %v5638_v30 = vld [vmem:[%s7308_s4 + $0x10] sm:$0xff]  }
 0x848   :  { %4394 = vmatpush1.bf16.msra.mxu0 %v6897_v31  ;;  %v5639_v31 = vld [vmem:[%s7308_s4 + $0x18] sm:$0xff]  }
 0x849   :  { %4395 = vmatprep.subr.bf16.mxu0 %v6908_v33  ;;  %v5640_v33 = vld [vmem:[%s7308_s4 + $0x20] sm:$0xff]  }
 0x84c   :  { %4396 = vmatpush1.bf16.msra.mxu0 %v6913_v35  ;;  %v5641_v35 = vld [vmem:[%s7308_s4 + $0x28] sm:$0xff]  }
 0x84d   :  { %4397 = vmatprep.subr.bf16.mxu0 %v6924_v37  ;;  %v5642_v37 = vld [vmem:[%s7308_s4 + $0x30] sm:$0xff]  }
 0x850   :  { %4398 = vmatpush1.bf16.msra.mxu0 %v6929_v38  ;;  %v5643_v38 = vld [vmem:[%s7308_s4 + $0x38] sm:$0xff]  }
 0x851   :  { %4399 = vmatprep.subr.bf16.mxu0 %v6940_v40  ;;  %v691_v40 = vpop.xlane.xlu0 %690 }
 0x854   :  { %4400 = vmatpush1.bf16.msra.mxu0 %v6945_v41  ;;  %v7246_v41 = vsub.f32 %v6264_v51, %v691_v40  ;;  %v7261_v51 = vld [vmem:[%s7310_s5] ss:$0 sm:$0xff] }
 0x855   :  { %4401 = vmatprep.subr.bf16.mxu0 %v6961_v10  ;;  %v1856_v10 = vpop.xlane.xlu1 %1855 }
 0x858   :  { %4402 = vmatpush1.bf16.msra.mxu0 %v6956_v57  ;;  %v7248_v57 = vpop.xlane.xlu0 %1272 }
 0x859   :  { %4403 = vmatprep.subr.bf16.mxu0 %v6970_v3  ;;  %v693_v3 = vmul.f32 1.442695, %v7246_v41 }
 0x85b   :  { %5756 = vpow2.f32 %v693_v3 }
 0x85c   :  { %4404 = vmatpush1.bf16.msra.mxu0 %v6977_v4  ;;  %v7322_v4 = vld [vmem:[#allocation5_spill] sm:$0xff] }
 0x85d   :  { %4405 = vmatprep.subr.bf16.mxu0 %v6986_v6  ;;  %v7252_v6 = vsub.f32 %v7322_v4, %v1856_v10 }
 0x860   :  { %4406 = vmatpush1.bf16.msra.mxu0 %v6993_v7  ;;  %v3022_v7 = vpop.xlane.xlu0 %3021 }
 0x861   :  { %4432 = vmatprep.subr.bf16.mxu0 %v7002_v9  ;;  %v1858_v9 = vmul.f32 1.442695, %v7252_v6  ;;  %v7256_v0 = vsub.f32 %v7009_v43, %v3022_v7 }
 0x863   :  { %4424 = vmatmul.mubr.bf16.vlgmr.msra.gmra.mrb[36].mxu0 %v4075_v50  ;;  %5758 = vpow2.f32 %v1858_v9 }
 0x864   :  { %4433 = vmatpush1.bf16.msra.mxu0 %v7026_v61  ;;  %4464 = vmatprep.mubr.bf16.mxu0 %v7320_v15  ;;  %v5636_v15 = vld [vmem:[%s7308_s4] sm:$0xff]  }
 0x865   :  { %4434 = vmatprep.subr.bf16.mxu0 %v7031_v20  ;;  %5282 = vmatpush3.bf16.msra.mxu1 %v5636_v15 }
 0x866   :  { %5283 = vmatprep.subr.bf16.mxu1 %v7321_v17 }
 0x868   :  { %4435 = vmatpush1.bf16.msra.mxu0 %v7037_v25 }
 0x869   :  { %4436 = vmatprep.subr.bf16.mxu0 %v7044_v18  ;;  %5284 = vmatpush3.bf16.msra.mxu1 %v5637_v28 }
 0x86a   :  { %5285 = vmatprep.subr.bf16.mxu1 %v7321_v17 }
 0x86c   :  { %4437 = vmatpush1.bf16.msra.mxu0 %v7053_v19 }
 0x86d   :  { %4438 = vmatprep.subr.bf16.mxu0 %v7059_v44  ;;  %5286 = vmatpush3.bf16.msra.mxu1 %v5638_v30  ;;  %v5757_v44 = vpop.eup %5756 }
 0x86e   :  { %5287 = vmatprep.subr.bf16.mxu1 %v7321_v17  ;;  %v5759_v43 = vpop.eup %5758 }
 0x870   :  { %4439 = vmatpush1.bf16.msra.mxu0 %v7067_v2 }
 0x871   :  { %4440 = vmatprep.subr.bf16.mxu0 %v7073_v22  ;;  %5288 = vmatpush3.bf16.msra.mxu1 %v5639_v31 }
 0x872   :  { %5289 = vmatprep.subr.bf16.mxu1 %v7321_v17 }
 0x874   :  { %4441 = vmatpush1.bf16.msra.mxu0 %v7079_v55  ;;  %v3626_v55 = vld [vmem:[%s7309_s3] sm:$0xf] }
 0x875   :  { %4442 = vmatprep.subr.bf16.mxu0 %v7085_v13  ;;  %5290 = vmatpush3.bf16.msra.mxu1 %v5640_v33  ;;  %v3639_v60 = vrot.slane %v3626_v55, %v6197_v14  ;;  %v3643_v8 = vrot.slane %v3626_v55, %v6190_v63 }
 0x876   :  { %5291 = vmatprep.subr.bf16.mxu1 %v7321_v17 }
 0x878   :  { %4443 = vmatpush1.bf16.msra.mxu0 %v7091_v21 }
 0x879   :  { %4444 = vmatprep.subr.bf16.mxu0 %v7097_v23  ;;  %5292 = vmatpush3.bf16.msra.mxu1 %v5641_v35 }
 0x87a   :  { %5293 = vmatprep.subr.bf16.mxu1 %v7321_v17 }
 0x87c   :  { %4445 = vmatpush1.bf16.msra.mxu0 %v7103_v24  ;;  %v3635_v24 = vrot.slane %v3626_v55, %v6182_v58 }
 0x87d   :  { %4446 = vmatprep.subr.bf16.mxu0 %v7109_v26  ;;  %5294 = vmatpush3.bf16.msra.mxu1 %v5642_v37  ;;  %v3631_v26 = vrot.slane %v3626_v55, %v6177_v56 }
 0x87e   :  { %5295 = vmatprep.subr.bf16.mxu1 %v7321_v17  ;;  %v3024_v17 = vmul.f32 1.442695, %v7256_v0 }
 0x880   :  { %4447 = vmatpush1.bf16.msra.mxu0 %v7115_v53  ;;  %5760 = vpow2.f32 %v3024_v17 }
 0x881   :  { %5296 = vmatpush3.bf16.msra.mxu1 %v5643_v38 }
 0x883   :  { %4465 = vmatmul.mubr.bf16.vlgmr.msra.gmra.mrb[40].mxu0 %v4075_v50 }
 0x88a   :  { %v5761_v2 = vpop.eup %5760 }
 0x916   :  { %v4181_v61 = vpop.f32.mrb[44].mxu0 }
 0x917   :  { %v4182_v20 = vadd.f32 %v7261_v51, %v4181_v61  ;;  %v5279_v25 = vpop.f32.mrb[45].mxu0 }
 0x918   :  { %v4184_v18 = vpop.f32.mrb[46].mxu0 }
 0x919   :  { %4187 = vmax.xlane.f32.xlu0 %v4182_v20  ;;  %v5280_v19 = vpop.f32.mrb[47].mxu0 }
 0x91a   :  { %v2439_v19 = vpop.xlane.xlu1 %2438 }
 0x91d   :  { %695 = vadd.xlane.f32.xlu0 %v5757_v44 }
 0x921   :  { %1860 = vadd.xlane.f32.xlu0 %v5759_v43  ;;  %v2440_v43 = vsub.f32 %v6776_v16, %v2439_v19 }
 0x925   :  { %3026 = vadd.xlane.f32.xlu0 %v5761_v2  ;;  %v3605_v2 = vpop.xlane.xlu1 %3604 }
 0x926   :  { %v3606_v55 = vsub.f32 %v7167_v11, %v3605_v2 }
 0x936   :  { %v4425_v22 = vpop.f32.mrb[36].mxu0 }
 0x937   :  { %v4427_v13 = vpop.f32.mrb[37].mxu0  ;;  %v5329_v36 = vadd.f32 %v4425_v22, %v3631_v26  ;;  %v2441_v22 = vmul.f32 1.442695, %v2440_v43 }
 0x938   :  { %v4429_v21 = vpop.f32.mrb[38].mxu0  ;;  %v5330_v53 = vadd.f32 %v4427_v13, %v3635_v24 }
 0x939   :  { %v4430_v23 = vpop.f32.mrb[39].mxu0  ;;  %v5056_v42 = vmul.f32 -1.442695, %v5329_v36 }
 0x93a   :  { %v5057_v39 = vmul.f32 -1.442695, %v5330_v53 }
 0x93c   :  { %5762 = vpow2.f32 %v5057_v39 }
 0x93d   :  { %5764 = vpow2.f32 %v5056_v42 }
 0x946   :  { %v5763_v62 = vpop.eup %5762 }
 0x947   :  { %v5765_v5 = vpop.eup %5764  ;;  %v4486_v47 = vadd.f32 1.0, %v5763_v62 }
 0x948   :  { %v4480_v59 = vadd.f32 1.0, %v5765_v5 }
 0x949   :  { %5766 = vrcp.f32 %v4486_v47 }
 0x94a   :  { %5768 = vrcp.f32 %v4480_v59 }
 0x953   :  { %v5767_v34 = vpop.eup %5766 }
 0x954   :  { %v5769_v29 = vpop.eup %5768  ;;  %v4496_v32 = vmul.f32 %v5767_v34, %v7178_v54 }
 0x956   :  { %v4466_v49 = vpop.f32.mrb[40].mxu0 }
 0x957   :  { %v5331_v52 = vadd.f32 %v4466_v49, %v3639_v60  ;;  %v4468_v58 = vpop.f32.mrb[41].mxu0 }
 0x958   :  { %v5332_v56 = vadd.f32 %v4468_v58, %v3643_v8  ;;  %v4470_v46 = vpop.f32.mrb[42].mxu0 }
 0x959   :  { %5770 = vtanh.f32 %v5331_v52  ;;  %v4471_v1 = vpop.f32.mrb[43].mxu0 }
 0x95a   :  { %v5058_v27 = vmul.f32 -1.442695, %v5332_v56 }
 0x95c   :  { %5772 = vpow2.f32 %v5058_v27 }
 0x963   :  { %v5771_v45 = vpop.eup %5770 }
 0x964   :  { %v4497_v14 = vmul.f32 %v5771_v45, %v5769_v29 }
 0x966   :  { %v5773_v48 = vpop.eup %5772  ;;  %v4498_v12 = vadd.f32 %v4497_v14, %v4496_v32 }
 0x967   :  { %v4493_v63 = vadd.f32 1.0, %v5773_v48 }
 0x968   :  { %5774 = vtanh.f32 %v4498_v12 }
 0x969   :  { %5776 = vrcp.f32 %v4493_v63 }
 0x972   :  { %v5775_v50 = vpop.eup %5774 }
 0x973   :  { %v5777_v15 = vpop.eup %5776 }
 0x974   :  { %v4500_v28 = vmul.f32 %v5777_v15, %v5775_v50 }
 0x976   :  { %v4501_v30 = vpack.c.bf16 %v4500_v28, %v4500_v28 }
 0x978   :  { %5298 = vmatmul.mubr.bf16.vlgmr.msra.gmra.mrb[44].mxu1 %v4501_v30  ;;  %4625 = vst [vmem:[#allocation2] sm:$0xf] %v4501_v30 }
 0x9a6   :  { %v4188_v31 = vpop.xlane.xlu0 %4187 }
 0x9a7   :  { %v4189_v33 = vsub.f32 %v4182_v20, %v4188_v31 }
 0x9a9   :  { %v4190_v35 = vmul.f32 1.442695, %v4189_v33 }
 0x9aa   :  { %v696_v37 = vpop.xlane.xlu0 %695 }
 0x9ab   :  { %5778 = vpow2.f32 %v4190_v35 }
 0x9ac   :  { %5780 = vlog2.f32 %v696_v37 }
 0x9ae   :  { %v1861_v38 = vpop.xlane.xlu0 %1860 }
 0x9af   :  { %5782 = vlog2.f32 %v1861_v38 }
 0x9b2   :  { %v3027_v54 = vpop.xlane.xlu0 %3026 }
 0x9b3   :  { %5784 = vlog2.f32 %v3027_v54 }
 0x9b5   :  { %v5779_v40 = vpop.eup %5778 }
 0x9b6   :  { %v5781_v10 = vpop.eup %5780  ;;  %4192 = vadd.xlane.f32.xlu0 %v5779_v40 }
 0x9b7   :  { %v698_v3 = vmul.f32 0.6931472, %v5781_v10 }
 0x9b9   :  { %v5783_v4 = vpop.eup %5782  ;;  %v699_v7 = vsub.f32 %v7246_v41, %v698_v3  ;;  %v7323_v41 = vld [vmem:[#allocation4_spill] sm:$0xff] }
 0x9ba   :  { %v1863_v9 = vmul.f32 0.6931472, %v5783_v4  ;;  %v1274_v18 = vsub.f32 %v7323_v41, %v7248_v57 }
 0x9bb   :  { %700 = vst [vmem:[%s7311_s6] sm:$0xff] %v699_v7 }
 0x9bc   :  { %v1864_v17 = vsub.f32 %v7252_v6, %v1863_v9  ;;  %v1275_v44 = vmul.f32 1.442695, %v1274_v18 }
 0x9bd   :  { %v5785_v61 = vpop.eup %5784 }
 0x9be   :  { %4799 = vst [vmem:[%s7311_s6 + $0x10] sm:$0xff] %v1864_v17  ;;  %v3029_v20 = vmul.f32 0.6931472, %v5785_v61 }
 0x9c0   :  { %v3030_v25 = vsub.f32 %v7256_v0, %v3029_v20  ;;  %v3607_v0 = vmul.f32 1.442695, %v3606_v55 }
 0x9c2   :  { %4911 = vst [vmem:[%s7311_s6 + $0x20] sm:$0xff] %v3030_v25 }
 0xa43   :  { %v4193_v6 = vpop.xlane.xlu0 %4192 }
 0xa44   :  { %5786 = vlog2.f32 %v4193_v6 }
 0xa45   :  { %5788 = vpow2.f32 %v1275_v44 }
 0xa46   :  { %5790 = vpow2.f32 %v2441_v22 }
 0xa47   :  { %5792 = vpow2.f32 %v3607_v0 }
 0xa4b   :  { %v4607_v13 = vpop.f32.mrb[44].mxu1 }
 0xa4c   :  { %v4608_v21 = vadd.f32 %v7261_v51, %v4607_v13  ;;  %v5299_v23 = vpop.f32.mrb[45].mxu1 }
 0xa4d   :  { %v4610_v24 = vpop.f32.mrb[46].mxu1 }
 0xa4e   :  { %v5787_v26 = vpop.eup %5786  ;;  %4613 = vmax.xlane.f32.xlu1 %v4608_v21  ;;  %v5300_v57 = vpop.f32.mrb[47].mxu1 }
 0xa4f   :  { %v4195_v53 = vmul.f32 0.6931472, %v5787_v26  ;;  %v5789_v16 = vpop.eup %5788 }
 0xa50   :  { %v5791_v11 = vpop.eup %5790 }
 0xa51   :  { %v4196_v36 = vsub.f32 %v4189_v33, %v4195_v53  ;;  %v5793_v39 = vpop.eup %5792 }
 0xa52   :  { %1277 = vadd.xlane.f32.xlu1 %v5789_v16 }
 0xa53   :  { %5023 = vst [vmem:[%s7311_s6 + $0x30] sm:$0xff] %v4196_v36 }
 0xa56   :  { %2443 = vadd.xlane.f32.xlu1 %v5791_v11 }
 0xa5a   :  { %3609 = vadd.xlane.f32.xlu1 %v5793_v39 }
 0xadb   :  { %v4614_v42 = vpop.xlane.xlu1 %4613 }
 0xadc   :  { %v4615_v51 = vsub.f32 %v4608_v21, %v4614_v42 }
 0xade   :  { %v4616_v62 = vmul.f32 1.442695, %v4615_v51 }
 0xadf   :  { %v1278_v5 = vpop.xlane.xlu1 %1277 }
 0xae0   :  { %5794 = vpow2.f32 %v4616_v62 }
 0xae1   :  { %5796 = vlog2.f32 %v1278_v5 }
 0xae3   :  { %v2444_v47 = vpop.xlane.xlu1 %2443 }
 0xae4   :  { %5798 = vlog2.f32 %v2444_v47 }
 0xae7   :  { %v3610_v60 = vpop.xlane.xlu1 %3609 }
 0xae8   :  { %5800 = vlog2.f32 %v3610_v60 }
 0xaea   :  { %v5795_v59 = vpop.eup %5794 }
 0xaeb   :  { %v5797_v8 = vpop.eup %5796  ;;  %4618 = vadd.xlane.f32.xlu1 %v5795_v59 }
 0xaec   :  { %v1280_v49 = vmul.f32 0.6931472, %v5797_v8 }
 0xaee   :  { %v5799_v52 = vpop.eup %5798  ;;  %v1281_v58 = vsub.f32 %v1274_v18, %v1280_v49 }
 0xaef   :  { %v2446_v56 = vmul.f32 0.6931472, %v5799_v52 }
 0xaf0   :  { %4743 = vst [vmem:[%s7311_s6 + $0x8] sm:$0xff] %v1281_v58 }
 0xaf1   :  { %v2447_v46 = vsub.f32 %v2440_v43, %v2446_v56 }
 0xaf2   :  { %v5801_v1 = vpop.eup %5800 }
 0xaf3   :  { %4855 = vst [vmem:[%s7311_s6 + $0x18] sm:$0xff] %v2447_v46  ;;  %v3612_v27 = vmul.f32 0.6931472, %v5801_v1 }
 0xaf5   :  { %v3613_v34 = vsub.f32 %v3606_v55, %v3612_v27 }
 0xaf7   :  { %4967 = vst [vmem:[%s7311_s6 + $0x28] sm:$0xff] %v3613_v34 }
 0xb78   :  { %v4619_v29 = vpop.xlane.xlu1 %4618 }
 0xb79   :  { %5802 = vlog2.f32 %v4619_v29 }
 0xb83   :  { %v5803_v45 = vpop.eup %5802 }
 0xb84   :  { %v4621_v32 = vmul.f32 0.6931472, %v5803_v45 }
 0xb86   :  { %v4622_v14 = vsub.f32 %v4615_v51, %v4621_v32 }
 0xb88   :  { %5068 = vst [vmem:[%s7311_s6 + $0x38] sm:$0xff] %v4622_v14 }

</bundles_post_ra>
